<compile_context>
chip_gen: v6e
topology: v6e:2x2x1
jax: 0.10.0
libtpu: 0.0.40
codegen_flags: <defaults>
</compile_context>

<pallas_src>
import functools

import jax
import jax.numpy as jnp
from jax import lax
from jax.experimental import pallas as pl
from jax.experimental.pallas import tpu as pltpu

IN_DIM = 768      # fixed by nn.Linear(768, dim)
DIM = 256         # module default dim
BOTTLENECK = 64   # nn.Linear(dim*2, 64)
EPS = 1e-5


def _softmax_lastdim(x):
    """Lane-axis softmax; denominator reciprocal goes to the EUP (approx)."""
    m = jnp.max(x, axis=-1, keepdims=True)
    e = jnp.exp(x - m)
    s = jnp.sum(e, axis=-1, keepdims=True)
    return e * pl.reciprocal(s, approx=True)


def fusion_kernel(a_ref, v_ref,
                  wa_ref, ba_ref, wv_ref, bv_ref, corr_ref,
                  wba_ref, wbv_ref, bb_ref, gamma_ref, beta_ref,
                  o_ref, *, bblk, seq):
    m_rows = bblk * seq
    bf16 = jnp.bfloat16

    # ---- batched projections: fold batch into the MXU M dimension ----------
    # Inputs arrive f32 (no wrapper-side cast pass); cast to bf16 here so the
    # projections run as native bf16 MXU matmuls with f32 accumulation.
    a_in = a_ref[...].reshape(m_rows, IN_DIM).astype(bf16)
    v_in = v_ref[...].reshape(m_rows, IN_DIM).astype(bf16)

    a_f = jnp.dot(a_in, wa_ref[...], preferred_element_type=jnp.float32) + ba_ref[...]  # [M, D] f32
    v_f = jnp.dot(v_in, wv_ref[...], preferred_element_type=jnp.float32) + bv_ref[...]  # [M, D] f32

    a_bf = a_f.astype(bf16)
    v_bf = v_f.astype(bf16)
    a1_bf = jnp.dot(a_bf, corr_ref[...],
                    preferred_element_type=jnp.float32).astype(bf16)                    # [M, D]

    # ---- per-batch [S, S] cross attention (bblk <= 2, tiny static unroll) ----
    contract_last = (((1,), (1,)), ((), ()))   # A @ B.T without materializing B.T
    for b in range(bblk):
        lo, hi = b * seq, (b + 1) * seq
        a_b_bf, v_b_bf, a1_b = a_bf[lo:hi], v_bf[lo:hi], a1_bf[lo:hi]
        a_b_f, v_b_f = a_f[lo:hi], v_f[lo:hi]

        # cc  = a1_b @ v_b.T  (torch cc_mat); ccT built directly so BOTH
        # softmaxes are lane-axis reductions (no transpose materialized).
        # With bf16 operands the duplicate score matmul is negligible at S=64.
        # TODO(synk): for large S compute cc once and derive the other softmax
        # via an XLU transpose / flash-style blocked online softmax.
        cc = lax.dot_general(a1_b, v_b_bf, contract_last,
                             preferred_element_type=jnp.float32)    # [S, S]
        ccT = lax.dot_general(v_b_bf, a1_b, contract_last,
                              preferred_element_type=jnp.float32)   # [S, S]

        # torch: audio_att = softmax(cc, dim=1) -> audio_att.T = softmax(cc.T, -1)
        #        visual_att = softmax(cc.T, dim=1) -> visual_att.T = softmax(cc, -1)
        audio_att_T = _softmax_lastdim(ccT).astype(bf16)
        visual_att_T = _softmax_lastdim(cc).astype(bf16)

        # atten_audiofeatures.T = audio_att.T @ a + a ; same for visual.
        att_audio_T = jnp.dot(audio_att_T, a_b_bf,
                              preferred_element_type=jnp.float32) + a_b_f    # [S, D] f32
        att_vis_T = jnp.dot(visual_att_T, v_b_bf,
                            preferred_element_type=jnp.float32) + v_b_f      # [S, D] f32

        # Bottleneck Linear(2D -> 64) as a split matmul (audio half + visual
        # half) -> no concatenated [S, 2D] buffer ever materializes.
        y = (jnp.dot(att_audio_T.astype(bf16), wba_ref[...],
                     preferred_element_type=jnp.float32)
             + jnp.dot(att_vis_T.astype(bf16), wbv_ref[...],
                       preferred_element_type=jnp.float32)
             + bb_ref[...])                                                  # [S, 64]

        # LayerNorm(64) + ReLU, then write this batch's rows straight out.
        mean = jnp.mean(y, axis=-1, keepdims=True)
        diff = y - mean
        var = jnp.mean(diff * diff, axis=-1, keepdims=True)
        out = jnp.maximum(diff * lax.rsqrt(var + EPS) * gamma_ref[...] + beta_ref[...],
                          0.0)
        o_ref[b] = out


def prepare_params(params):
    """One-time parameter preprocessing, hoisted out of the hot forward path:
    bf16-cast the MXU weight operands and split the bottleneck weight into its
    audio / visual halves (so the kernel never concatenates)."""
    wa, ba, wv, bv, corr, wb, bb, gamma, beta = params
    bf16 = jnp.bfloat16
    return (wa.astype(bf16), ba, wv.astype(bf16), bv, corr.astype(bf16),
            wb[:DIM].astype(bf16), wb[DIM:].astype(bf16), bb, gamma, beta)


def _choose_grid(batch):
    # v7x megacore: give each TensorCore >=2 grid steps so the per-step input
    # DMA overlaps compute; cap bblk at 2 to keep vreg pressure in the unrolled
    # per-batch loop flat.  On v5e/v6e the extra steps simply pipeline; the
    # ~0.35 us/step fixed cost is paid back by the overlap.
    for bblk in (2, 1):
        if batch % bblk == 0 and batch // bblk >= 4:
            return batch // bblk, bblk
    return batch, 1   # tiny batch: one batch element per step


def cross_fusion_forward(audio, visual, prepared, *, grid_steps=None):
    B, S, feat = audio.shape
    assert feat == IN_DIM
    (wa_bf, ba, wv_bf, bv, corr_bf,
     wba_bf, wbv_bf, bb, gamma, beta) = prepared

    if grid_steps is None:
        grid_steps, bblk = _choose_grid(B)
    else:
        assert B % grid_steps == 0
        bblk = B // grid_steps

    def io_map(g):
        return (g, 0, 0)

    def w_map(g):
        return (0, 0)

    weight_specs = [
        pl.BlockSpec((IN_DIM, DIM), w_map),           # wa (bf16)
        pl.BlockSpec((1, DIM), w_map),                # ba
        pl.BlockSpec((IN_DIM, DIM), w_map),           # wv (bf16)
        pl.BlockSpec((1, DIM), w_map),                # bv
        pl.BlockSpec((DIM, DIM), w_map),              # corr (bf16)
        pl.BlockSpec((DIM, BOTTLENECK), w_map),       # wb audio half (bf16)
        pl.BlockSpec((DIM, BOTTLENECK), w_map),       # wb visual half (bf16)
        pl.BlockSpec((1, BOTTLENECK), w_map),         # bb
        pl.BlockSpec((1, BOTTLENECK), w_map),         # gamma
        pl.BlockSpec((1, BOTTLENECK), w_map),         # beta
    ]

    kernel = functools.partial(fusion_kernel, bblk=bblk, seq=S)

    # Output at its true 64-lane width: the small masked stores are cheaper
    # than a padded buffer plus a second HBM pass to slice it.
    return pl.pallas_call(
        kernel,
        out_shape=jax.ShapeDtypeStruct((B, S, BOTTLENECK), jnp.float32),
        grid_spec=pltpu.PrefetchScalarGridSpec(
            num_scalar_prefetch=0,
            grid=(grid_steps,),
            in_specs=[
                pl.BlockSpec((bblk, S, IN_DIM), io_map),   # audio (f32)
                pl.BlockSpec((bblk, S, IN_DIM), io_map),   # visual (f32)
            ] + weight_specs,
            out_specs=pl.BlockSpec((bblk, S, BOTTLENECK), io_map),
        ),
        # Working set is a few MiB; default scoped-VMEM limits are ample on
        # v5e / v6e / v7x, so no vmem_limit_bytes override.
        compiler_params=pltpu.CompilerParams(
            dimension_semantics=("parallel",),
        ),
    )(audio, visual, wa_bf, ba, wv_bf, bv, corr_bf, wba_bf, wbv_bf,
      bb, gamma, beta)


def reference_forward(audio, visual, params):
    """Pure-JAX mirror of the PyTorch forward with the SAME bf16 quantization
    points as the kernel (isolates kernel wiring, not dtype choice); matmuls
    run at HIGHEST precision with f32 accumulation."""
    wa, ba, wv, bv, corr, wb, bb, gamma, beta = params
    hi = lax.Precision.HIGHEST
    f32 = jnp.float32
    q = lambda x: x.astype(jnp.bfloat16).astype(f32)

    a = jnp.matmul(q(audio), q(wa), precision=hi) + ba[0]            # [B, S, D]
    v = jnp.matmul(q(visual), q(wv), precision=hi) + bv[0]           # [B, S, D]
    a_q, v_q = q(a), q(v)
    a1_q = q(jnp.matmul(a_q, q(corr), precision=hi))
    cc = jnp.einsum("bsd,btd->bst", a1_q, v_q, precision=hi)         # [B, S, S]
    audio_att = jax.nn.softmax(cc, axis=1)
    visual_att = jax.nn.softmax(jnp.swapaxes(cc, 1, 2), axis=1)
    att_a = jnp.einsum("bds,bst->bdt", jnp.swapaxes(a_q, 1, 2), q(audio_att),
                       precision=hi) + jnp.swapaxes(a, 1, 2)
    att_v = jnp.einsum("bds,bst->bdt", jnp.swapaxes(v_q, 1, 2), q(visual_att),
                       precision=hi) + jnp.swapaxes(v, 1, 2)
    fused = jnp.swapaxes(jnp.concatenate([att_a, att_v], axis=1), 1, 2)  # [B, S, 2D]
    y = jnp.matmul(q(fused), q(wb), precision=hi) + bb[0]
    mean = jnp.mean(y, axis=-1, keepdims=True)
    var = jnp.mean((y - mean) ** 2, axis=-1, keepdims=True)
    y = (y - mean) / jnp.sqrt(var + EPS) * gamma[0] + beta[0]
    return jnp.maximum(y, 0.0)


def init_params(key):
    """Deterministic, synthetic parameter init (xavier-normal-ish)."""
    ks = jax.random.split(key, 6)

    def xavier(k, fan_in, fan_out, shape):
        std = (2.0 / (fan_in + fan_out)) ** 0.5
        return (std * jax.random.normal(k, shape)).astype(jnp.float32)

    wa = xavier(ks[0], IN_DIM, DIM, (IN_DIM, DIM))
    ba = (0.01 * jax.random.normal(ks[1], (1, DIM))).astype(jnp.float32)
    wv = xavier(ks[2], IN_DIM, DIM, (IN_DIM, DIM))
    bv = (0.01 * jax.random.normal(ks[3], (1, DIM))).astype(jnp.float32)
    corr = xavier(ks[4], DIM, DIM, (DIM, DIM))
    wb = xavier(ks[5], 2 * DIM, BOTTLENECK, (2 * DIM, BOTTLENECK))
    bb = jnp.zeros((1, BOTTLENECK), jnp.float32)
    gamma = jnp.ones((1, BOTTLENECK), jnp.float32)
    beta = jnp.zeros((1, BOTTLENECK), jnp.float32)
    return (wa, ba, wv, bv, corr, wb, bb, gamma, beta)


if __name__ == "__main__":
    B, S = 4, 64   # small batch, seq 64 (as in the module docstring), feature 768
    key = jax.random.PRNGKey(0)
    k_a, k_v, k_p = jax.random.split(key, 3)

    audio = jax.random.normal(k_a, (B, S, IN_DIM), dtype=jnp.float32)
    visual = jax.random.normal(k_v, (B, S, IN_DIM), dtype=jnp.float32)
    params = init_params(k_p)

    # One-time parameter prep (bf16 casts + bottleneck split) — not on the
    # per-call hot path.
    prepared = jax.block_until_ready(prepare_params(params))

    out = cross_fusion_forward(audio, visual, prepared)
    out = jax.block_until_ready(out)
    assert out.shape == (B, S, BOTTLENECK)

    ref = reference_forward(audio, visual, params)
    # Tolerance covers the EUP approximate reciprocal in the softmax and f32
    # accumulation-order differences (the reference mirrors the same bf16
    # quantization points); wiring errors would produce O(1) discrepancies.
    max_err = float(jnp.max(jnp.abs(out - ref)))
    assert jnp.allclose(out, ref, atol=2e-2, rtol=2e-2), max_err

    print("KERNEL_OK")
</pallas_src>

<mosaic_0001>
module attributes {stable_mosaic.version = 11 : i64} {
  func.func @fusion_kernel(%arg0: i32, %arg1: memref<1x64x768xf32, #tpu.memory_space<vmem>>, %arg2: memref<1x64x768xf32, #tpu.memory_space<vmem>>, %arg3: memref<768x256xbf16, #tpu.memory_space<vmem>>, %arg4: memref<1x256xf32, #tpu.memory_space<vmem>>, %arg5: memref<768x256xbf16, #tpu.memory_space<vmem>>, %arg6: memref<1x256xf32, #tpu.memory_space<vmem>>, %arg7: memref<256x256xbf16, #tpu.memory_space<vmem>>, %arg8: memref<256x64xbf16, #tpu.memory_space<vmem>>, %arg9: memref<256x64xbf16, #tpu.memory_space<vmem>>, %arg10: memref<1x64xf32, #tpu.memory_space<vmem>>, %arg11: memref<1x64xf32, #tpu.memory_space<vmem>>, %arg12: memref<1x64xf32, #tpu.memory_space<vmem>>, %arg13: memref<1x64x64xf32, #tpu.memory_space<vmem>>) attributes {dimension_semantics = [#tpu.dimension_semantics<parallel>], iteration_bounds = array<i64: 4>, scalar_prefetch = 0 : i64, scratch_operands = 0 : i64, tpu.core_type = #tpu.core_type<tc>, window_params = [{transform_indices = @transform_0, window_bounds = array<i64: 1, 64, 768>}, {transform_indices = @transform_1, window_bounds = array<i64: 1, 64, 768>}, {pipeline_mode = #tpu.pipeline_mode<synchronous>, transform_indices = @transform_2, window_bounds = array<i64: 768, 256>}, {pipeline_mode = #tpu.pipeline_mode<synchronous>, transform_indices = @transform_3, window_bounds = array<i64: 1, 256>}, {pipeline_mode = #tpu.pipeline_mode<synchronous>, transform_indices = @transform_4, window_bounds = array<i64: 768, 256>}, {pipeline_mode = #tpu.pipeline_mode<synchronous>, transform_indices = @transform_5, window_bounds = array<i64: 1, 256>}, {pipeline_mode = #tpu.pipeline_mode<synchronous>, transform_indices = @transform_6, window_bounds = array<i64: 256, 256>}, {pipeline_mode = #tpu.pipeline_mode<synchronous>, transform_indices = @transform_7, window_bounds = array<i64: 256, 64>}, {pipeline_mode = #tpu.pipeline_mode<synchronous>, transform_indices = @transform_8, window_bounds = array<i64: 256, 64>}, {pipeline_mode = #tpu.pipeline_mode<synchronous>, transform_indices = @transform_9, window_bounds = array<i64: 1, 64>}, {pipeline_mode = #tpu.pipeline_mode<synchronous>, transform_indices = @transform_10, window_bounds = array<i64: 1, 64>}, {pipeline_mode = #tpu.pipeline_mode<synchronous>, transform_indices = @transform_11, window_bounds = array<i64: 1, 64>}, {transform_indices = @transform_12, window_bounds = array<i64: 1, 64, 64>}]} {
    %c0 = arith.constant 0 : index
    %c0_0 = arith.constant 0 : index
    %c0_1 = arith.constant 0 : index
    %0 = vector.load %arg1[%c0, %c0_0, %c0_1] : memref<1x64x768xf32, #tpu.memory_space<vmem>>, vector<1x64x768xf32>
    %1 = vector.shape_cast %0 : vector<1x64x768xf32> to vector<64x768xf32>
    %2 = arith.truncf %1 : vector<64x768xf32> to vector<64x768xbf16>
    %c0_2 = arith.constant 0 : index
    %c0_3 = arith.constant 0 : index
    %c0_4 = arith.constant 0 : index
    %3 = vector.load %arg2[%c0_2, %c0_3, %c0_4] : memref<1x64x768xf32, #tpu.memory_space<vmem>>, vector<1x64x768xf32>
    %4 = vector.shape_cast %3 : vector<1x64x768xf32> to vector<64x768xf32>
    %5 = arith.truncf %4 : vector<64x768xf32> to vector<64x768xbf16>
    %c0_5 = arith.constant 0 : index
    %c0_6 = arith.constant 0 : index
    %6 = vector.load %arg3[%c0_5, %c0_6] : memref<768x256xbf16, #tpu.memory_space<vmem>>, vector<768x256xbf16>
    %cst = arith.constant dense<0.000000e+00> : vector<64x256xf32>
    %7 = tpu.matmul %2, %6, %cst {dimension_numbers = #tpu.dot_dimension_numbers<[1], [0], [0], [1], [0, 0, 1, 1], [], []>} : vector<64x768xbf16>, vector<768x256xbf16>, vector<64x256xf32> -> vector<64x256xf32>
    %c0_7 = arith.constant 0 : index
    %c0_8 = arith.constant 0 : index
    %8 = vector.load %arg4[%c0_7, %c0_8] : memref<1x256xf32, #tpu.memory_space<vmem>>, vector<1x256xf32>
    %9 = vector.broadcast %8 : vector<1x256xf32> to vector<64x256xf32>
    %10 = arith.addf %7, %9 : vector<64x256xf32>
    %c0_9 = arith.constant 0 : index
    %c0_10 = arith.constant 0 : index
    %11 = vector.load %arg5[%c0_9, %c0_10] : memref<768x256xbf16, #tpu.memory_space<vmem>>, vector<768x256xbf16>
    %cst_11 = arith.constant dense<0.000000e+00> : vector<64x256xf32>
    %12 = tpu.matmul %5, %11, %cst_11 {dimension_numbers = #tpu.dot_dimension_numbers<[1], [0], [0], [1], [0, 0, 1, 1], [], []>} : vector<64x768xbf16>, vector<768x256xbf16>, vector<64x256xf32> -> vector<64x256xf32>
    %c0_12 = arith.constant 0 : index
    %c0_13 = arith.constant 0 : index
    %13 = vector.load %arg6[%c0_12, %c0_13] : memref<1x256xf32, #tpu.memory_space<vmem>>, vector<1x256xf32>
    %14 = vector.broadcast %13 : vector<1x256xf32> to vector<64x256xf32>
    %15 = arith.addf %12, %14 : vector<64x256xf32>
    %16 = arith.truncf %10 : vector<64x256xf32> to vector<64x256xbf16>
    %17 = arith.truncf %15 : vector<64x256xf32> to vector<64x256xbf16>
    %c0_14 = arith.constant 0 : index
    %c0_15 = arith.constant 0 : index
    %18 = vector.load %arg7[%c0_14, %c0_15] : memref<256x256xbf16, #tpu.memory_space<vmem>>, vector<256x256xbf16>
    %cst_16 = arith.constant dense<0.000000e+00> : vector<64x256xf32>
    %19 = tpu.matmul %16, %18, %cst_16 {dimension_numbers = #tpu.dot_dimension_numbers<[1], [0], [0], [1], [0, 0, 1, 1], [], []>} : vector<64x256xbf16>, vector<256x256xbf16>, vector<64x256xf32> -> vector<64x256xf32>
    %20 = arith.truncf %19 : vector<64x256xf32> to vector<64x256xbf16>
    %cst_17 = arith.constant dense<0.000000e+00> : vector<64x64xf32>
    %21 = tpu.matmul %20, %17, %cst_17 {dimension_numbers = #tpu.dot_dimension_numbers<[1], [1], [0], [0], [0, 0, 1, 0], [], []>} : vector<64x256xbf16>, vector<64x256xbf16>, vector<64x64xf32> -> vector<64x64xf32>
    %cst_18 = arith.constant dense<0.000000e+00> : vector<64x64xf32>
    %22 = tpu.matmul %17, %20, %cst_18 {dimension_numbers = #tpu.dot_dimension_numbers<[1], [1], [0], [0], [0, 0, 1, 0], [], []>} : vector<64x256xbf16>, vector<64x256xbf16>, vector<64x64xf32> -> vector<64x64xf32>
    %cst_19 = arith.constant dense<0xFF800000> : vector<64xf32>
    %23 = vector.multi_reduction <maximumf>, %22, %cst_19 [1] : vector<64x64xf32> to vector<64xf32>
    %24 = vector.shape_cast %23 : vector<64xf32> to vector<64x1xf32>
    %25 = vector.broadcast %24 : vector<64x1xf32> to vector<64x64xf32>
    %26 = arith.subf %22, %25 : vector<64x64xf32>
    %27 = math.exp %26 : vector<64x64xf32>
    %cst_20 = arith.constant dense<0.000000e+00> : vector<64xf32>
    %28 = vector.multi_reduction <add>, %27, %cst_20 [1] : vector<64x64xf32> to vector<64xf32>
    %29 = vector.shape_cast %28 : vector<64xf32> to vector<64x1xf32>
    %30 = tpu.reciprocal %29 {approx = true} : vector<64x1xf32> -> vector<64x1xf32>
    %31 = vector.broadcast %30 : vector<64x1xf32> to vector<64x64xf32>
    %32 = arith.mulf %27, %31 : vector<64x64xf32>
    %33 = arith.truncf %32 : vector<64x64xf32> to vector<64x64xbf16>
    %cst_21 = arith.constant dense<0xFF800000> : vector<64xf32>
    %34 = vector.multi_reduction <maximumf>, %21, %cst_21 [1] : vector<64x64xf32> to vector<64xf32>
    %35 = vector.shape_cast %34 : vector<64xf32> to vector<64x1xf32>
    %36 = vector.broadcast %35 : vector<64x1xf32> to vector<64x64xf32>
    %37 = arith.subf %21, %36 : vector<64x64xf32>
    %38 = math.exp %37 : vector<64x64xf32>
    %cst_22 = arith.constant dense<0.000000e+00> : vector<64xf32>
    %39 = vector.multi_reduction <add>, %38, %cst_22 [1] : vector<64x64xf32> to vector<64xf32>
    %40 = vector.shape_cast %39 : vector<64xf32> to vector<64x1xf32>
    %41 = tpu.reciprocal %40 {approx = true} : vector<64x1xf32> -> vector<64x1xf32>
    %42 = vector.broadcast %41 : vector<64x1xf32> to vector<64x64xf32>
    %43 = arith.mulf %38, %42 : vector<64x64xf32>
    %44 = arith.truncf %43 : vector<64x64xf32> to vector<64x64xbf16>
    %cst_23 = arith.constant dense<0.000000e+00> : vector<64x256xf32>
    %45 = tpu.matmul %33, %16, %cst_23 {dimension_numbers = #tpu.dot_dimension_numbers<[1], [0], [0], [1], [0, 0, 1, 1], [], []>} : vector<64x64xbf16>, vector<64x256xbf16>, vector<64x256xf32> -> vector<64x256xf32>
    %46 = arith.addf %45, %10 : vector<64x256xf32>
    %cst_24 = arith.constant dense<0.000000e+00> : vector<64x256xf32>
    %47 = tpu.matmul %44, %17, %cst_24 {dimension_numbers = #tpu.dot_dimension_numbers<[1], [0], [0], [1], [0, 0, 1, 1], [], []>} : vector<64x64xbf16>, vector<64x256xbf16>, vector<64x256xf32> -> vector<64x256xf32>
    %48 = arith.addf %47, %15 : vector<64x256xf32>
    %49 = arith.truncf %46 : vector<64x256xf32> to vector<64x256xbf16>
    %c0_25 = arith.constant 0 : index
    %c0_26 = arith.constant 0 : index
    %50 = vector.load %arg8[%c0_25, %c0_26] : memref<256x64xbf16, #tpu.memory_space<vmem>>, vector<256x64xbf16>
    %cst_27 = arith.constant dense<0.000000e+00> : vector<64x64xf32>
    %51 = tpu.matmul %49, %50, %cst_27 {dimension_numbers = #tpu.dot_dimension_numbers<[1], [0], [0], [1], [0, 0, 1, 1], [], []>} : vector<64x256xbf16>, vector<256x64xbf16>, vector<64x64xf32> -> vector<64x64xf32>
    %52 = arith.truncf %48 : vector<64x256xf32> to vector<64x256xbf16>
    %c0_28 = arith.constant 0 : index
    %c0_29 = arith.constant 0 : index
    %53 = vector.load %arg9[%c0_28, %c0_29] : memref<256x64xbf16, #tpu.memory_space<vmem>>, vector<256x64xbf16>
    %cst_30 = arith.constant dense<0.000000e+00> : vector<64x64xf32>
    %54 = tpu.matmul %52, %53, %cst_30 {dimension_numbers = #tpu.dot_dimension_numbers<[1], [0], [0], [1], [0, 0, 1, 1], [], []>} : vector<64x256xbf16>, vector<256x64xbf16>, vector<64x64xf32> -> vector<64x64xf32>
    %55 = arith.addf %51, %54 : vector<64x64xf32>
    %c0_31 = arith.constant 0 : index
    %c0_32 = arith.constant 0 : index
    %56 = vector.load %arg10[%c0_31, %c0_32] : memref<1x64xf32, #tpu.memory_space<vmem>>, vector<1x64xf32>
    %57 = vector.broadcast %56 : vector<1x64xf32> to vector<64x64xf32>
    %58 = arith.addf %55, %57 : vector<64x64xf32>
    %cst_33 = arith.constant dense<0.000000e+00> : vector<64xf32>
    %59 = vector.multi_reduction <add>, %58, %cst_33 [1] : vector<64x64xf32> to vector<64xf32>
    %60 = vector.shape_cast %59 : vector<64xf32> to vector<64x1xf32>
    %cst_34 = arith.constant 6.400000e+01 : f32
    %61 = vector.broadcast %cst_34 : f32 to vector<64x1xf32>
    %62 = arith.divf %60, %61 : vector<64x1xf32>
    %63 = vector.broadcast %62 : vector<64x1xf32> to vector<64x64xf32>
    %64 = arith.subf %58, %63 : vector<64x64xf32>
    %65 = arith.mulf %64, %64 : vector<64x64xf32>
    %cst_35 = arith.constant dense<0.000000e+00> : vector<64xf32>
    %66 = vector.multi_reduction <add>, %65, %cst_35 [1] : vector<64x64xf32> to vector<64xf32>
    %67 = vector.shape_cast %66 : vector<64xf32> to vector<64x1xf32>
    %cst_36 = arith.constant 6.400000e+01 : f32
    %68 = vector.broadcast %cst_36 : f32 to vector<64x1xf32>
    %69 = arith.divf %67, %68 : vector<64x1xf32>
    %cst_37 = arith.constant 9.99999974E-6 : f32
    %70 = vector.broadcast %cst_37 : f32 to vector<64x1xf32>
    %71 = arith.addf %69, %70 : vector<64x1xf32>
    %72 = math.rsqrt %71 : vector<64x1xf32>
    %73 = vector.broadcast %72 : vector<64x1xf32> to vector<64x64xf32>
    %74 = arith.mulf %64, %73 : vector<64x64xf32>
    %c0_38 = arith.constant 0 : index
    %c0_39 = arith.constant 0 : index
    %75 = vector.load %arg11[%c0_38, %c0_39] : memref<1x64xf32, #tpu.memory_space<vmem>>, vector<1x64xf32>
    %76 = vector.broadcast %75 : vector<1x64xf32> to vector<64x64xf32>
    %77 = arith.mulf %74, %76 : vector<64x64xf32>
    %c0_40 = arith.constant 0 : index
    %c0_41 = arith.constant 0 : index
    %78 = vector.load %arg12[%c0_40, %c0_41] : memref<1x64xf32, #tpu.memory_space<vmem>>, vector<1x64xf32>
    %79 = vector.broadcast %78 : vector<1x64xf32> to vector<64x64xf32>
    %80 = arith.addf %77, %79 : vector<64x64xf32>
    %cst_42 = arith.constant 0.000000e+00 : f32
    %81 = vector.broadcast %cst_42 : f32 to vector<64x64xf32>
    %82 = arith.maximumf %80, %81 : vector<64x64xf32>
    %c0_43 = arith.constant 0 : index
    %c0_44 = arith.constant 0 : index
    %c0_45 = arith.constant 0 : index
    %83 = vector.load %arg13[%c0_43, %c0_44, %c0_45] : memref<1x64x64xf32, #tpu.memory_space<vmem>>, vector<1x64x64xf32>
    %84 = vector.shape_cast %83 : vector<1x64x64xf32> to vector<64x64xf32>
    %85 = vector.shape_cast %82 : vector<64x64xf32> to vector<1x64x64xf32>
    tpu.vector_store %arg13[%c0_43, %c0_44, %c0_45], %85 {strides = array<i32>} : memref<1x64x64xf32, #tpu.memory_space<vmem>>, vector<1x64x64xf32>,
    return
  }
  func.func @transform_0(%arg0: i32) -> (i32, i32, i32) {
    %c0_i32 = arith.constant 0 : i32
    %c0_i32_0 = arith.constant 0 : i32
    %c0_i32_1 = arith.constant 0 : i32
    return %arg0, %c0_i32, %c0_i32_0 : i32, i32, i32
  }
  func.func @transform_1(%arg0: i32) -> (i32, i32, i32) {
    %c0_i32 = arith.constant 0 : i32
    %c0_i32_0 = arith.constant 0 : i32
    %c0_i32_1 = arith.constant 0 : i32
    return %arg0, %c0_i32, %c0_i32_0 : i32, i32, i32
  }
  func.func @transform_2(%arg0: i32) -> (i32, i32) {
    %c0_i32 = arith.constant 0 : i32
    %c0_i32_0 = arith.constant 0 : i32
    %c0_i32_1 = arith.constant 0 : i32
    return %c0_i32, %c0_i32_0 : i32, i32
  }
  func.func @transform_3(%arg0: i32) -> (i32, i32) {
    %c0_i32 = arith.constant 0 : i32
    %c0_i32_0 = arith.constant 0 : i32
    %c0_i32_1 = arith.constant 0 : i32
    return %c0_i32, %c0_i32_0 : i32, i32
  }
  func.func @transform_4(%arg0: i32) -> (i32, i32) {
    %c0_i32 = arith.constant 0 : i32
    %c0_i32_0 = arith.constant 0 : i32
    %c0_i32_1 = arith.constant 0 : i32
    return %c0_i32, %c0_i32_0 : i32, i32
  }
  func.func @transform_5(%arg0: i32) -> (i32, i32) {
    %c0_i32 = arith.constant 0 : i32
    %c0_i32_0 = arith.constant 0 : i32
    %c0_i32_1 = arith.constant 0 : i32
    return %c0_i32, %c0_i32_0 : i32, i32
  }
  func.func @transform_6(%arg0: i32) -> (i32, i32) {
    %c0_i32 = arith.constant 0 : i32
    %c0_i32_0 = arith.constant 0 : i32
    %c0_i32_1 = arith.constant 0 : i32
    return %c0_i32, %c0_i32_0 : i32, i32
  }
  func.func @transform_7(%arg0: i32) -> (i32, i32) {
    %c0_i32 = arith.constant 0 : i32
    %c0_i32_0 = arith.constant 0 : i32
    %c0_i32_1 = arith.constant 0 : i32
    return %c0_i32, %c0_i32_0 : i32, i32
  }
  func.func @transform_8(%arg0: i32) -> (i32, i32) {
    %c0_i32 = arith.constant 0 : i32
    %c0_i32_0 = arith.constant 0 : i32
    %c0_i32_1 = arith.constant 0 : i32
    return %c0_i32, %c0_i32_0 : i32, i32
  }
  func.func @transform_9(%arg0: i32) -> (i32, i32) {
    %c0_i32 = arith.constant 0 : i32
    %c0_i32_0 = arith.constant 0 : i32
    %c0_i32_1 = arith.constant 0 : i32
    return %c0_i32, %c0_i32_0 : i32, i32
  }
  func.func @transform_10(%arg0: i32) -> (i32, i32) {
    %c0_i32 = arith.constant 0 : i32
    %c0_i32_0 = arith.constant 0 : i32
    %c0_i32_1 = arith.constant 0 : i32
    return %c0_i32, %c0_i32_0 : i32, i32
  }
  func.func @transform_11(%arg0: i32) -> (i32, i32) {
    %c0_i32 = arith.constant 0 : i32
    %c0_i32_0 = arith.constant 0 : i32
    %c0_i32_1 = arith.constant 0 : i32
    return %c0_i32, %c0_i32_0 : i32, i32
  }
  func.func @transform_12(%arg0: i32) -> (i32, i32, i32) {
    %c0_i32 = arith.constant 0 : i32
    %c0_i32_0 = arith.constant 0 : i32
    %c0_i32_1 = arith.constant 0 : i32
    return %arg0, %c0_i32, %c0_i32_0 : i32, i32, i32
  }
}

</mosaic_0001>

<bundles_post_ra>
// kernel: tpu_custom_call.1
= control target key start
LH: loop header
LB: loop body
LE: loop exit
PB: predicated region body
PF: predicated region fallthrough
CT: control target
= control target key end

     0   :  { %s6025_s0 = inlined_call_operand.hbm [shape: f32[4,64,768], index: 0, kind: input, shape index: {}]   ;;  %s6026_s1 = inlined_call_operand.hbm [shape: f32[4,64,768], index: 1, kind: input, shape index: {}]   ;;  %s6027_s2 = inlined_call_operand.hbm [shape: bf16[768,256], index: 2, kind: input, shape index: {}]   ;;  %s6028_s3 = inlined_call_operand.vmem [shape: f32[1,256], index: 3, kind: input, shape index: {}]   ;;  %s6029_s4 = inlined_call_operand.hbm [shape: bf16[768,256], index: 4, kind: input, shape index: {}]   ;;  %s6030_s5 = inlined_call_operand.vmem [shape: f32[1,256], index: 5, kind: input, shape index: {}]   ;;  %s6031_s6 = inlined_call_operand.vmem [shape: bf16[256,256], index: 6, kind: input, shape index: {}]   ;;  %s6032_s7 = inlined_call_operand.vmem [shape: bf16[256,64], index: 7, kind: input, shape index: {}]   ;;  %s6033_s8 = inlined_call_operand.vmem [shape: bf16[256,64], index: 8, kind: input, shape index: {}]   ;;  %s6034_s9 = inlined_call_operand.vmem [shape: f32[1,64], index: 9, kind: input, shape index: {}]   ;;  %s6035_s10 = inlined_call_operand.vmem [shape: f32[1,64], index: 10, kind: input, shape index: {}]   ;;  %s6036_s11 = inlined_call_operand.vmem [shape: f32[1,64], index: 11, kind: input, shape index: {}]   ;;  %s6037_s12 = inlined_call_operand.hbm [shape: f32[4,64,64], index: 12, kind: output, shape index: {}]  }
   0x1   :  { %6058 = sst [smem:[#allocation31_spill]] %s6025_s0 }
   0x2   :  { %6059 = sst [smem:[#allocation32_spill]] %s6027_s2 }
   0x3   :  { %6060 = sst [smem:[#allocation33_spill]] %s6029_s4 }
   0x4   :  { %6061 = sst [smem:[#allocation34_spill]] %s6037_s12 }
   0x5   :  { %17 = vsyncpa [#allocation3], 0 }
   0x6   :  { %19 = vsyncpa [#allocation3 + $0x1], 0 }
   0x7   :  { %20 = vsyncpa [#allocation6], 0 }
   0x8   :  { %22 = vsyncpa [#allocation6 + $0x1], 0 }
   0x9   :  { %23 = vsyncpa [#allocation9], 0 }
   0xa   :  { %24 = vsyncpa [#allocation4], 0 }
   0xb   :  { %26 = vsyncpa [#allocation4 + $0x1], 0  ;;  %s4890_s21 = smov 0   ;;  %s4892_s22 = smov 0  }
   0xc   :  { %s4894_s23 = smov 0   ;;  %s4896_s24 = smov 0  }
   0xd LB: > { %6062 = sst [smem:[#allocation16_spill]] %s4799_s21  ;;  %s4911_s25 = sadd.s32 4294967295, %s4811_s24   ;;  %s4811_s24 = sphi %s4896_s24, %s6108_s24   ;;  %s4807_s23 = sphi %s4894_s23, %s6113_s23   ;;  %s4803_s22 = sphi %s4892_s22, %s6112_s22   ;;  %s4799_s21 = sphi %s4890_s21, %s6111_s21  }
   0xe   : > { %6063 = sst [smem:[#allocation17_spill]] %s4807_s23  ;;  %s3731_s26 = sadd.s32 4294967294, %s4811_s24  }
   0xf   : > { %p52_p0 = scmp.ne.s32.totalorder %s4803_s22, %s4799_s21  ;;  %p6038_p1 = scmp.eq.s32.totalorder %s4911_s25, 0 }
  0x10   : > { %p318_p3 = scmp.eq.s32.totalorder %s3731_s26, 3  ;;  %p3732_p5 = scmp.ge.s32.totalorder %s4811_s24, 1 }
  0x11   : > { %p4920_p4 = por %p6038_p1, %p52_p0  ;;  %p325_p7 = scmp.lt.s32.totalorder %s4811_s24, 5 }
  0x12   : > { %p4925_p6 = por %p318_p3, %p52_p0  ;;  %s4813_s30 = smov [#allocation7]  }
  0x13   : > { %s6064_s27 = scalar_select %p4920_p4, 1, 0 }
  0x14   : > { %s6065_s28 = scalar_select %p4925_p6, 1, 0 }
  0x15   : > { %p4930_p8 = pnand %p3732_p5, %p325_p7  ;;  %s337_s13 = sshll.u32 %s4813_s30, 4  ;;  %s338_s13 = int_to_ptr.vmem [resolvable:$true] %s337_s13 }
  0x16   : > { %6066 = sst [smem:[#allocation18_spill]] %s6065_s28  ;;  %s4814_s15 = smov [#allocation8]  }
  0x17   : > { %p4114_p9 = pneg %p4930_p8  ;;  %s353_s16 = sshll.u32 %s4814_s15, 4  ;;  %s354_s16 = int_to_ptr.vmem [resolvable:$true] %s353_s16 }
  0x18   : > { %s4638_s17 = scalar_lea.vmem %s338_s13, 12288  ;;  %p4646_p3 = scmp.lt.s32.totalorder %s338_s13, %s338_s13 }
  0x19   : > { %p4938_p10 = pnand %p4114_p9, %p6038_p1  ;;  %p4639_p12 = scmp.ne.s32.totalorder %s338_s13, %s4638_s17 }
  0x1a   : > { %p4647_p5 = scmp.lt.s32.totalorder %s4638_s17, %s4638_s17 }
  0x1b   : > { %p4629_p11 = pneg %p4938_p10 }
  0x1c   : > { %p4648_p7 = por %p4647_p5, %p4646_p3 }
  0x1d   : > { %p4641_p13 = pnand %p4639_p12, %p4629_p11 }
  0x1f   : > { %p4642_p0 = pneg %p4641_p13 }
  0x21   : > { %p4649_p9 = pnand %p4648_p7, %p4642_p0 }
  0x23   : > { %4652 = shalt.err (!%p4649_p9)
}
  0x24   : > { %s4815_s18 = smov 128   ;;  %s4816_s19 = smov 8  }
  0x25   : > { %s6069_s2 = sld [smem:[#allocation32_spill]]  ;;  %s4664_s30 = scalar_lea.vmem %s354_s16, 12288 }
  0x26   : > { %p4665_p1 = scmp.ne.s32.totalorder %s354_s16, %s4664_s30  ;;  %p4672_p2 = scmp.lt.s32.totalorder %s354_s16, %s354_s16 }
  0x27   : > { %p4673_p6 = scmp.lt.s32.totalorder %s4664_s30, %s4664_s30 }
  0x28   : > { %p4667_p12 = pnand %p4665_p1, %p4629_p11 }
  0x29   : > { %p4674_p3 = por %p4673_p6, %p4672_p2 }
  0x2a   : > { %p4668_p13 = pneg %p4667_p12 }
  0x2b   : > { %4117 = dma.hbm_to_vmem [thread:$0]  (!%p4938_p10), %s6069_s2, 12288, %s338_s13, [#allocation6], %s4815_s18, %s4815_s18, %s4816_s19  }
  0x2c   : > { %p4675_p0 = pnand %p4674_p3, %p4668_p13 }
  0x2e   : > { %4678 = shalt.err (!%p4675_p0)
}
  0x2f   : > { %s6070_s4 = sld [smem:[#allocation33_spill]]  ;;  %s4961_s13 = sadd.s32 1, %s4811_s24  }
  0x30   : > { %6071 = sst [smem:[#allocation19_spill]] %s4961_s13  ;;  %s39_s14 = sadd.s32 1, %s4807_s23 }
  0x31   : > { %s36_s20 = ssub.s32 %s4811_s24, %s4961_s13  ;;  %p46_p1 = scmp.ne.s32.totalorder %s4807_s23, %s4803_s22 }
  0x32   : > { %p37_p2 = scmp.eq.s32.totalorder %s36_s20, 0  ;;  %p47_p6 = scmp.eq.s32.totalorder %s4811_s24, 0 }
  0x33   : > { %p6072_p11 = scmp.eq.s32.totalorder %s4911_s25, 3  ;;  %p4134_p7 = scmp.lt.s32.totalorder %s4811_s24, 4 }
  0x34   : > { %s4977_s30 = scalar_select %p37_p2, %s4807_s23, %s39_s14  }
  0x35   : > { %4120 = dma.hbm_to_vmem [thread:$0]  (!%p4938_p10), %s6070_s4, 12288, %s354_s16, [#allocation9], %s4815_s18, %s4815_s18, %s4816_s19  }
  0x36   : > { %p4971_p5 = por %p6072_p11, %p46_p1  ;;  %6074 = sst [smem:[#allocation20_spill]] %s4977_s30 }
  0x37   : > { %p48_p9 = por %p47_p6, %p46_p1  ;;  %s388_s15 = sand.u32 1, %s4807_s23  }
  0x38   : > { %s6073_s26 = scalar_select %p4971_p5, 1, 0 }
  0x39   : > { %s4980_s16 = smul.u32 384, %s388_s15  ;;  %p4983_p10 = pnand %p4134_p7, %p48_p9 }
  0x3a   : > { %s6042_s18 = smul.u32 6144, %s4811_s24  ;;  %s6076_s0 = sld [smem:[#allocation31_spill]] }
  0x3b   : > { %s392_s14 = scalar_lea.vmem [#allocation2], %s4980_s16  ;;  %s409_s30 = sand.u32 1, %s4811_s24  }
  0x3c   : > { %s399_s4 = sshll.u32 %s392_s14, 4  ;;  %s4998_s23 = scalar_lea.sflag [#allocation3], %s388_s15  ;;  %s4995_s4 = int_to_ptr.vmem [resolvable:$true] %s399_s4 }
  0x3d   : > { %p4681_p13 = pneg %p4983_p10 }
  0x40   : > { %s4992_s2 = scalar_lea.hbm %s6076_s0, %s6042_s18  ;;  %s4684_s18 = scalar_lea.hbm %s6076_s0, 24576 }
  0x41   : > { %s4679_s13 = scalar_lea.hbm %s4992_s2, 6144  ;;  %p4685_p1 = scmp.lt.s32.totalorder %s4992_s2, %s6076_s0 }
  0x42   : > { %p4680_p12 = scmp.ne.s32.totalorder %s4992_s2, %s4679_s13  ;;  %p4686_p2 = scmp.lt.s32.totalorder %s4684_s18, %s4679_s13 }
  0x44   : > { %p4682_p3 = pnand %p4681_p13, %p4680_p12  ;;  %p4687_p6 = por %p4686_p2, %p4685_p1 }
  0x46   : > { %p4683_p0 = pneg %p4682_p3 }
  0x48   : > { %p4688_p11 = pnand %p4687_p6, %p4683_p0 }
  0x4a   : > { %4691 = shalt.err (!%p4688_p11)
}
  0x4b   : > { %s4692_s15 = scalar_lea.vmem %s4995_s4, 6144  ;;  %s4817_s14 = smov [#allocation2]  }
  0x4c   : > { %p4693_p7 = scmp.ne.s32.totalorder %s4995_s4, %s4692_s15  ;;  %s4697_s17 = sshll.u32 %s4817_s14, 4  ;;  %s4698_s17 = int_to_ptr.vmem [resolvable:$false] %s4697_s17 }
  0x4d   : > { %s4699_s20 = scalar_lea.vmem %s4698_s17, 12288  ;;  %p4700_p3 = scmp.lt.s32.totalorder %s4995_s4, %s4698_s17 }
  0x4e   : > { %p4695_p9 = pnand %p4693_p7, %p4681_p13  ;;  %p4701_p5 = scmp.lt.s32.totalorder %s4699_s20, %s4692_s15 }
  0x50   : > { %p4696_p12 = pneg %p4695_p9  ;;  %p4702_p4 = por %p4701_p5, %p4700_p3 }
  0x52   : > { %p4703_p1 = pnand %p4702_p4, %p4696_p12 }
  0x54   : > { %4706 = shalt.err (!%p4703_p1)
}
  0x55   : > { %s4818_s21 = smov 768   ;;  %s4819_s28 = smov 48  }
  0x56   : > { %4124 = dma.hbm_to_vmem [thread:$0]  (!%p4983_p10), %s4992_s2, 6144, %s4995_s4, %s4998_s23, %s4818_s21, %s4818_s21, %s4819_s28  }
  0x57   : > { %s6077_s13 = smul.u32 6144, %s4811_s24  ;;  %s413_s17 = scalar_lea.vmem [#allocation5], %s4980_s16 }
  0x58   : > { %s420_s20 = sshll.u32 %s413_s17, 4  ;;  %s410_s0 = scalar_lea.sflag [#allocation6], %s409_s30  ;;  %s5036_s20 = int_to_ptr.vmem [resolvable:$true] %s420_s20 }
  0x59   : > { %s5033_s14 = scalar_lea.hbm %s6026_s1, %s6077_s13  ;;  %s4712_s23 = scalar_lea.hbm %s6026_s1, 24576 }
  0x5a   : > { %s4707_s12 = scalar_lea.hbm %s5033_s14, 6144  ;;  %p4713_p2 = scmp.lt.s32.totalorder %s5033_s14, %s6026_s1 }
  0x5b   : > { %p4708_p4 = scmp.ne.s32.totalorder %s5033_s14, %s4707_s12  ;;  %p4714_p6 = scmp.lt.s32.totalorder %s4712_s23, %s4707_s12 }
  0x5d   : > { %p4710_p5 = pnand %p4708_p4, %p4681_p13  ;;  %p4715_p11 = por %p4714_p6, %p4713_p2 }
  0x5f   : > { %p4711_p0 = pneg %p4710_p5 }
  0x61   : > { %p4716_p7 = pnand %p4715_p11, %p4711_p0 }
  0x63   : > { %4719 = shalt.err (!%p4716_p7)
}
  0x64   : > { %s4720_s30 = scalar_lea.vmem %s5036_s20, 6144  ;;  %s4820_s16 = smov [#allocation5]  }
  0x65   : > { %p4721_p9 = scmp.ne.s32.totalorder %s5036_s20, %s4720_s30  ;;  %s4725_s15 = sshll.u32 %s4820_s16, 4  ;;  %s4726_s15 = int_to_ptr.vmem [resolvable:$false] %s4725_s15 }
  0x66   : > { %s4727_s17 = scalar_lea.vmem %s4726_s15, 12288  ;;  %p4728_p1 = scmp.lt.s32.totalorder %s5036_s20, %s4726_s15 }
  0x67   : > { %p4723_p12 = pnand %p4721_p9, %p4681_p13  ;;  %p4729_p4 = scmp.lt.s32.totalorder %s4727_s17, %s4720_s30 }
  0x69   : > { %p4724_p3 = pneg %p4723_p12  ;;  %p4730_p5 = por %p4729_p4, %p4728_p1 }
  0x6b   : > { %p4731_p2 = pnand %p4730_p5, %p4724_p3 }
  0x6d   : > { %4734 = shalt.err (!%p4731_p2)
}
  0x6e   : > { %4127 = dma.hbm_to_vmem [thread:$0]  (!%p4983_p10), %s5033_s14, 6144, %s5036_s20, %s410_s0, %s4818_s21, %s4818_s21, %s4819_s28  }
  0x6f   : > { %432 = sbr.rel (%p4930_p8) target bundleno = 1994 (0x7ca), region = 68 }
  0x74   : > { %s5068_s12 = sand.u32 1, %s4803_s22   ;;  %p6078_p13 = scmp.ne.s32.totalorder %s6064_s27, 0 }
  0x75   : > { %s4099_s2 = smul.u32 384, %s5068_s12  ;;  %s435_s4 = scalar_lea.sflag [#allocation3], %s5068_s12 }
  0x77   : > { %s5072_s23 = scalar_lea.vmem [#allocation2], %s4099_s2 }
  0x78   : > { %4778 = dma.done.wait (%p6078_p13), %s435_s4, 6144  }
  0x79   : > { %4780 = vsyncadd (%p6078_p13), %s435_s4, 4294961152  ;;  %s443_s0 = sand.u32 1, %s4911_s25   ;;  %s5079_s19 = scalar_lea.vmem [#allocation5], %s4099_s2 }
  0x7a   : > { %s444_s29 = scalar_lea.sflag [#allocation6], %s443_s0 }
  0x7b   : > { %4782 = dma.done.wait (%p6078_p13), %s444_s29, 6144  }
  0x7c   : > { %4784 = vsyncadd (%p6078_p13), %s444_s29, 4294961152  ;;  %p6079_p8 = scmp.eq.s32.totalorder %s4911_s25, 0 }
  0x7e   : > { %4786 = dma.done.wait (%p6079_p8), [#allocation6], 12288   ;;  %p6080_p10 = pmov %p6079_p8 }
  0x7f   : > { %p6081_p0 = pmov %p6079_p8 }
  0x80   : > { %4788 = vsyncadd (%p6080_p10), [#allocation6], 4294955008 }
  0x81   : > { %4790 = dma.done.wait (%p6081_p0), [#allocation9], 12288   ;;  %p6082_p6 = pmov %p6081_p0 }
  0x82   : > { %v4179_v0 = vld [vmem:[#allocation7 + $0x74] ss:$8 sps:$4 sm:$0xff]   ;;  %v4181_v1 = vld [vmem:[#allocation7 + $0x70] ss:$8 sps:$4 sm:$0xff]   ;;  %v4185_v4 = vld [vmem:[#allocation7 + $0x64] ss:$8 sps:$4 sm:$0xff]  }
  0x83   : > { %4792 = vsyncadd (%p6082_p6), [#allocation9], 4294955008  ;;  %1234 = vmatprep.subr.bf16.mxu0 %v4179_v0  ;;  %v4182_v2 = vld [vmem:[#allocation7 + $0x174] ss:$8 sps:$4 sm:$0xff]   ;;  %v4184_v3 = vld [vmem:[#allocation7 + $0x170] ss:$8 sps:$4 sm:$0xff]  }
  0x84   : > { %1235 = vmatpush1.bf16.msra.mxu0 %v4181_v1  ;;  %v4187_v5 = vld [vmem:[#allocation7 + $0x60] ss:$8 sps:$4 sm:$0xff]   ;;  %1307 = vmatprep.subr.bf16.mxu1 %v4182_v2  ;;  %v4188_v6 = vld [vmem:[#allocation7 + $0x164] ss:$8 sps:$4 sm:$0xff]   ;;  %v4191_v8 = vld [vmem:[#allocation7 + $0x54] ss:$8 sps:$4 sm:$0xff]  }
  0x85   : > { %1308 = vmatpush1.bf16.msra.mxu1 %v4184_v3  ;;  %1236 = vmatprep.subr.bf16.mxu0 %v4185_v4  ;;  %v4190_v7 = vld [vmem:[#allocation7 + $0x160] ss:$8 sps:$4 sm:$0xff]   ;;  %v4193_v9 = vld [vmem:[#allocation7 + $0x50] ss:$8 sps:$4 sm:$0xff]   ;;  %v4194_v10 = vld [vmem:[#allocation7 + $0x154] ss:$8 sps:$4 sm:$0xff]  }
  0x86   : > { %1309 = vmatprep.subr.bf16.mxu1 %v4188_v6  ;;  %v4197_v11 = vld [vmem:[#allocation7 + $0x44] ss:$8 sps:$4 sm:$0xff]   ;;  %v4196_v12 = vld [vmem:[#allocation7 + $0x150] ss:$8 sps:$4 sm:$0xff]   ;;  %v4199_v14 = vld [vmem:[#allocation7 + $0x40] ss:$8 sps:$4 sm:$0xff]  }
  0x87   : > { %v4200_v13 = vld [vmem:[#allocation7 + $0x144] ss:$8 sps:$4 sm:$0xff]   ;;  %v4203_v15 = vld [vmem:[#allocation7 + $0x34] ss:$8 sps:$4 sm:$0xff]   ;;  %v4202_v16 = vld [vmem:[#allocation7 + $0x140] ss:$8 sps:$4 sm:$0xff]  }
  0x88   : > { %1237 = vmatpush1.bf16.msra.mxu0 %v4187_v5  ;;  %v4206_v17 = vld [vmem:[#allocation7 + $0x134] ss:$8 sps:$4 sm:$0xff]   ;;  %v4205_v18 = vld [vmem:[#allocation7 + $0x30] ss:$8 sps:$4 sm:$0xff]   ;;  %v4209_v19 = vld [vmem:[#allocation7 + $0x24] ss:$8 sps:$4 sm:$0xff]  }
  0x89   : > { %1238 = vmatprep.subr.bf16.mxu0 %v4191_v8  ;;  %1310 = vmatpush1.bf16.msra.mxu1 %v4190_v7  ;;  %v4208_v20 = vld [vmem:[#allocation7 + $0x130] ss:$8 sps:$4 sm:$0xff]   ;;  %v4212_v21 = vld [vmem:[#allocation7 + $0x124] ss:$8 sps:$4 sm:$0xff]   ;;  %v4211_v22 = vld [vmem:[#allocation7 + $0x20] ss:$8 sps:$4 sm:$0xff]  }
  0x8a   : > { %1311 = vmatprep.subr.bf16.mxu1 %v4194_v10  ;;  %v4215_v23 = vld [vmem:[#allocation7 + $0x14] ss:$8 sps:$4 sm:$0xff]   ;;  %v4214_v24 = vld [vmem:[#allocation7 + $0x120] ss:$8 sps:$4 sm:$0xff]   ;;  %v4217_v26 = vld [vmem:[#allocation7 + $0x10] ss:$8 sps:$4 sm:$0xff]  }
  0x8b   : > { %v4218_v25 = vld [vmem:[#allocation7 + $0x114] ss:$8 sps:$4 sm:$0xff]   ;;  %v4221_v27 = vld [vmem:[#allocation7 + $0x4] ss:$8 sps:$4 sm:$0xff]   ;;  %v4220_v28 = vld [vmem:[#allocation7 + $0x110] ss:$8 sps:$4 sm:$0xff]  }
  0x8c   : > { %1239 = vmatpush1.bf16.msra.mxu0 %v4193_v9  ;;  %v4224_v29 = vld [vmem:[#allocation7 + $0x104] ss:$8 sps:$4 sm:$0xff]   ;;  %v4223_v30 = vld [vmem:[#allocation7] ss:$8 sps:$4 sm:$0xff]   ;;  %v4227_v31 = vld [vmem:[#allocation7 + $0xf4] ss:$8 sps:$4 sm:$0xff]  }
  0x8d   : > { %1240 = vmatprep.subr.bf16.mxu0 %v4197_v11  ;;  %1312 = vmatpush1.bf16.msra.mxu1 %v4196_v12  ;;  %v4226_v32 = vld [vmem:[#allocation7 + $0x100] ss:$8 sps:$4 sm:$0xff]   ;;  %v4230_v33 = vld [vmem:[#allocation7 + $0x1f4] ss:$8 sps:$4 sm:$0xff]   ;;  %v4229_v34 = vld [vmem:[#allocation7 + $0xf0] ss:$8 sps:$4 sm:$0xff]  }
  0x8e   : > { %1313 = vmatprep.subr.bf16.mxu1 %v4200_v13  ;;  %v4233_v35 = vld [vmem:[#allocation7 + $0xe4] ss:$8 sps:$4 sm:$0xff]   ;;  %v4232_v36 = vld [vmem:[#allocation7 + $0x1f0] ss:$8 sps:$4 sm:$0xff]   ;;  %v4235_v38 = vld [vmem:[#allocation7 + $0xe0] ss:$8 sps:$4 sm:$0xff]  }
  0x8f   : > { %v4236_v37 = vld [vmem:[#allocation7 + $0x1e4] ss:$8 sps:$4 sm:$0xff]   ;;  %v4239_v39 = vld [vmem:[#allocation7 + $0xd4] ss:$8 sps:$4 sm:$0xff]   ;;  %v4238_v40 = vld [vmem:[#allocation7 + $0x1e0] ss:$8 sps:$4 sm:$0xff]  }
  0x90   : > { %1241 = vmatpush1.bf16.msra.mxu0 %v4199_v14  ;;  %v4242_v41 = vld [vmem:[#allocation7 + $0x1d4] ss:$8 sps:$4 sm:$0xff]   ;;  %v4241_v42 = vld [vmem:[#allocation7 + $0xd0] ss:$8 sps:$4 sm:$0xff]   ;;  %v4245_v43 = vld [vmem:[#allocation7 + $0xc4] ss:$8 sps:$4 sm:$0xff]  }
  0x91   : > { %1242 = vmatprep.subr.bf16.mxu0 %v4203_v15  ;;  %1314 = vmatpush1.bf16.msra.mxu1 %v4202_v16  ;;  %v4244_v44 = vld [vmem:[#allocation7 + $0x1d0] ss:$8 sps:$4 sm:$0xff]   ;;  %v4248_v45 = vld [vmem:[#allocation7 + $0x1c4] ss:$8 sps:$4 sm:$0xff]   ;;  %v4247_v48 = vld [vmem:[#allocation7 + $0xc0] ss:$8 sps:$4 sm:$0xff]  }
  0x92   : > { %1315 = vmatprep.subr.bf16.mxu1 %v4206_v17  ;;  %v503_v46 = vld [vmem:[%s5072_s23 + $0x8] sm:$0xff]  ;;  %v509_v47 = vld [vmem:[%s5072_s23 + $0x38] sm:$0xff]  ;;  %v502_v5 = vld [vmem:[%s5072_s23] sm:$0xff]  ;;  %vm2679_vm0 = vcmask 523264   ;;  %s3741_s14 = sshll.u32 %s5068_s12, 6  ;;  %s4014_s13 = sshll.u32 %s4911_s25, 10 }
  0x93   : > { %v551_v49 = vpack.c.bf16 %v509_v47, %v503_v46  ;;  %v4251_v50 = vld [vmem:[#allocation7 + $0xb4] ss:$8 sps:$4 sm:$0xff]   ;;  %v4250_v51 = vld [vmem:[#allocation7 + $0x1c0] ss:$8 sps:$4 sm:$0xff]   ;;  %v4253_v56 = vld [vmem:[#allocation7 + $0xb0] ss:$8 sps:$4 sm:$0xff]  }
  0x94   : > { %1243 = vmatpush1.bf16.msra.mxu0 %v4205_v18  ;;  %v505_v52 = vld [vmem:[%s5072_s23 + $0x18] sm:$0xff]  ;;  %v511_v53 = vld [vmem:[%s5072_s23 + $0x48] sm:$0xff]  ;;  %v508_v7 = vld [vmem:[%s5072_s23 + $0x30] sm:$0xff]  ;;  %s5952_s20 = scalar_lea.vmem [#allocation10], %s3741_s14  ;;  %s6103_s15 = sld [smem:[#allocation34_spill]] }
  0x95   : > { %1244 = vmatprep.subr.bf16.mxu0 %v4209_v19  ;;  %1316 = vmatpush1.bf16.msra.mxu1 %v4208_v20  ;;  %v4254_v54 = vld [vmem:[#allocation7 + $0x1b4] ss:$8 sps:$4 sm:$0xff]   ;;  %v553_v55 = vpack.c.bf16 %v511_v53, %v505_v52  ;;  %v4257_v57 = vld [vmem:[#allocation7 + $0xa4] ss:$8 sps:$4 sm:$0xff]   ;;  %v4256_v58 = vld [vmem:[#allocation7 + $0x1b0] ss:$8 sps:$4 sm:$0xff]   ;;  %v550_v11 = vpack.c.bf16 %v508_v7, %v502_v5 }
  0x96   : > { %1317 = vmatprep.subr.bf16.mxu1 %v4212_v21  ;;  %1266 = vmatprep.mubr.bf16.mxu0 %v551_v49  ;;  %v4260_v59 = vld [vmem:[#allocation7 + $0x1a4] ss:$8 sps:$4 sm:$0xff]   ;;  %v4259_v60 = vld [vmem:[#allocation7 + $0xa0] ss:$8 sps:$4 sm:$0xff]   ;;  %v4263_v61 = vld [vmem:[#allocation7 + $0x94] ss:$8 sps:$4 sm:$0xff]  }
  0x97   : > { %1339 = vmatprep.mubr.bf16.mxu1 %v553_v55  ;;  %v4262_v62 = vld [vmem:[#allocation7 + $0x1a0] ss:$8 sps:$4 sm:$0xff]   ;;  %v4266_v63 = vld [vmem:[#allocation7 + $0x194] ss:$8 sps:$4 sm:$0xff]   ;;  %v4265_v0 = vld [vmem:[#allocation7 + $0x90] ss:$8 sps:$4 sm:$0xff]  }
  0x98   : > { %1245 = vmatpush1.bf16.msra.mxu0 %v4211_v22  ;;  %v4268_v1 = vld [vmem:[#allocation7 + $0x190] ss:$8 sps:$4 sm:$0xff]   ;;  %v4269_v2 = vld [vmem:[#allocation7 + $0x84] ss:$8 sps:$4 sm:$0xff]   ;;  %v4271_v3 = vld [vmem:[#allocation7 + $0x80] ss:$8 sps:$4 sm:$0xff]  }
  0x99   : > { %1246 = vmatprep.subr.bf16.mxu0 %v4215_v23  ;;  %1318 = vmatpush1.bf16.msra.mxu1 %v4214_v24  ;;  %v4272_v4 = vld [vmem:[#allocation7 + $0x184] ss:$8 sps:$4 sm:$0xff]   ;;  %v4274_v6 = vld [vmem:[#allocation7 + $0x180] ss:$8 sps:$4 sm:$0xff]   ;;  %v4277_v8 = vld [vmem:[#allocation7 + $0x274] ss:$8 sps:$4 sm:$0xff]  }
  0x9a   : > { %1319 = vmatprep.subr.bf16.mxu1 %v4218_v25  ;;  %v504_v9 = vld [vmem:[%s5072_s23 + $0x10] sm:$0xff]  ;;  %v510_v10 = vld [vmem:[%s5072_s23 + $0x40] sm:$0xff]  ;;  %v515_v21 = vld [vmem:[%s5072_s23 + $0x68] sm:$0xff]  ;;  %s3616_s18 = sshll.u32 %s5952_s20, 4  ;;  %s5979_s17 = scalar_lea.hbm %s6103_s15, %s4014_s13  ;;  %s5981_s18 = int_to_ptr.vmem [resolvable:$true] %s3616_s18 }
  0x9b   : > { %v4280_v12 = vld [vmem:[#allocation8 + $0x74] ss:$8 sps:$4 sm:$0xff]   ;;  %v4275_v13 = vld [vmem:[#allocation7 + $0x270] ss:$8 sps:$4 sm:$0xff]   ;;  %v552_v14 = vpack.c.bf16 %v510_v10, %v504_v9  ;;  %v4283_v15 = vld [vmem:[#allocation7 + $0x264] ss:$8 sps:$4 sm:$0xff]  }
  0x9c   : > { %1247 = vmatpush1.bf16.msra.mxu0 %v4217_v26  ;;  %v4278_v16 = vld [vmem:[#allocation8 + $0x70] ss:$8 sps:$4 sm:$0xff]   ;;  %v4281_v17 = vld [vmem:[#allocation7 + $0x260] ss:$8 sps:$4 sm:$0xff]   ;;  %v4286_v18 = vld [vmem:[#allocation8 + $0x64] ss:$8 sps:$4 sm:$0xff]  }
  0x9d   : > { %1248 = vmatprep.subr.bf16.mxu0 %v4221_v27  ;;  %1320 = vmatpush1.bf16.msra.mxu1 %v4220_v28  ;;  %v4284_v19 = vld [vmem:[#allocation8 + $0x60] ss:$8 sps:$4 sm:$0xff]   ;;  %v4289_v20 = vld [vmem:[#allocation7 + $0x254] ss:$8 sps:$4 sm:$0xff]   ;;  %v4287_v26 = vld [vmem:[#allocation7 + $0x250] ss:$8 sps:$4 sm:$0xff]  }
  0x9e   : > { %1321 = vmatprep.subr.bf16.mxu1 %v4224_v29  ;;  %v521_v22 = vld [vmem:[%s5072_s23 + $0x98] sm:$0xff]  ;;  %v514_v23 = vld [vmem:[%s5072_s23 + $0x60] sm:$0xff]  ;;  %v520_v25 = vld [vmem:[%s5072_s23 + $0x90] sm:$0xff]  ;;  %s3603_s2 = scalar_lea.sflag [#allocation4], %s5068_s12  ;;  %s4735_s4 = scalar_lea.vmem %s5981_s18, 1024 }
  0x9f   : > { %v557_v24 = vpack.c.bf16 %v521_v22, %v515_v21  ;;  %v4292_v27 = vld [vmem:[#allocation8 + $0x54] ss:$8 sps:$4 sm:$0xff]   ;;  %v556_v28 = vpack.c.bf16 %v520_v25, %v514_v23  ;;  %v4299_v46 = vld [vmem:[#allocation7 + $0x230] ss:$8 sps:$4 sm:$0xff]   ;;  %v534_v52 = vld [vmem:[%s5072_s23 + $0x100] sm:$0xff]  ;;  %p4736_p11 = scmp.ne.s32.totalorder %s5981_s18, %s4735_s4  ;;  %p6104_p7 = scmp.ne.s32.totalorder %s6073_s26, 0 }
  0xa0   : > { %1249 = vmatpush1.bf16.msra.mxu0 %v4223_v30  ;;  %v517_v29 = vld [vmem:[%s5072_s23 + $0x78] sm:$0xff]  ;;  %v523_v30 = vld [vmem:[%s5072_s23 + $0xa8] sm:$0xff]  ;;  %v540_v7 = vld [vmem:[%s5072_s23 + $0x130] sm:$0xff]  ;;  %s4822_s25 = smov [#allocation10]  }
  0xa1   : > { %1250 = vmatprep.subr.bf16.mxu0 %v4227_v31  ;;  %1322 = vmatpush1.bf16.msra.mxu1 %v4226_v32  ;;  %v516_v31 = vld [vmem:[%s5072_s23 + $0x70] sm:$0xff]  ;;  %v522_v32 = vld [vmem:[%s5072_s23 + $0xa0] sm:$0xff]  ;;  %v529_v49 = vld [vmem:[%s5072_s23 + $0xd8] sm:$0xff]  ;;  %p4737_p9 = pnand %p4736_p11, %p6104_p7 }
  0xa2   : > { %1323 = vmatprep.subr.bf16.mxu1 %v4230_v33  ;;  %v4295_v33 = vld [vmem:[#allocation7 + $0x244] ss:$8 sps:$4 sm:$0xff]   ;;  %v4304_v47 = vld [vmem:[#allocation8 + $0x34] ss:$8 sps:$4 sm:$0xff]   ;;  %v4326_v22 = vld [vmem:[#allocation8 + $0xf0] ss:$8 sps:$4 sm:$0xff]  }
  0xa3   : > { %v4307_v53 = vld [vmem:[#allocation7 + $0x224] ss:$8 sps:$4 sm:$0xff]   ;;  %v541_v5 = vld [vmem:[%s5072_s23 + $0x138] sm:$0xff]  ;;  %p4738_p12 = pneg %p4737_p9 }
  0xa4   : > { %1251 = vmatpush2.bf16.msra.mxu0 %v4229_v34  ;;  %v559_v34 = vpack.c.bf16 %v523_v30, %v517_v29  ;;  %v4319_v9 = vld [vmem:[#allocation7 + $0x204] ss:$8 sps:$4 sm:$0xff]   ;;  %v513_v21 = vld [vmem:[%s5072_s23 + $0x58] sm:$0xff]  ;;  %v4332_v30 = vld [vmem:[#allocation8 + $0xe0] ss:$8 sps:$4 sm:$0xff]  }
  0xa5   : > { %1252 = vmatprep.subr.bf16.mxu0 %v4233_v35  ;;  %1324 = vmatpush2.bf16.msra.mxu1 %v4232_v36  ;;  %v558_v35 = vpack.c.bf16 %v522_v32, %v516_v31  ;;  %v4290_v36 = vld [vmem:[#allocation8 + $0x50] ss:$8 sps:$4 sm:$0xff]   ;;  %v4334_v25 = vld [vmem:[#allocation8 + $0xe4] ss:$8 sps:$4 sm:$0xff]   ;;  %v4340_v31 = vld [vmem:[#allocation8 + $0xd4] ss:$8 sps:$4 sm:$0xff]  }
  0xa6   : > { %1325 = vmatprep.subr.bf16.mxu1 %v4236_v37  ;;  %v4293_v37 = vld [vmem:[#allocation7 + $0x240] ss:$8 sps:$4 sm:$0xff]   ;;  %v4335_v32 = vld [vmem:[#allocation7 + $0x2d0] ss:$8 sps:$4 sm:$0xff]  }
  0xa8   : > { %1253 = vmatpush2.bf16.msra.mxu0 %v4235_v38  ;;  %v4298_v38 = vld [vmem:[#allocation8 + $0x44] ss:$8 sps:$4 sm:$0xff]  }
  0xa9   : > { %1254 = vmatprep.subr.bf16.mxu0 %v4239_v39  ;;  %1326 = vmatpush2.bf16.msra.mxu1 %v4238_v40  ;;  %v4296_v39 = vld [vmem:[#allocation8 + $0x40] ss:$8 sps:$4 sm:$0xff]   ;;  %v4301_v40 = vld [vmem:[#allocation7 + $0x234] ss:$8 sps:$4 sm:$0xff]  }
  0xaa   : > { %1327 = vmatprep.subr.bf16.mxu1 %v4242_v41  ;;  %v527_v41 = vld [vmem:[%s5072_s23 + $0xc8] sm:$0xff] }
  0xac   : > { %1255 = vmatpush2.bf16.msra.mxu0 %v4241_v42  ;;  %v533_v42 = vld [vmem:[%s5072_s23 + $0xf8] sm:$0xff] }
  0xad   : > { %1256 = vmatprep.subr.bf16.mxu0 %v4245_v43  ;;  %1328 = vmatpush2.bf16.msra.mxu1 %v4244_v44  ;;  %v526_v43 = vld [vmem:[%s5072_s23 + $0xc0] sm:$0xff]  ;;  %v563_v44 = vpack.c.bf16 %v533_v42, %v527_v41  ;;  %v4350_v42 = vld [vmem:[#allocation8 + $0xb0] ss:$8 sps:$4 sm:$0xff]  }
  0xae   : > { %1329 = vmatprep.subr.bf16.mxu1 %v4248_v45  ;;  %v532_v45 = vld [vmem:[%s5072_s23 + $0xf0] sm:$0xff]  ;;  %v4355_v41 = vld [vmem:[#allocation7 + $0x2a4] ss:$8 sps:$4 sm:$0xff]  }
  0xb0   : > { %1257 = vmatpush2.bf16.msra.mxu0 %v4247_v48  ;;  %v562_v48 = vpack.c.bf16 %v532_v45, %v526_v43  ;;  %v4358_v43 = vld [vmem:[#allocation8 + $0xa4] ss:$8 sps:$4 sm:$0xff]   ;;  %v4361_v45 = vld [vmem:[#allocation7 + $0x294] ss:$8 sps:$4 sm:$0xff]  }
  0xb1   : > { %1258 = vmatprep.subr.bf16.mxu0 %v4251_v50  ;;  %1330 = vmatpush2.bf16.msra.mxu1 %v4250_v51  ;;  %v535_v50 = vld [vmem:[%s5072_s23 + $0x108] sm:$0xff]  ;;  %v528_v51 = vld [vmem:[%s5072_s23 + $0xd0] sm:$0xff] }
  0xb2   : > { %1331 = vmatprep.subr.bf16.mxu1 %v4254_v54  ;;  %v565_v54 = vpack.c.bf16 %v535_v50, %v529_v49  ;;  %v564_v55 = vpack.c.bf16 %v534_v52, %v528_v51  ;;  %v4362_v49 = vld [vmem:[#allocation8 + $0x90] ss:$8 sps:$4 sm:$0xff]   ;;  %v4367_v50 = vld [vmem:[#allocation7 + $0x284] ss:$8 sps:$4 sm:$0xff]   ;;  %v4365_v52 = vld [vmem:[#allocation7 + $0x280] ss:$8 sps:$4 sm:$0xff]  }
  0xb3   : > { %v4370_v51 = vld [vmem:[#allocation8 + $0x84] ss:$8 sps:$4 sm:$0xff]  }
  0xb4   : > { %1259 = vmatpush2.bf16.msra.mxu0 %v4253_v56  ;;  %v4302_v56 = vld [vmem:[#allocation8 + $0x30] ss:$8 sps:$4 sm:$0xff]  }
  0xb5   : > { %1260 = vmatprep.subr.bf16.mxu0 %v4257_v57  ;;  %1332 = vmatpush2.bf16.msra.mxu1 %v4256_v58  ;;  %v4305_v57 = vld [vmem:[#allocation7 + $0x220] ss:$8 sps:$4 sm:$0xff]   ;;  %v4310_v58 = vld [vmem:[#allocation8 + $0x24] ss:$8 sps:$4 sm:$0xff]  }
  0xb6   : > { %1333 = vmatprep.subr.bf16.mxu1 %v4260_v59  ;;  %v4308_v59 = vld [vmem:[#allocation8 + $0x20] ss:$8 sps:$4 sm:$0xff]  }
  0xb8   : > { %1261 = vmatpush2.bf16.msra.mxu0 %v4259_v60  ;;  %v4313_v60 = vld [vmem:[#allocation7 + $0x214] ss:$8 sps:$4 sm:$0xff]  }
  0xb9   : > { %1262 = vmatprep.subr.bf16.mxu0 %v4263_v61  ;;  %1334 = vmatpush2.bf16.msra.mxu1 %v4262_v62  ;;  %v539_v61 = vld [vmem:[%s5072_s23 + $0x128] sm:$0xff]  ;;  %v545_v62 = vld [vmem:[%s5072_s23 + $0x158] sm:$0xff] }
  0xba   : > { %1335 = vmatprep.subr.bf16.mxu1 %v4266_v63  ;;  %v538_v63 = vld [vmem:[%s5072_s23 + $0x120] sm:$0xff] }
  0xbc   : > { %1263 = vmatpush2.bf16.msra.mxu0 %v4265_v0  ;;  %v569_v0 = vpack.c.bf16 %v545_v62, %v539_v61  ;;  %v4371_v62 = vld [vmem:[#allocation8 + $0x170] ss:$8 sps:$4 sm:$0xff]  }
  0xbd   : > { %1264 = vmatprep.subr.bf16.mxu0 %v4269_v2  ;;  %1336 = vmatpush2.bf16.msra.mxu1 %v4268_v1  ;;  %v544_v1 = vld [vmem:[%s5072_s23 + $0x150] sm:$0xff] }
  0xbe   : > { %1337 = vmatprep.subr.bf16.mxu1 %v4272_v4  ;;  %v4311_v2 = vld [vmem:[#allocation7 + $0x210] ss:$8 sps:$4 sm:$0xff]   ;;  %v568_v4 = vpack.c.bf16 %v544_v1, %v538_v63  ;;  %v4376_v63 = vld [vmem:[#allocation8 + $0x274] ss:$8 sps:$4 sm:$0xff]   ;;  %v4379_v1 = vld [vmem:[#allocation8 + $0x164] ss:$8 sps:$4 sm:$0xff]  }
  0xc0   : > { %1265 = vmatpush2.bf16.msra.mxu0 %v4271_v3  ;;  %v4316_v3 = vld [vmem:[#allocation8 + $0x14] ss:$8 sps:$4 sm:$0xff]  }
  0xc1   : > { %1380 = vmatprep.subr.bf16.mxu0 %v4277_v8  ;;  %1338 = vmatpush2.bf16.msra.mxu1 %v4274_v6  ;;  %v547_v6 = vld [vmem:[%s5072_s23 + $0x168] sm:$0xff]  ;;  %v546_v8 = vld [vmem:[%s5072_s23 + $0x160] sm:$0xff] }
  0xc2   : > { %2041 = vmatprep.subr.bf16.mxu1 %v4280_v12  ;;  %v571_v10 = vpack.c.bf16 %v547_v6, %v541_v5  ;;  %v4314_v12 = vld [vmem:[#allocation8 + $0x10] ss:$8 sps:$4 sm:$0xff]   ;;  %v4377_v5 = vld [vmem:[#allocation8 + $0x160] ss:$8 sps:$4 sm:$0xff]  }
  0xc3   : > { %1267 = vmatmul.mubr.bf16.vlgmr.msra.gmra.mxu0 %v550_v11  ;;  %v570_v11 = vpack.c.bf16 %v546_v8, %v540_v7  ;;  %v518_v6 = vld [vmem:[%s5072_s23 + $0x80] sm:$0xff]  ;;  %v524_v7 = vld [vmem:[%s5072_s23 + $0xb0] sm:$0xff] }
  0xc4   : > { %1381 = vmatpush1.bf16.msra.mxu0 %v4275_v13  ;;  %1340 = vmatmul.mubr.bf16.vlgmr.msra.gmra.mxu1 %v552_v14  ;;  %v4322_v13 = vld [vmem:[#allocation8 + $0x4] ss:$8 sps:$4 sm:$0xff]   ;;  %v4317_v14 = vld [vmem:[#allocation7 + $0x200] ss:$8 sps:$4 sm:$0xff]   ;;  %v4385_v8 = vld [vmem:[#allocation8 + $0x154] ss:$8 sps:$4 sm:$0xff]  }
  0xc5   : > { %1382 = vmatprep.subr.bf16.mxu0 %v4283_v15  ;;  %2042 = vmatpush1.bf16.msra.mxu1 %v4278_v16  ;;  %v4325_v15 = vld [vmem:[#allocation7 + $0x2f4] ss:$8 sps:$4 sm:$0xff]   ;;  %v4320_v16 = vld [vmem:[#allocation8] ss:$8 sps:$4 sm:$0xff]  }
  0xc6   : > { %2043 = vmatprep.subr.bf16.mxu1 %v4286_v18  ;;  %1276 = vmatprep.mubr.bf16.mxu0 %v557_v24  ;;  %v4323_v18 = vld [vmem:[#allocation7 + $0x2f0] ss:$8 sps:$4 sm:$0xff]   ;;  %v4329_v24 = vld [vmem:[#allocation7 + $0x2e0] ss:$8 sps:$4 sm:$0xff]  }
  0xc7   : > { %1349 = vmatprep.mubr.bf16.mxu1 %v559_v34  ;;  %v4338_v34 = vld [vmem:[#allocation8 + $0xd0] ss:$8 sps:$4 sm:$0xff]  }
  0xc8   : > { %1383 = vmatpush1.bf16.msra.mxu0 %v4281_v17  ;;  %v4328_v17 = vld [vmem:[#allocation8 + $0xf4] ss:$8 sps:$4 sm:$0xff]  }
  0xc9   : > { %1384 = vmatprep.subr.bf16.mxu0 %v4289_v20  ;;  %2044 = vmatpush1.bf16.msra.mxu1 %v4284_v19  ;;  %v4331_v19 = vld [vmem:[#allocation7 + $0x2e4] ss:$8 sps:$4 sm:$0xff]  }
  0xca   : > { %2045 = vmatprep.subr.bf16.mxu1 %v4292_v27  ;;  %v507_v20 = vld [vmem:[%s5072_s23 + $0x28] sm:$0xff]  ;;  %v581_v27 = vld [vmem:[%s5079_s19 + $0x38] sm:$0xff] }
  0xcb   : > { %1277 = vmatmul.mubr.bf16.gmra.mxu0 %v556_v28  ;;  %v555_v23 = vpack.c.bf16 %v513_v21, %v507_v20  ;;  %v4337_v28 = vld [vmem:[#allocation7 + $0x2d4] ss:$8 sps:$4 sm:$0xff]   ;;  %v4386_v20 = vld [vmem:[#allocation8 + $0x250] ss:$8 sps:$4 sm:$0xff]   ;;  %v4391_v21 = vld [vmem:[#allocation8 + $0x144] ss:$8 sps:$4 sm:$0xff]  }
  0xcc   : > { %1385 = vmatpush1.bf16.msra.mxu0 %v4287_v26  ;;  %1350 = vmatmul.mubr.bf16.gmra.mxu1 %v558_v35  ;;  %v575_v26 = vld [vmem:[%s5079_s19 + $0x8] sm:$0xff] }
  0xcd   : > { %1386 = vmatprep.subr.bf16.mxu0 %v4295_v33  ;;  %2046 = vmatpush1.bf16.msra.mxu1 %v4290_v36  ;;  %v623_v29 = vpack.c.bf16 %v581_v27, %v575_v26  ;;  %v4343_v33 = vld [vmem:[#allocation7 + $0x2c4] ss:$8 sps:$4 sm:$0xff]   ;;  %v4341_v36 = vld [vmem:[#allocation7 + $0x2c0] ss:$8 sps:$4 sm:$0xff]  }
  0xce   : > { %2047 = vmatprep.subr.bf16.mxu1 %v4298_v38  ;;  %1286 = vmatprep.mubr.bf16.mxu0 %v563_v44  ;;  %v4346_v35 = vld [vmem:[#allocation8 + $0xc4] ss:$8 sps:$4 sm:$0xff]   ;;  %v4344_v38 = vld [vmem:[#allocation8 + $0xc0] ss:$8 sps:$4 sm:$0xff]  }
  0xcf   : > { %1359 = vmatprep.mubr.bf16.mxu1 %v565_v54  ;;  %v4353_v44 = vld [vmem:[#allocation7 + $0x2a0] ss:$8 sps:$4 sm:$0xff]   ;;  %v512_v54 = vld [vmem:[%s5072_s23 + $0x50] sm:$0xff] }
  0xd0   : > { %1387 = vmatpush1.bf16.msra.mxu0 %v4293_v37  ;;  %v4349_v37 = vld [vmem:[#allocation7 + $0x2b4] ss:$8 sps:$4 sm:$0xff]   ;;  %v530_v26 = vld [vmem:[%s5072_s23 + $0xe0] sm:$0xff]  ;;  %v599_v27 = vld [vmem:[%s5079_s19 + $0xc8] sm:$0xff] }
  0xd1   : > { %1388 = vmatprep.subr.bf16.mxu0 %v4301_v40  ;;  %2048 = vmatpush1.bf16.msra.mxu1 %v4296_v39  ;;  %v4352_v39 = vld [vmem:[#allocation8 + $0xb4] ss:$8 sps:$4 sm:$0xff]   ;;  %v4347_v40 = vld [vmem:[#allocation7 + $0x2b0] ss:$8 sps:$4 sm:$0xff]  }
  0xd2   : > { %2049 = vmatprep.subr.bf16.mxu1 %v4304_v47  ;;  %v4359_v47 = vld [vmem:[#allocation7 + $0x290] ss:$8 sps:$4 sm:$0xff]  }
  0xd3   : > { %1287 = vmatmul.mubr.bf16.gmra.mxu0 %v562_v48  ;;  %v4364_v48 = vld [vmem:[#allocation8 + $0x94] ss:$8 sps:$4 sm:$0xff]  }
  0xd4   : > { %1389 = vmatpush1.bf16.msra.mxu0 %v4299_v46  ;;  %1360 = vmatmul.mubr.bf16.gmra.mxu1 %v564_v55  ;;  %v4356_v46 = vld [vmem:[#allocation8 + $0xa0] ss:$8 sps:$4 sm:$0xff]   ;;  %v4373_v55 = vld [vmem:[#allocation8 + $0x174] ss:$8 sps:$4 sm:$0xff]  }
  0xd5   : > { %1390 = vmatprep.subr.bf16.mxu0 %v4307_v53  ;;  %2050 = vmatpush1.bf16.msra.mxu1 %v4302_v56  ;;  %v506_v53 = vld [vmem:[%s5072_s23 + $0x20] sm:$0xff] }
  0xd6   : > { %2051 = vmatprep.subr.bf16.mxu1 %v4310_v58  ;;  %1296 = vmatprep.mubr.bf16.mxu0 %v569_v0  ;;  %v4368_v56 = vld [vmem:[#allocation8 + $0x80] ss:$8 sps:$4 sm:$0xff]   ;;  %v554_v61 = vpack.c.bf16 %v512_v54, %v506_v53  ;;  %v4374_v0 = vld [vmem:[#allocation8 + $0x270] ss:$8 sps:$4 sm:$0xff]  }
  0xd7   : > { %1369 = vmatprep.mubr.bf16.mxu1 %v571_v10  ;;  %v519_v58 = vld [vmem:[%s5072_s23 + $0x88] sm:$0xff]  ;;  %v610_v53 = vld [vmem:[%s5079_s19 + $0x120] sm:$0xff]  ;;  %v616_v54 = vld [vmem:[%s5079_s19 + $0x150] sm:$0xff] }
  0xd8   : > { %1391 = vmatpush1.bf16.msra.mxu0 %v4305_v57  ;;  %v574_v57 = vld [vmem:[%s5079_s19] sm:$0xff] }
  0xd9   : > { %1392 = vmatprep.subr.bf16.mxu0 %v4313_v60  ;;  %2052 = vmatpush1.bf16.msra.mxu1 %v4308_v59  ;;  %v525_v59 = vld [vmem:[%s5072_s23 + $0xb8] sm:$0xff]  ;;  %v580_v60 = vld [vmem:[%s5079_s19 + $0x30] sm:$0xff]  ;;  %v4380_v10 = vld [vmem:[#allocation8 + $0x260] ss:$8 sps:$4 sm:$0xff]  }
  0xda   : > { %2053 = vmatprep.subr.bf16.mxu1 %v4316_v3  ;;  %v622_v3 = vpack.c.bf16 %v580_v60, %v574_v57  ;;  %v4407_v60 = vld [vmem:[#allocation8 + $0x110] ss:$8 sps:$4 sm:$0xff]  }
  0xdb   : > { %1297 = vmatmul.mubr.bf16.gmra.mxu0 %v568_v4  ;;  %v4382_v4 = vld [vmem:[#allocation8 + $0x264] ss:$8 sps:$4 sm:$0xff]  }
  0xdc   : > { %1393 = vmatpush1.bf16.msra.mxu0 %v4311_v2  ;;  %1370 = vmatmul.mubr.bf16.gmra.mxu1 %v570_v11  ;;  %v561_v2 = vpack.c.bf16 %v525_v59, %v519_v58  ;;  %v531_v11 = vld [vmem:[%s5072_s23 + $0xe8] sm:$0xff]  ;;  %v4412_v58 = vld [vmem:[#allocation8 + $0x214] ss:$8 sps:$4 sm:$0xff]  }
  0xdd   : > { %1394 = vmatprep.subr.bf16.mxu0 %v4319_v9  ;;  %2054 = vmatpush1.bf16.msra.mxu1 %v4314_v12  ;;  %v587_v9 = vld [vmem:[%s5079_s19 + $0x68] sm:$0xff]  ;;  %v537_v12 = vld [vmem:[%s5072_s23 + $0x118] sm:$0xff] }
  0xde   : > { %2055 = vmatprep.subr.bf16.mxu1 %v4322_v13  ;;  %1412 = vmatprep.mubr.bf16.mxu0 %v555_v23  ;;  %v593_v13 = vld [vmem:[%s5079_s19 + $0x98] sm:$0xff]  ;;  %v4394_v23 = vld [vmem:[#allocation8 + $0x244] ss:$8 sps:$4 sm:$0xff]  }
  0xdf   : > { %2073 = vmatprep.mubr.bf16.mxu1 %v623_v29  ;;  %v536_v29 = vld [vmem:[%s5072_s23 + $0x110] sm:$0xff]  ;;  %v579_v59 = vld [vmem:[%s5079_s19 + $0x28] sm:$0xff] }
  0xe0   : > { %1395 = vmatpush1.bf16.msra.mxu0 %v4317_v14  ;;  %v629_v14 = vpack.c.bf16 %v593_v13, %v587_v9  ;;  %v4427_v9 = vld [vmem:[#allocation8 + $0x1e4] ss:$8 sps:$4 sm:$0xff]   ;;  %v4433_v13 = vld [vmem:[#allocation8 + $0x1d4] ss:$8 sps:$4 sm:$0xff]  }
  0xe1   : > { %1396 = vmatprep.subr.bf16.mxu0 %v4325_v15  ;;  %2056 = vmatpush1.bf16.msra.mxu1 %v4320_v16  ;;  %v586_v15 = vld [vmem:[%s5079_s19 + $0x60] sm:$0xff]  ;;  %v592_v16 = vld [vmem:[%s5079_s19 + $0x90] sm:$0xff] }
  0xe2   : > { %2057 = vmatprep.subr.bf16.mxu1 %v4328_v17  ;;  %v560_v17 = vpack.c.bf16 %v524_v7, %v518_v6  ;;  %v4416_v6 = vld [vmem:[#allocation8 + $0x200] ss:$8 sps:$4 sm:$0xff]   ;;  %v4424_v7 = vld [vmem:[#allocation8 + $0x2f4] ss:$8 sps:$4 sm:$0xff]  }
  0xe4   : > { %1397 = vmatpush2.bf16.msra.mxu0 %v4323_v18  ;;  %v4383_v18 = vld [vmem:[#allocation8 + $0x150] ss:$8 sps:$4 sm:$0xff]  }
  0xe5   : > { %1398 = vmatprep.subr.bf16.mxu0 %v4331_v19  ;;  %2058 = vmatpush2.bf16.msra.mxu1 %v4326_v22  ;;  %v4388_v19 = vld [vmem:[#allocation8 + $0x254] ss:$8 sps:$4 sm:$0xff]   ;;  %v567_v22 = vpack.c.bf16 %v537_v12, %v531_v11  ;;  %v4430_v11 = vld [vmem:[#allocation8 + $0x2e4] ss:$8 sps:$4 sm:$0xff]   ;;  %v4425_v12 = vld [vmem:[#allocation8 + $0x1e0] ss:$8 sps:$4 sm:$0xff]  }
  0xe6   : > { %2059 = vmatprep.subr.bf16.mxu1 %v4334_v25  ;;  %v4389_v25 = vld [vmem:[#allocation8 + $0x140] ss:$8 sps:$4 sm:$0xff]  }
  0xe8   : > { %1399 = vmatpush2.bf16.msra.mxu0 %v4329_v24  ;;  %v628_v24 = vpack.c.bf16 %v592_v16, %v586_v15  ;;  %v4436_v15 = vld [vmem:[#allocation8 + $0x2d4] ss:$8 sps:$4 sm:$0xff]   ;;  %v4431_v16 = vld [vmem:[#allocation8 + $0x1d0] ss:$8 sps:$4 sm:$0xff]  }
  0xe9   : > { %1400 = vmatprep.subr.bf16.mxu0 %v4337_v28  ;;  %2060 = vmatpush2.bf16.msra.mxu1 %v4332_v30  ;;  %v605_v28 = vld [vmem:[%s5079_s19 + $0xf8] sm:$0xff] }
  0xea   : > { %2061 = vmatprep.subr.bf16.mxu1 %v4340_v31  ;;  %v4397_v30 = vld [vmem:[#allocation8 + $0x134] ss:$8 sps:$4 sm:$0xff]   ;;  %v635_v31 = vpack.c.bf16 %v605_v28, %v599_v27  ;;  %v4449_v27 = vld [vmem:[#allocation8 + $0x1a0] ss:$8 sps:$4 sm:$0xff]   ;;  %v4454_v28 = vld [vmem:[#allocation8 + $0x2a4] ss:$8 sps:$4 sm:$0xff]  }
  0xec   : > { %1401 = vmatpush2.bf16.msra.mxu0 %v4335_v32  ;;  %v4392_v32 = vld [vmem:[#allocation8 + $0x240] ss:$8 sps:$4 sm:$0xff]  }
  0xed   : > { %1402 = vmatprep.subr.bf16.mxu0 %v4343_v33  ;;  %2062 = vmatpush2.bf16.msra.mxu1 %v4338_v34  ;;  %v543_v33 = vld [vmem:[%s5072_s23 + $0x148] sm:$0xff]  ;;  %v549_v34 = vld [vmem:[%s5072_s23 + $0x178] sm:$0xff] }
  0xee   : > { %2063 = vmatprep.subr.bf16.mxu1 %v4346_v35  ;;  %v598_v35 = vld [vmem:[%s5079_s19 + $0xc0] sm:$0xff] }
  0xf0   : > { %1403 = vmatpush2.bf16.msra.mxu0 %v4341_v36  ;;  %v604_v36 = vld [vmem:[%s5079_s19 + $0xf0] sm:$0xff] }
  0xf1   : > { %1404 = vmatprep.subr.bf16.mxu0 %v4349_v37  ;;  %2064 = vmatpush2.bf16.msra.mxu1 %v4344_v38  ;;  %v566_v37 = vpack.c.bf16 %v536_v29, %v530_v26  ;;  %v4400_v38 = vld [vmem:[#allocation8 + $0x234] ss:$8 sps:$4 sm:$0xff]   ;;  %v4451_v26 = vld [vmem:[#allocation8 + $0x1a4] ss:$8 sps:$4 sm:$0xff]  }
  0xf2   : > { %2065 = vmatprep.subr.bf16.mxu1 %v4352_v39  ;;  %v4395_v39 = vld [vmem:[#allocation8 + $0x130] ss:$8 sps:$4 sm:$0xff]   ;;  %v4457_v29 = vld [vmem:[#allocation8 + $0x194] ss:$8 sps:$4 sm:$0xff]  }
  0xf4   : > { %1405 = vmatpush2.bf16.msra.mxu0 %v4347_v40  ;;  %v4398_v40 = vld [vmem:[#allocation8 + $0x230] ss:$8 sps:$4 sm:$0xff]  }
  0xf5   : > { %1406 = vmatprep.subr.bf16.mxu0 %v4355_v41  ;;  %2066 = vmatpush2.bf16.msra.mxu1 %v4350_v42  ;;  %v573_v41 = vpack.c.bf16 %v549_v34, %v543_v33  ;;  %v4403_v42 = vld [vmem:[#allocation8 + $0x124] ss:$8 sps:$4 sm:$0xff]   ;;  %v4458_v34 = vld [vmem:[#allocation8 + $0x290] ss:$8 sps:$4 sm:$0xff]  }
  0xf6   : > { %2067 = vmatprep.subr.bf16.mxu1 %v4358_v43  ;;  %v634_v43 = vpack.c.bf16 %v604_v36, %v598_v35  ;;  %v4463_v33 = vld [vmem:[#allocation8 + $0x184] ss:$8 sps:$4 sm:$0xff]   ;;  %v4461_v36 = vld [vmem:[#allocation8 + $0x180] ss:$8 sps:$4 sm:$0xff]  }
  0xf7   : > { %v4466_v35 = vld [vmem:[#allocation8 + $0x284] ss:$8 sps:$4 sm:$0xff]  }
  0xf8   : > { %1407 = vmatpush2.bf16.msra.mxu0 %v4353_v44  ;;  %v611_v44 = vld [vmem:[%s5079_s19 + $0x128] sm:$0xff] }
  0xf9   : > { %1408 = vmatprep.subr.bf16.mxu0 %v4361_v45  ;;  %2068 = vmatpush2.bf16.msra.mxu1 %v4356_v46  ;;  %v617_v45 = vld [vmem:[%s5079_s19 + $0x158] sm:$0xff]  ;;  %v4401_v46 = vld [vmem:[#allocation8 + $0x120] ss:$8 sps:$4 sm:$0xff]  }
  0xfa   : > { %2069 = vmatprep.subr.bf16.mxu1 %v4364_v48  ;;  %v4406_v48 = vld [vmem:[#allocation8 + $0x224] ss:$8 sps:$4 sm:$0xff]  }
  0xfc   : > { %1409 = vmatpush2.bf16.msra.mxu0 %v4359_v47  ;;  %v641_v47 = vpack.c.bf16 %v617_v45, %v611_v44  ;;  %v584_v44 = vld [vmem:[%s5079_s19 + $0x50] sm:$0xff]  ;;  %v591_v45 = vld [vmem:[%s5079_s19 + $0x88] sm:$0xff] }
  0xfd   : > { %1410 = vmatprep.subr.bf16.mxu0 %v4367_v50  ;;  %2070 = vmatpush2.bf16.msra.mxu1 %v4362_v49  ;;  %v542_v49 = vld [vmem:[%s5072_s23 + $0x140] sm:$0xff] }
  0xfe   : > { %2071 = vmatprep.subr.bf16.mxu1 %v4370_v51  ;;  %v4404_v50 = vld [vmem:[#allocation8 + $0x220] ss:$8 sps:$4 sm:$0xff]   ;;  %v548_v51 = vld [vmem:[%s5072_s23 + $0x170] sm:$0xff]  ;;  %s4739_s23 = sshll.u32 %s4822_s25, 4  ;;  %s4740_s23 = int_to_ptr.vmem [resolvable:$false] %s4739_s23 }
  0xff   : > { %v572_v57 = vpack.c.bf16 %v548_v51, %v542_v49  ;;  %v4472_v51 = vld [vmem:[%s6031_s6 + $0x64] ss:$8 sps:$4 sm:$0xff]   ;;  %s4741_s0 = scalar_lea.vmem %s4740_s23, 2048  ;;  %p4742_p3 = scmp.lt.s32.totalorder %s5981_s18, %s4740_s23 }
 0x100   : > { %1411 = vmatpush2.bf16.msra.mxu0 %v4365_v52  ;;  %v4409_v52 = vld [vmem:[#allocation8 + $0x114] ss:$8 sps:$4 sm:$0xff]   ;;  %p4743_p1 = scmp.lt.s32.totalorder %s4741_s0, %s4735_s4 }
 0x101   : > { %2114 = vmatprep.subr.bf16.mxu0 %v4373_v55  ;;  %2072 = vmatpush2.bf16.msra.mxu1 %v4368_v56  ;;  %v577_v55 = vld [vmem:[%s5079_s19 + $0x18] sm:$0xff]  ;;  %v583_v56 = vld [vmem:[%s5079_s19 + $0x48] sm:$0xff] }
 0x102   : > { %2187 = vmatprep.subr.bf16.mxu1 %v4376_v63  ;;  %v4415_v63 = vld [vmem:[#allocation8 + $0x104] ss:$8 sps:$4 sm:$0xff]   ;;  %p4744_p4 = por %p4743_p1, %p4742_p3 }
 0x103   : > { %1413 = vmatmul.mubr.bf16.vlgmr.msra.gmra.mxu0 %v554_v61  ;;  %v625_v61 = vpack.c.bf16 %v583_v56, %v577_v55  ;;  %v4470_v55 = vld [vmem:[%s6031_s6 + $0x60] ss:$8 sps:$4 sm:$0xff]   ;;  %v601_v56 = vld [vmem:[%s5079_s19 + $0xd8] sm:$0xff] }
 0x104   : > { %2115 = vmatpush1.bf16.msra.mxu0 %v4371_v62  ;;  %1422 = vmatprep.mubr.bf16.mxu0 %v561_v2  ;;  %v585_v62 = vld [vmem:[%s5079_s19 + $0x58] sm:$0xff]  ;;  %p4745_p5 = pnand %p4744_p4, %p4738_p12 }
 0x105   : > { %2074 = vmatmul.mubr.bf16.vlgmr.msra.gmra.mxu1 %v622_v3  ;;  %2116 = vmatprep.subr.bf16.mxu0 %v4379_v1  ;;  %v4410_v1 = vld [vmem:[#allocation8 + $0x210] ss:$8 sps:$4 sm:$0xff]   ;;  %v627_v2 = vpack.c.bf16 %v585_v62, %v579_v59  ;;  %v4418_v3 = vld [vmem:[#allocation8 + $0x204] ss:$8 sps:$4 sm:$0xff]   ;;  %v4475_v62 = vld [vmem:[%s6031_s6 + $0x54] ss:$8 sps:$4 sm:$0xff]  }
 0x106   : > { %2188 = vmatpush1.bf16.msra.mxu1 %v4374_v0  ;;  %2083 = vmatprep.mubr.bf16.mxu1 %v629_v14  ;;  %v640_v0 = vpack.c.bf16 %v616_v54, %v610_v53  ;;  %v4428_v14 = vld [vmem:[#allocation8 + $0x2e0] ss:$8 sps:$4 sm:$0xff]   ;;  %v596_v59 = vld [vmem:[%s5079_s19 + $0xb0] sm:$0xff] }
 0x107   : > { %2189 = vmatprep.subr.bf16.mxu1 %v4382_v4  ;;  %v4413_v4 = vld [vmem:[#allocation8 + $0x100] ss:$8 sps:$4 sm:$0xff]  }
 0x108   : > { %2117 = vmatpush1.bf16.msra.mxu0 %v4377_v5  ;;  %v4421_v5 = vld [vmem:[#allocation8 + $0x1f4] ss:$8 sps:$4 sm:$0xff]   ;;  %v594_v53 = vld [vmem:[%s5079_s19 + $0xa0] sm:$0xff] }
 0x109   : > { %2118 = vmatprep.subr.bf16.mxu0 %v4385_v8  ;;  %v4419_v8 = vld [vmem:[#allocation8 + $0x1f0] ss:$8 sps:$4 sm:$0xff]  }
 0x10a   : > { %2190 = vmatpush1.bf16.msra.mxu1 %v4380_v10  ;;  %v4422_v10 = vld [vmem:[#allocation8 + $0x2f0] ss:$8 sps:$4 sm:$0xff]  }
 0x10b   : > { %1423 = vmatmul.mubr.bf16.gmra.mxu0 %v560_v17  ;;  %2191 = vmatprep.subr.bf16.mxu1 %v4388_v19  ;;  %v4439_v17 = vld [vmem:[#allocation8 + $0x1c4] ss:$8 sps:$4 sm:$0xff]  }
 0x10c   : > { %2119 = vmatpush1.bf16.msra.mxu0 %v4383_v18  ;;  %1432 = vmatprep.mubr.bf16.mxu0 %v567_v22  ;;  %v4434_v18 = vld [vmem:[#allocation8 + $0x2d0] ss:$8 sps:$4 sm:$0xff]   ;;  %v4442_v19 = vld [vmem:[#allocation8 + $0x2c4] ss:$8 sps:$4 sm:$0xff]   ;;  %v4440_v22 = vld [vmem:[#allocation8 + $0x2c0] ss:$8 sps:$4 sm:$0xff]  }
 0x10d   : > { %2120 = vmatprep.subr.bf16.mxu0 %v4391_v21  ;;  %2084 = vmatmul.mubr.bf16.gmra.mxu1 %v628_v24  ;;  %v4445_v21 = vld [vmem:[#allocation8 + $0x1b4] ss:$8 sps:$4 sm:$0xff]  }
 0x10e   : > { %2192 = vmatpush1.bf16.msra.mxu1 %v4386_v20  ;;  %2093 = vmatprep.mubr.bf16.mxu1 %v635_v31  ;;  %v4437_v20 = vld [vmem:[#allocation8 + $0x1c0] ss:$8 sps:$4 sm:$0xff]   ;;  %v4448_v24 = vld [vmem:[#allocation8 + $0x2b4] ss:$8 sps:$4 sm:$0xff]  }
 0x10f   : > { %2193 = vmatprep.subr.bf16.mxu1 %v4394_v23  ;;  %v4443_v23 = vld [vmem:[#allocation8 + $0x1b0] ss:$8 sps:$4 sm:$0xff]   ;;  %v4460_v31 = vld [vmem:[#allocation8 + $0x294] ss:$8 sps:$4 sm:$0xff]  }
 0x110   : > { %2121 = vmatpush1.bf16.msra.mxu0 %v4389_v25  ;;  %v4446_v25 = vld [vmem:[#allocation8 + $0x2b0] ss:$8 sps:$4 sm:$0xff]  }
 0x111   : > { %2122 = vmatprep.subr.bf16.mxu0 %v4397_v30  ;;  %v4452_v30 = vld [vmem:[#allocation8 + $0x2a0] ss:$8 sps:$4 sm:$0xff]  }
 0x112   : > { %2194 = vmatpush1.bf16.msra.mxu1 %v4392_v32  ;;  %v4455_v32 = vld [vmem:[#allocation8 + $0x190] ss:$8 sps:$4 sm:$0xff]  }
 0x113   : > { %1433 = vmatmul.mubr.bf16.gmra.mxu0 %v566_v37  ;;  %2195 = vmatprep.subr.bf16.mxu1 %v4400_v38  ;;  %v576_v37 = vld [vmem:[%s5079_s19 + $0x10] sm:$0xff]  ;;  %v582_v38 = vld [vmem:[%s5079_s19 + $0x40] sm:$0xff] }
 0x114   : > { %2123 = vmatpush1.bf16.msra.mxu0 %v4395_v39  ;;  %1442 = vmatprep.mubr.bf16.mxu0 %v573_v41  ;;  %v589_v39 = vld [vmem:[%s5079_s19 + $0x78] sm:$0xff] }
 0x115   : > { %2124 = vmatprep.subr.bf16.mxu0 %v4403_v42  ;;  %2094 = vmatmul.mubr.bf16.gmra.mxu1 %v634_v43  ;;  %v4469_v41 = vld [vmem:[%s6031_s6 + $0x74] ss:$8 sps:$4 sm:$0xff]   ;;  %v4464_v42 = vld [vmem:[#allocation8 + $0x280] ss:$8 sps:$4 sm:$0xff]  }
 0x116   : > { %2196 = vmatpush1.bf16.msra.mxu1 %v4398_v40  ;;  %2103 = vmatprep.mubr.bf16.mxu1 %v641_v47  ;;  %v595_v40 = vld [vmem:[%s5079_s19 + $0xa8] sm:$0xff]  ;;  %v578_v43 = vld [vmem:[%s5079_s19 + $0x20] sm:$0xff]  ;;  %v4467_v47 = vld [vmem:[%s6031_s6 + $0x70] ss:$8 sps:$4 sm:$0xff]  }
 0x117   : > { %2197 = vmatprep.subr.bf16.mxu1 %v4406_v48  ;;  %v624_v48 = vpack.c.bf16 %v582_v38, %v576_v37  ;;  %v631_v49 = vpack.c.bf16 %v595_v40, %v589_v39  ;;  %v4497_v37 = vld [vmem:[%s6031_s6 + $0xd0] ss:$8 sps:$4 sm:$0xff]   ;;  %v4502_v38 = vld [vmem:[%s6031_s6 + $0xc4] ss:$8 sps:$4 sm:$0xff]   ;;  %v4500_v39 = vld [vmem:[%s6031_s6 + $0xc0] ss:$8 sps:$4 sm:$0xff]  }
 0x118   : > { %2125 = vmatpush1.bf16.msra.mxu0 %v4401_v46  ;;  %v597_v46 = vld [vmem:[%s5079_s19 + $0xb8] sm:$0xff] }
 0x119   : > { %2126 = vmatprep.subr.bf16.mxu0 %v4409_v52  ;;  %v588_v52 = vld [vmem:[%s5079_s19 + $0x70] sm:$0xff]  ;;  %v633_v54 = vpack.c.bf16 %v597_v46, %v591_v45  ;;  %v4514_v46 = vld [vmem:[%s6031_s6 + $0x84] ss:$8 sps:$4 sm:$0xff]  }
 0x11a   : > { %2198 = vmatpush1.bf16.msra.mxu1 %v4404_v50  ;;  %v626_v50 = vpack.c.bf16 %v584_v44, %v578_v43  ;;  %v4505_v40 = vld [vmem:[%s6031_s6 + $0xb4] ss:$8 sps:$4 sm:$0xff]   ;;  %v4506_v43 = vld [vmem:[%s6031_s6 + $0xa0] ss:$8 sps:$4 sm:$0xff]   ;;  %v4509_v45 = vld [vmem:[%s6031_s6 + $0x90] ss:$8 sps:$4 sm:$0xff]  }
 0x11b   : > { %1443 = vmatmul.mubr.bf16.gmra.mxu0 %v572_v57  ;;  %2199 = vmatprep.subr.bf16.mxu1 %v4412_v58  ;;  %v607_v57 = vld [vmem:[%s5079_s19 + $0x108] sm:$0xff]  ;;  %v590_v58 = vld [vmem:[%s5079_s19 + $0x80] sm:$0xff]  ;;  %v4511_v44 = vld [vmem:[%s6031_s6 + $0x94] ss:$8 sps:$4 sm:$0xff]  }
 0x11c   : > { %2127 = vmatpush1.bf16.msra.mxu0 %v4407_v60  ;;  %2146 = vmatprep.mubr.bf16.mxu0 %v625_v61  ;;  %v603_v60 = vld [vmem:[%s5079_s19 + $0xe8] sm:$0xff]  ;;  %v609_v61 = vld [vmem:[%s5079_s19 + $0x118] sm:$0xff] }
 0x11d   : > { %2128 = vmatprep.subr.bf16.mxu0 %v4415_v63  ;;  %2104 = vmatmul.mubr.bf16.gmra.mxu1 %v640_v0  ;;  %v4473_v63 = vld [vmem:[%s6031_s6 + $0x50] ss:$8 sps:$4 sm:$0xff]   ;;  %v630_v0 = vpack.c.bf16 %v594_v53, %v588_v52 }
 0x11e   : > { %2200 = vmatpush1.bf16.msra.mxu1 %v4410_v1  ;;  %2219 = vmatprep.mubr.bf16.mxu1 %v627_v2  ;;  %v637_v1 = vpack.c.bf16 %v607_v57, %v601_v56  ;;  %v632_v2 = vpack.c.bf16 %v596_v59, %v590_v58 }
 0x11f   : > { %2201 = vmatprep.subr.bf16.mxu1 %v4418_v3  ;;  %v4478_v3 = vld [vmem:[%s6031_s6 + $0x44] ss:$8 sps:$4 sm:$0xff]  }
 0x120   : > { %2129 = vmatpush1.bf16.msra.mxu0 %v4413_v4  ;;  %v639_v4 = vpack.c.bf16 %v609_v61, %v603_v60 }
 0x121   : > { %2130 = vmatprep.subr.bf16.mxu0 %v4421_v5  ;;  %v600_v5 = vld [vmem:[%s5079_s19 + $0xd0] sm:$0xff] }
 0x122   : > { %2202 = vmatpush1.bf16.msra.mxu1 %v4416_v6  ;;  %v606_v6 = vld [vmem:[%s5079_s19 + $0x100] sm:$0xff] }
 0x123   : > { %2203 = vmatprep.subr.bf16.mxu1 %v4424_v7  ;;  %v4476_v7 = vld [vmem:[%s6031_s6 + $0x40] ss:$8 sps:$4 sm:$0xff]  }
 0x124   : > { %2131 = vmatpush2.bf16.msra.mxu0 %v4419_v8  ;;  %v613_v8 = vld [vmem:[%s5079_s19 + $0x138] sm:$0xff] }
 0x125   : > { %2132 = vmatprep.subr.bf16.mxu0 %v4427_v9  ;;  %v619_v9 = vld [vmem:[%s5079_s19 + $0x168] sm:$0xff] }
 0x126   : > { %2204 = vmatpush2.bf16.msra.mxu1 %v4422_v10  ;;  %v4481_v10 = vld [vmem:[%s6031_s6 + $0x34] ss:$8 sps:$4 sm:$0xff]  }
 0x127   : > { %2205 = vmatprep.subr.bf16.mxu1 %v4430_v11  ;;  %v602_v11 = vld [vmem:[%s5079_s19 + $0xe0] sm:$0xff] }
 0x128   : > { %2133 = vmatpush2.bf16.msra.mxu0 %v4425_v12  ;;  %v608_v12 = vld [vmem:[%s5079_s19 + $0x110] sm:$0xff] }
 0x129   : > { %2134 = vmatprep.subr.bf16.mxu0 %v4433_v13  ;;  %v636_v13 = vpack.c.bf16 %v606_v6, %v600_v5 }
 0x12a   : > { %2206 = vmatpush2.bf16.msra.mxu1 %v4428_v14  ;;  %v615_v14 = vld [vmem:[%s5079_s19 + $0x148] sm:$0xff] }
 0x12b   : > { %2207 = vmatprep.subr.bf16.mxu1 %v4436_v15  ;;  %v621_v15 = vld [vmem:[%s5079_s19 + $0x178] sm:$0xff] }
 0x12c   : > { %2135 = vmatpush2.bf16.msra.mxu0 %v4431_v16  ;;  %v643_v16 = vpack.c.bf16 %v619_v9, %v613_v8  ;;  %v744_v8 = vlaneseq }
 0x12d   : > { %2136 = vmatprep.subr.bf16.mxu0 %v4439_v17  ;;  %v4479_v17 = vld [vmem:[%s6031_s6 + $0x30] ss:$8 sps:$4 sm:$0xff]  }
 0x12e   : > { %2208 = vmatpush2.bf16.msra.mxu1 %v4434_v18  ;;  %v638_v18 = vpack.c.bf16 %v608_v12, %v602_v11  ;;  %v5303_v11 = vshrl.u32 %v744_v8, 7 }
 0x12f   : > { %2209 = vmatprep.subr.bf16.mxu1 %v4442_v19  ;;  %v4484_v19 = vld [vmem:[%s6031_s6 + $0x24] ss:$8 sps:$4 sm:$0xff]  }
 0x130   : > { %2137 = vmatpush2.bf16.msra.mxu0 %v4437_v20  ;;  %v645_v20 = vpack.c.bf16 %v621_v15, %v615_v14  ;;  %v750_v14 = vsub.s32 1, %v5303_v11  ;;  %v742_v15 = vld [vmem:[%s6028_s3] sm:$0x3] }
 0x131   : > { %2138 = vmatprep.subr.bf16.mxu0 %v4445_v21  ;;  %v612_v21 = vld [vmem:[%s5079_s19 + $0x130] sm:$0xff] }
 0x132   : > { %2210 = vmatpush2.bf16.msra.mxu1 %v4440_v22  ;;  %v618_v22 = vld [vmem:[%s5079_s19 + $0x160] sm:$0xff] }
 0x133   : > { %2211 = vmatprep.subr.bf16.mxu1 %v4448_v24  ;;  %v4487_v24 = vld [vmem:[%s6031_s6 + $0x14] ss:$8 sps:$4 sm:$0xff]  }
 0x134   : > { %2139 = vmatpush2.bf16.msra.mxu0 %v4443_v23  ;;  %v4482_v23 = vld [vmem:[%s6031_s6 + $0x20] ss:$8 sps:$4 sm:$0xff]  }
 0x135   : > { %2140 = vmatprep.subr.bf16.mxu0 %v4451_v26  ;;  %v620_v26 = vld [vmem:[%s5079_s19 + $0x170] sm:$0xff] }
 0x136   : > { %2212 = vmatpush2.bf16.msra.mxu1 %v4446_v25  ;;  %v614_v25 = vld [vmem:[%s5079_s19 + $0x140] sm:$0xff] }
 0x137   : > { %2213 = vmatprep.subr.bf16.mxu1 %v4454_v28  ;;  %v4485_v28 = vld [vmem:[%s6031_s6 + $0x10] ss:$8 sps:$4 sm:$0xff]  }
 0x138   : > { %2141 = vmatpush2.bf16.msra.mxu0 %v4449_v27  ;;  %v642_v27 = vpack.c.bf16 %v618_v22, %v612_v21 }
 0x139   : > { %2142 = vmatprep.subr.bf16.mxu0 %v4457_v29  ;;  %v644_v29 = vpack.c.bf16 %v620_v26, %v614_v25 }
 0x13a   : > { %2214 = vmatpush2.bf16.msra.mxu1 %v4452_v30  ;;  %v4490_v30 = vld [vmem:[%s6031_s6 + $0x4] ss:$8 sps:$4 sm:$0xff]  }
 0x13b   : > { %2215 = vmatprep.subr.bf16.mxu1 %v4460_v31  ;;  %v4488_v31 = vld [vmem:[%s6031_s6] ss:$8 sps:$4 sm:$0xff]  }
 0x13c   : > { %2143 = vmatpush2.bf16.msra.mxu0 %v4455_v32  ;;  %v4493_v32 = vld [vmem:[%s6031_s6 + $0xf4] ss:$8 sps:$4 sm:$0xff]  }
 0x13d   : > { %2144 = vmatprep.subr.bf16.mxu0 %v4463_v33  ;;  %v4491_v33 = vld [vmem:[%s6031_s6 + $0xf0] ss:$8 sps:$4 sm:$0xff]  }
 0x13e   : > { %2216 = vmatpush2.bf16.msra.mxu1 %v4458_v34  ;;  %v4496_v34 = vld [vmem:[%s6031_s6 + $0xe4] ss:$8 sps:$4 sm:$0xff]  }
 0x13f   : > { %2217 = vmatprep.subr.bf16.mxu1 %v4466_v35  ;;  %v4494_v35 = vld [vmem:[%s6031_s6 + $0xe0] ss:$8 sps:$4 sm:$0xff]  }
 0x140   : > { %2145 = vmatpush2.bf16.msra.mxu0 %v4461_v36  ;;  %v4499_v36 = vld [vmem:[%s6031_s6 + $0xd4] ss:$8 sps:$4 sm:$0xff]  }
 0x141   : > { %2468 = vmatprep.subr.bf16.mxu0 %v4469_v41  ;;  %v4503_v41 = vld [vmem:[%s6031_s6 + $0xb0] ss:$8 sps:$4 sm:$0xff]  }
 0x142   : > { %2218 = vmatpush2.bf16.msra.mxu1 %v4464_v42  ;;  %v4508_v42 = vld [vmem:[%s6031_s6 + $0xa4] ss:$8 sps:$4 sm:$0xff]  }
 0x143   : > { %2147 = vmatmul.mubr.bf16.vlgmr.msra.gmra.mxu0 %v624_v48 }
 0x144   : > { %2156 = vmatprep.mubr.bf16.mxu0 %v631_v49  ;;  %2469 = vmatpush1.bf16.msra.mxu0 %v4467_v47  ;;  %v4512_v47 = vld [vmem:[%s6031_s6 + $0x80] ss:$8 sps:$4 sm:$0xff]  }
 0x145   : > { %2220 = vmatmul.mubr.bf16.vlgmr.msra.gmra.mxu1 %v626_v50  ;;  %2470 = vmatprep.subr.bf16.mxu0 %v4472_v51 }
 0x146   : > { %2229 = vmatprep.mubr.bf16.mxu1 %v633_v54 }
 0x148   : > { %2471 = vmatpush1.bf16.msra.mxu0 %v4470_v55 }
 0x149   : > { %2472 = vmatprep.subr.bf16.mxu0 %v4475_v62 }
 0x14b   : > { %2157 = vmatmul.mubr.bf16.gmra.mxu0 %v630_v0 }
 0x14c   : > { %2166 = vmatprep.mubr.bf16.mxu0 %v637_v1  ;;  %2473 = vmatpush1.bf16.msra.mxu0 %v4473_v63 }
 0x14d   : > { %2230 = vmatmul.mubr.bf16.gmra.mxu1 %v632_v2  ;;  %2474 = vmatprep.subr.bf16.mxu0 %v4478_v3 }
 0x14e   : > { %2239 = vmatprep.mubr.bf16.mxu1 %v639_v4 }
 0x150   : > { %2475 = vmatpush1.bf16.msra.mxu0 %v4476_v7 }
 0x151   : > { %2476 = vmatprep.subr.bf16.mxu0 %v4481_v10 }
 0x153   : > { %2167 = vmatmul.mubr.bf16.gmra.mxu0 %v636_v13 }
 0x154   : > { %2176 = vmatprep.mubr.bf16.mxu0 %v643_v16  ;;  %2477 = vmatpush1.bf16.msra.mxu0 %v4479_v17  ;;  %v746_v16 = vsub.s32 0, %v5303_v11 }
 0x155   : > { %2240 = vmatmul.mubr.bf16.gmra.mxu1 %v638_v18  ;;  %2478 = vmatprep.subr.bf16.mxu0 %v4484_v19  ;;  %v5320_v19 = vrot.slane %v742_v15, %v750_v14 }
 0x156   : > { %2249 = vmatprep.mubr.bf16.mxu1 %v645_v20  ;;  %v5324_v20 = vrot.slane %v742_v15, %v746_v16 }
 0x158   : > { %2479 = vmatpush1.bf16.msra.mxu0 %v4482_v23 }
 0x159   : > { %2480 = vmatprep.subr.bf16.mxu0 %v4487_v24 }
 0x15b   : > { %2177 = vmatmul.mubr.bf16.gmra.mxu0 %v642_v27 }
 0x15c   : > { %2481 = vmatpush1.bf16.msra.mxu0 %v4485_v28 }
 0x15d   : > { %2250 = vmatmul.mubr.bf16.gmra.mxu1 %v644_v29  ;;  %2482 = vmatprep.subr.bf16.mxu0 %v4490_v30 }
 0x160   : > { %2483 = vmatpush1.bf16.msra.mxu0 %v4488_v31 }
 0x161   : > { %2484 = vmatprep.subr.bf16.mxu0 %v4493_v32 }
 0x164   : > { %2485 = vmatpush2.bf16.msra.mxu0 %v4491_v33 }
 0x165   : > { %2486 = vmatprep.subr.bf16.mxu0 %v4496_v34 }
 0x168   : > { %2487 = vmatpush2.bf16.msra.mxu0 %v4494_v35 }
 0x169   : > { %2488 = vmatprep.subr.bf16.mxu0 %v4499_v36 }
 0x16c   : > { %2489 = vmatpush2.bf16.msra.mxu0 %v4497_v37 }
 0x16d   : > { %2490 = vmatprep.subr.bf16.mxu0 %v4502_v38 }
 0x170   : > { %2491 = vmatpush2.bf16.msra.mxu0 %v4500_v39 }
 0x171   : > { %2492 = vmatprep.subr.bf16.mxu0 %v4505_v40 }
 0x174   : > { %2493 = vmatpush2.bf16.msra.mxu0 %v4503_v41 }
 0x175   : > { %2494 = vmatprep.subr.bf16.mxu0 %v4508_v42 }
 0x178   : > { %2495 = vmatpush2.bf16.msra.mxu0 %v4506_v43 }
 0x179   : > { %2496 = vmatprep.subr.bf16.mxu0 %v4511_v44 }
 0x17c   : > { %2497 = vmatpush2.bf16.msra.mxu0 %v4509_v45 }
 0x17d   : > { %2498 = vmatprep.subr.bf16.mxu0 %v4514_v46 }
 0x180   : > { %2499 = vmatpush2.bf16.msra.mxu0 %v4512_v47 }
 0x183   : > { %v1268_v48 = vpop.f32.mrf.mxu0 }
 0x184   : > { %v1341_v49 = vpop.f32.mrf.mxu1  ;;  %v1269_v27 = vadd.f32 %v1268_v48, %v5324_v20 }
 0x185   : > { %v1270_v50 = vpop.f32.mrf.mxu0 }
 0x186   : > { %v1343_v51 = vpop.f32.mrf.mxu1  ;;  %v1271_v25 = vadd.f32 %v1270_v50, %v5320_v19  ;;  %v1342_v34 = vadd.f32 %v1341_v49, %v1269_v27 }
 0x187   : > { %v1272_v52 = vpop.f32.mrf.mxu0 }
 0x188   : > { %v1345_v53 = vpop.f32.mrf.mxu1  ;;  %v1273_v22 = vadd.f32 %v1272_v52, %v5324_v20  ;;  %v1344_v32 = vadd.f32 %v1343_v51, %v1271_v25 }
 0x189   : > { %v1274_v54 = vpop.f32.mrf.mxu0 }
 0x18a   : > { %v1347_v55 = vpop.f32.mrf.mxu1  ;;  %v1275_v26 = vadd.f32 %v1274_v54, %v5320_v19  ;;  %v1346_v30 = vadd.f32 %v1345_v53, %v1273_v22 }
 0x18b   : > { %v1278_v56 = vpop.f32.mrf.mxu0 }
 0x18c   : > { %v5285_v57 = vpop.f32.mrf.mxu1  ;;  %v1348_v33 = vadd.f32 %v1347_v55, %v1275_v26  ;;  %v1279_v46 = vadd.f32 %v1278_v56, %v5324_v20 }
 0x18d   : > { %v1280_v58 = vpop.f32.mrf.mxu0 }
 0x18e   : > { %v1353_v59 = vpop.f32.mrf.mxu1  ;;  %v1281_v43 = vadd.f32 %v1280_v58, %v5320_v19  ;;  %v1352_v54 = vadd.f32 %v5285_v57, %v1279_v46 }
 0x18f   : > { %v1282_v60 = vpop.f32.mrf.mxu0 }
 0x190   : > { %v1355_v61 = vpop.f32.mrf.mxu1  ;;  %v1283_v40 = vadd.f32 %v1282_v60, %v5324_v20  ;;  %v1354_v52 = vadd.f32 %v1353_v59, %v1281_v43 }
 0x191   : > { %v1284_v62 = vpop.f32.mrf.mxu0 }
 0x192   : > { %v1357_v63 = vpop.f32.mrf.mxu1  ;;  %v1285_v44 = vadd.f32 %v1284_v62, %v5320_v19  ;;  %v1356_v50 = vadd.f32 %v1355_v61, %v1283_v40 }
 0x193   : > { %v5287_v0 = vpop.f32.mrf.mxu0 }
 0x194   : > { %v5289_v1 = vpop.f32.mrf.mxu1  ;;  %v1358_v53 = vadd.f32 %v1357_v63, %v1285_v44  ;;  %v1289_v22 = vadd.f32 %v5287_v0, %v5324_v20 }
 0x195   : > { %v5291_v2 = vpop.f32.mrf.mxu0 }
 0x196   : > { %v5293_v3 = vpop.f32.mrf.mxu1  ;;  %v1291_v59 = vadd.f32 %v5291_v2, %v5320_v19 }
 0x197   : > { %v1292_v4 = vpop.f32.mrf.mxu0 }
 0x198   : > { %v5295_v5 = vpop.f32.mrf.mxu1  ;;  %v1293_v8 = vadd.f32 %v1292_v4, %v5324_v20  ;;  %v1364_v2 = vadd.f32 %v5293_v3, %v1291_v59 }
 0x199   : > { %v1294_v6 = vpop.f32.mrf.mxu0 }
 0x19a   : > { %v5297_v7 = vpop.f32.mrf.mxu1  ;;  %v1295_v63 = vadd.f32 %v1294_v6, %v5320_v19  ;;  %v1366_v4 = vadd.f32 %v5295_v5, %v1293_v8 }
 0x19b   : > { %v5299_v9 = vpop.f32.mrf.mxu0 }
 0x19c   : > { %v5301_v10 = vpop.f32.mrf.mxu1  ;;  %v1368_v6 = vadd.f32 %v5297_v7, %v1295_v63  ;;  %v1299_v40 = vadd.f32 %v5299_v9, %v5324_v20 }
 0x19d   : > { %v5305_v12 = vpop.f32.mrf.mxu0 }
 0x19e   : > { %v5307_v13 = vpop.f32.mrf.mxu1  ;;  %v1301_v3 = vadd.f32 %v5305_v12, %v5320_v19 }
 0x19f   : > { %v5314_v17 = vpop.f32.mrf.mxu0 }
 0x1a0   : > { %v5316_v18 = vpop.f32.mrf.mxu1  ;;  %v1303_v5 = vadd.f32 %v5314_v17, %v5324_v20  ;;  %v1374_v12 = vadd.f32 %v5307_v13, %v1301_v3  ;;  %v1549_v3 = vld [vmem:[%s6030_s5] sm:$0x3] }
 0x1a1   : > { %v5326_v21 = vpop.f32.mrf.mxu0 }
 0x1a2   : > { %v5329_v23 = vpop.f32.mrf.mxu1  ;;  %v1376_v44 = vadd.f32 %v5316_v18, %v1303_v5 }
 0x1c3   : > { %v1414_v24 = vpop.f32.mrf.mxu0 }
 0x1c4   : > { %v5345_v41 = vadd.f32 %v1414_v24, %v1342_v34 }
 0x1c5   : > { %v1416_v28 = vpop.f32.mrf.mxu0  ;;  %v5334_v29 = vpop.f32.mrf.mxu1 }
 0x1c6   : > { %v5340_v38 = vadd.f32 %v1416_v28, %v1344_v32  ;;  %v1362_v28 = vadd.f32 %v5289_v1, %v1289_v22  ;;  %v1305_v1 = vadd.f32 %v5326_v21, %v5320_v19  ;;  %v1372_v21 = vadd.f32 %v5301_v10, %v1299_v40 }
 0x1c7   : > { %v1418_v31 = vpop.f32.mrf.mxu0  ;;  %v5338_v37 = vpop.f32.mrf.mxu1  ;;  %v5464_v40 = vrot.slane %v1549_v3, %v746_v16 }
 0x1c8   : > { %v5336_v35 = vadd.f32 %v1418_v31, %v1346_v30  ;;  %v1378_v19 = vadd.f32 %v5329_v23, %v1305_v1 }
 0x1c9   : > { %v1420_v36 = vpop.f32.mrf.mxu0  ;;  %v5358_v49 = vpop.f32.mrf.mxu1 }
 0x1ca   : > { %v5342_v39 = vadd.f32 %v1420_v36, %v1348_v33  ;;  %v5356_v47 = vpack.c.bf16 %v5336_v35, %v5345_v41 }
 0x1cb   : > { %v1424_v42 = vpop.f32.mrf.mxu0  ;;  %v5365_v58 = vpop.f32.mrf.mxu1 }
 0x1cc   : > { %v5351_v45 = vpack.c.bf16 %v5342_v39, %v5340_v38  ;;  %v5372_v15 = vadd.f32 %v1424_v42, %v1352_v54 }
 0x1cd   : > { %v1426_v48 = vpop.f32.mrf.mxu0  ;;  %v5383_v26 = vpop.f32.mrf.mxu1 }
 0x1ce   : > { %2500 = vmatprep.mubr.bf16.mxu0 %v5351_v45  ;;  %v5367_v60 = vadd.f32 %v1426_v48, %v1354_v52  ;;  %6084 = vst [vmem:[#allocation22_spill] sm:$0xff] %v5372_v15 }
 0x1cf   : > { %v1428_v51 = vpop.f32.mrf.mxu0  ;;  %2501 = vmatmul.mubr.bf16.vlgmr.msra.gmra.mxu0 %v5356_v47  ;;  %v5391_v31 = vpop.f32.mrf.mxu1 }
 0x1d0   : > { %v5363_v55 = vadd.f32 %v1428_v51, %v1356_v50 }
 0x1d1   : > { %v1430_v56 = vpop.f32.mrf.mxu0  ;;  %v5411_v17 = vpop.f32.mrf.mxu1 }
 0x1d2   : > { %v5369_v62 = vadd.f32 %v1430_v56, %v1358_v53  ;;  %v2262_v24 = vpack.c.bf16 %v5363_v55, %v5372_v15 }
 0x1d3   : > { %v1434_v61 = vpop.f32.mrf.mxu0  ;;  %v5419_v20 = vpop.f32.mrf.mxu1 }
 0x1d4   : > { %6083 = vst [vmem:[#allocation21_spill] sm:$0xff] %v5369_v62  ;;  %v2263_v57 = vpack.c.bf16 %v5369_v62, %v5367_v60  ;;  %v5399_v34 = vadd.f32 %v1434_v61, %v1362_v28 }
 0x1d5   : > { %v1436_v25 = vpop.f32.mrf.mxu0  ;;  %v5431_v23 = vpop.f32.mrf.mxu1 }
 0x1d6   : > { %2510 = vmatprep.mubr.bf16.mxu0 %v2263_v57  ;;  %v5393_v32 = vadd.f32 %v1436_v25, %v1364_v2  ;;  %6088 = vst [vmem:[#allocation26_spill] sm:$0xff] %v5399_v34 }
 0x1d7   : > { %v1438_v27 = vpop.f32.mrf.mxu0  ;;  %2511 = vmatmul.mubr.bf16.gmra.mxu0 %v2262_v24  ;;  %v2097_v10 = vpop.f32.mrf.mxu1 }
 0x1d8   : > { %v5389_v30 = vadd.f32 %v1438_v27, %v1366_v4  ;;  %6086 = vst [vmem:[#allocation24_spill] sm:$0xff] %v5393_v32 }
 0x1d9   : > { %v1440_v0 = vpop.f32.mrf.mxu0  ;;  %v2099_v53 = vpop.f32.mrf.mxu1 }
 0x1da   : > { %6085 = vst [vmem:[#allocation23_spill] sm:$0xff] %v5389_v30  ;;  %v5395_v33 = vadd.f32 %v1440_v0, %v1368_v6  ;;  %v2264_v42 = vpack.c.bf16 %v5389_v30, %v5399_v34 }
 0x1db   : > { %v1444_v36 = vpop.f32.mrf.mxu0  ;;  %v2101_v54 = vpop.f32.mrf.mxu1 }
 0x1dc   : > { %6087 = vst [vmem:[#allocation25_spill] sm:$0xff] %v5395_v33  ;;  %v2265_v7 = vpack.c.bf16 %v5395_v33, %v5393_v32  ;;  %v5425_v52 = vadd.f32 %v1444_v36, %v1372_v21 }
 0x1dd   : > { %v1446_v43 = vpop.f32.mrf.mxu0  ;;  %v2105_v56 = vpop.f32.mrf.mxu1 }
 0x1de   : > { %2520 = vmatprep.mubr.bf16.mxu0 %v2265_v7  ;;  %v5421_v50 = vadd.f32 %v1446_v43, %v1374_v12  ;;  %6092 = vst [vmem:[#allocation30_spill] sm:$0xff] %v5425_v52  ;;  %v2106_v21 = vadd.f32 %v2105_v56, %v5464_v40 }
 0x1df   : > { %v1448_v46 = vpop.f32.mrf.mxu0  ;;  %2521 = vmatmul.mubr.bf16.gmra.mxu0 %v2264_v42  ;;  %v2107_v8 = vpop.f32.mrf.mxu1 }
 0x1e0   : > { %v5417_v48 = vadd.f32 %v1448_v46, %v1376_v44  ;;  %6090 = vst [vmem:[#allocation28_spill] sm:$0xff] %v5421_v50  ;;  %v1558_v44 = vrot.slane %v1549_v3, %v750_v14 }
 0x1e1   : > { %v1450_v9 = vpop.f32.mrf.mxu0  ;;  %v2109_v61 = vpop.f32.mrf.mxu1 }
 0x1e2   : > { %6089 = vst [vmem:[#allocation27_spill] sm:$0xff] %v5417_v48  ;;  %v5423_v51 = vadd.f32 %v1450_v9, %v1378_v19  ;;  %v2266_v13 = vpack.c.bf16 %v5417_v48, %v5425_v52  ;;  %v2098_v19 = vadd.f32 %v2097_v10, %v1558_v44  ;;  %v2108_v52 = vadd.f32 %v2107_v8, %v1558_v44 }
 0x1e3   : > { %v2111_v59 = vpop.f32.mrf.mxu1  ;;  %v2110_v48 = vadd.f32 %v2109_v61, %v5464_v40  ;;  %v2088_v10 = vadd.f32 %v5391_v31, %v1558_v44  ;;  %v2092_v56 = vadd.f32 %v5419_v20, %v1558_v44  ;;  %v2100_v8 = vadd.f32 %v2099_v53, %v5464_v40 }
 0x1e4   : > { %6091 = vst [vmem:[#allocation29_spill] sm:$0xff] %v5423_v51  ;;  %v2267_v18 = vpack.c.bf16 %v5423_v51, %v5421_v50  ;;  %v2112_v30 = vadd.f32 %v2111_v59, %v1558_v44 }
 0x1e6   : > { %2530 = vmatprep.mubr.bf16.mxu0 %v2267_v18  ;;  %2884 = vmatprep.subr.bf16.mxu0 %v2267_v18 }
 0x1e7   : > { %2531 = vmatmul.mubr.bf16.gmra.mxu0 %v2266_v13 }
 0x1e8   : > { %2885 = vmatpush1.bf16.msra.mxu0 %v2266_v13  ;;  %v2102_v13 = vadd.f32 %v2101_v54, %v1558_v44  ;;  %v2096_v54 = vadd.f32 %v5431_v23, %v5464_v40 }
 0x1e9   : > { %2886 = vmatprep.subr.bf16.mxu0 %v2265_v7 }
 0x1ec   : > { %2887 = vmatpush1.bf16.msra.mxu0 %v2264_v42 }
 0x1ed   : > { %2888 = vmatprep.subr.bf16.mxu0 %v2263_v57 }
 0x1f0   : > { %2889 = vmatpush1.bf16.msra.mxu0 %v2262_v24 }
 0x1f1   : > { %2890 = vmatprep.subr.bf16.mxu0 %v5351_v45 }
 0x1f4   : > { %2891 = vmatpush1.bf16.msra.mxu0 %v5356_v47 }
 0x203   : > { %v5435_v63 = vpop.f32.mrf.mxu0 }
 0x205   : > { %v5437_v22 = vpop.f32.mrf.mxu0  ;;  %v5439_v25 = vpop.f32.mrf.mxu1 }
 0x207   : > { %v5441_v4 = vpop.f32.mrf.mxu0  ;;  %v5443_v57 = vpop.f32.mrf.mxu1 }
 0x209   : > { %v5445_v24 = vpop.f32.mrf.mxu0  ;;  %v5447_v45 = vpop.f32.mrf.mxu1 }
 0x20b   : > { %v5449_v27 = vpop.f32.mrf.mxu0  ;;  %v5451_v47 = vpop.f32.mrf.mxu1 }
 0x20d   : > { %v2160_v2 = vpop.f32.mrf.mxu0  ;;  %v5453_v6 = vpop.f32.mrf.mxu1 }
 0x20f   : > { %v5455_v28 = vpop.f32.mrf.mxu0  ;;  %v2233_v0 = vpop.f32.mrf.mxu1 }
 0x211   : > { %v2164_v5 = vpop.f32.mrf.mxu0  ;;  %v5457_v36 = vpop.f32.mrf.mxu1 }
 0x213   : > { %v2168_v1 = vpop.f32.mrf.mxu0  ;;  %v2237_v7 = vpop.f32.mrf.mxu1 }
 0x215   : > { %v2170_v42 = vpop.f32.mrf.mxu0  ;;  %v2241_v43 = vpop.f32.mrf.mxu1 }
 0x216   : > { %v2171_v16 = vadd.f32 %v2170_v42, %v2098_v19 }
 0x217   : > { %v2172_v46 = vpop.f32.mrf.mxu0  ;;  %v2243_v12 = vpop.f32.mrf.mxu1 }
 0x218   : > { %v5475_v61 = vadd.f32 %v2243_v12, %v2171_v16  ;;  %v2173_v23 = vadd.f32 %v2172_v46, %v2100_v8  ;;  %v2078_v12 = vadd.f32 %v5338_v37, %v1558_v44 }
 0x219   : > { %v2174_v9 = vpop.f32.mrf.mxu0  ;;  %v2245_v18 = vpop.f32.mrf.mxu1 }
 0x21a   : > { %v2175_v11 = vadd.f32 %v2174_v9, %v2102_v13  ;;  %v2082_v9 = vadd.f32 %v5365_v58, %v1558_v44 }
 0x21b   : > { %v2178_v51 = vpop.f32.mrf.mxu0  ;;  %v2247_v50 = vpop.f32.mrf.mxu1 }
 0x21c   : > { %v2179_v34 = vadd.f32 %v2178_v51, %v2106_v21  ;;  %v5479_v19 = vadd.f32 %v2247_v50, %v2175_v11  ;;  %v2169_v21 = vadd.f32 %v2168_v1, %v2096_v54 }
 0x21d   : > { %v2180_v33 = vpop.f32.mrf.mxu0  ;;  %v2251_v32 = vpop.f32.mrf.mxu1 }
 0x21e   : > { %v2181_v14 = vadd.f32 %v2180_v33, %v2108_v52  ;;  %v5477_v51 = vadd.f32 %v2251_v32, %v2179_v34  ;;  %v2161_v32 = vadd.f32 %v2160_v2, %v2088_v10  ;;  %v2165_v34 = vadd.f32 %v2164_v5, %v2092_v56 }
 0x21f   : > { %v2182_v3 = vpop.f32.mrf.mxu0  ;;  %v2253_v15 = vpop.f32.mrf.mxu1  ;;  %v5493_v50 = vpack.c.bf16 %v5479_v19, %v5475_v61  ;;  %v5504_v1 = vadd.f32 %v2241_v43, %v2169_v21  ;;  %v5506_v2 = vadd.f32 %v2245_v18, %v2173_v23  ;;  %v2155_v18 = vadd.f32 %v5445_v24, %v2082_v9 }
 0x220   : > { %v2183_v62 = vadd.f32 %v2182_v3, %v2110_v48  ;;  %v5481_v33 = vadd.f32 %v2253_v15, %v2181_v14  ;;  %v5509_v5 = vadd.f32 %v2233_v0, %v2161_v32  ;;  %v5511_v46 = vadd.f32 %v2237_v7, %v2165_v34 }
 0x221   : > { %v2184_v42 = vpop.f32.mrf.mxu0  ;;  %v2255_v59 = vpop.f32.mrf.mxu1  ;;  %v5520_v43 = vpack.c.bf16 %v5506_v2, %v5504_v1  ;;  %v2151_v7 = vadd.f32 %v5437_v22, %v2078_v12  ;;  %v5544_v24 = vadd.f32 %v5451_v47, %v2155_v18 }
 0x222   : > { %v2185_v52 = vadd.f32 %v2184_v42, %v2112_v30  ;;  %v5483_v31 = vadd.f32 %v2255_v59, %v2183_v62  ;;  %v2086_v62 = vadd.f32 %v5383_v26, %v5464_v40  ;;  %v2090_v30 = vadd.f32 %v5411_v17, %v5464_v40 }
 0x223   : > { %v2257_v20 = vpop.f32.mrf.mxu1  ;;  %v5524_v0 = vpack.c.bf16 %v5511_v46, %v5509_v5  ;;  %v5541_v22 = vadd.f32 %v5443_v57, %v2151_v7 }
 0x224   : > { %v5485_v48 = vadd.f32 %v2257_v20, %v2185_v52  ;;  %v5489_v53 = vpack.c.bf16 %v5483_v31, %v5477_v51  ;;  %v2159_v26 = vadd.f32 %v5449_v27, %v2086_v62  ;;  %v2163_v17 = vadd.f32 %v5455_v28, %v2090_v30 }
 0x225   : > { %v2076_v27 = vadd.f32 %v5334_v29, %v5464_v40  ;;  %v2080_v28 = vadd.f32 %v5358_v49, %v5464_v40  ;;  %v2269_v13 = vpack.c.bf16 %v5544_v24, %v5541_v22 }
 0x226   : > { %v5497_v15 = vpack.c.bf16 %v5485_v48, %v5481_v33  ;;  %v5529_v37 = vadd.f32 %v5453_v6, %v2159_v26  ;;  %v5532_v58 = vadd.f32 %v5457_v36, %v2163_v17 }
 0x227   : > { %v2149_v36 = vadd.f32 %v5435_v63, %v2076_v27  ;;  %v2153_v44 = vadd.f32 %v5441_v4, %v2080_v28 }
 0x228   : > { %2557 = vmatprep.subr.bf16.mxu1 %v5497_v15  ;;  %v2270_v6 = vpack.c.bf16 %v5532_v58, %v5529_v37 }
 0x229   : > { %2558 = vmatpush1.bf16.xpose.msra.mxu1 %v5489_v53  ;;  %v5553_v29 = vadd.f32 %v5439_v25, %v2149_v36  ;;  %v5556_v49 = vadd.f32 %v5447_v45, %v2153_v44 }
 0x22a   : > { %2559 = vmatprep.subr.bf16.mxu1 %v5493_v50 }
 0x22b   : > { %v2268_v57 = vpack.c.bf16 %v5556_v49, %v5553_v29 }
 0x231   : > { %2560 = vmatpush1.bf16.xpose.msra.mxu1 %v5520_v43 }
 0x232   : > { %2561 = vmatprep.subr.bf16.mxu1 %v5524_v0 }
 0x239   : > { %2562 = vmatpush1.bf16.xpose.msra.mxu1 %v2270_v6 }
 0x23a   : > { %2563 = vmatprep.subr.bf16.mxu1 %v2269_v13 }
 0x241   : > { %2564 = vmatpush1.bf16.xpose.msra.mxu1 %v2268_v57 }
 0x28f   : > { %v2502_v47 = vpop.f32.mrf.mxu0 }
 0x291   : > { %v2504_v40 = vpop.f32.mrf.mxu0 }
 0x293   : > { %v2506_v63 = vpop.f32.mrf.mxu0 }
 0x294   : > { %v2541_v11 = vpack.c.bf16 %v2506_v63, %v2502_v47 }
 0x295   : > { %v2508_v16 = vpop.f32.mrf.mxu0 }
 0x296   : > { %v2542_v4 = vpack.c.bf16 %v2508_v16, %v2504_v40 }
 0x297   : > { %v2512_v14 = vpop.f32.mrf.mxu0 }
 0x298   : > { %2581 = vmatprep.mubr.bf16.mxu1 %v2542_v4 }
 0x299   : > { %v2514_v3 = vpop.f32.mrf.mxu0  ;;  %2582 = vmatmul.mubr.bf16.vlgmr.msra.gmra.mxu1 %v2541_v11 }
 0x29b   : > { %v2516_v10 = vpop.f32.mrf.mxu0 }
 0x29c   : > { %v2543_v54 = vpack.c.bf16 %v2516_v10, %v2512_v14 }
 0x29d   : > { %v2518_v25 = vpop.f32.mrf.mxu0 }
 0x29e   : > { %v2544_v56 = vpack.c.bf16 %v2518_v25, %v2514_v3 }
 0x29f   : > { %v2522_v45 = vpop.f32.mrf.mxu0 }
 0x2a0   : > { %2589 = vmatprep.mubr.bf16.mxu1 %v2544_v56 }
 0x2a1   : > { %v2524_v8 = vpop.f32.mrf.mxu0  ;;  %2590 = vmatmul.mubr.bf16.gmra.mxu1 %v2543_v54 }
 0x2a3   : > { %v2526_v42 = vpop.f32.mrf.mxu0 }
 0x2a4   : > { %v2545_v20 = vpack.c.bf16 %v2526_v42, %v2522_v45 }
 0x2a5   : > { %v2528_v59 = vpop.f32.mrf.mxu0 }
 0x2a6   : > { %v2546_v52 = vpack.c.bf16 %v2528_v59, %v2524_v8 }
 0x2a7   : > { %v2532_v21 = vpop.f32.mrf.mxu0 }
 0x2a8   : > { %2597 = vmatprep.mubr.bf16.mxu1 %v2546_v52 }
 0x2a9   : > { %v2534_v23 = vpop.f32.mrf.mxu0  ;;  %2598 = vmatmul.mubr.bf16.gmra.mxu1 %v2545_v20 }
 0x2ab   : > { %v2536_v32 = vpop.f32.mrf.mxu0 }
 0x2ac   : > { %v2547_v30 = vpack.c.bf16 %v2536_v32, %v2532_v21 }
 0x2ad   : > { %v2538_v34 = vpop.f32.mrf.mxu0 }
 0x2ae   : > { %v2548_v62 = vpack.c.bf16 %v2538_v34, %v2534_v23 }
 0x2b0   : > { %2605 = vmatprep.mubr.bf16.mxu1 %v2548_v62  ;;  %2622 = vmatprep.subr.bf16.mxu1 %v2548_v62 }
 0x2b1   : > { %2606 = vmatmul.mubr.bf16.gmra.mxu1 %v2547_v30 }
 0x2b2   : > { %2623 = vmatpush1.bf16.xpose.msra.mxu1 %v2547_v30  ;;  %2646 = vmatprep.mubr.bf16.mxu1 %v2269_v13 }
 0x2b3   : > { %2624 = vmatprep.subr.bf16.mxu1 %v2546_v52 }
 0x2ba   : > { %2625 = vmatpush1.bf16.xpose.msra.mxu1 %v2545_v20 }
 0x2bb   : > { %2626 = vmatprep.subr.bf16.mxu1 %v2544_v56 }
 0x2c2   : > { %2627 = vmatpush1.bf16.xpose.msra.mxu1 %v2543_v54 }
 0x2c3   : > { %2628 = vmatprep.subr.bf16.mxu1 %v2542_v4 }
 0x2ca   : > { %2629 = vmatpush1.bf16.xpose.msra.mxu1 %v2541_v11 }
 0x2cb   : > { %2969 = vmatprep.subr.bf16.mxu1 %v5497_v15 }
 0x2d1   : > { %2647 = vmatmul.mubr.bf16.vlgmr.msra.gmra.mxu1 %v2268_v57 }
 0x2d2   : > { %2654 = vmatprep.mubr.bf16.mxu1 %v5524_v0  ;;  %2970 = vmatpush1.bf16.msra.mxu1 %v5489_v53 }
 0x2d3   : > { %2971 = vmatprep.subr.bf16.mxu1 %v5493_v50 }
 0x2d6   : > { %2972 = vmatpush1.bf16.msra.mxu1 %v5520_v43 }
 0x2d7   : > { %2973 = vmatprep.subr.bf16.mxu1 %v5524_v0 }
 0x2d9   : > { %2655 = vmatmul.mubr.bf16.gmra.mxu1 %v2270_v6 }
 0x2da   : > { %2662 = vmatprep.mubr.bf16.mxu1 %v5493_v50  ;;  %2974 = vmatpush1.bf16.msra.mxu1 %v2270_v6 }
 0x2db   : > { %2975 = vmatprep.subr.bf16.mxu1 %v2269_v13 }
 0x2de   : > { %2976 = vmatpush1.bf16.msra.mxu1 %v2268_v57 }
 0x2e1   : > { %2663 = vmatmul.mubr.bf16.gmra.mxu1 %v5520_v43 }
 0x2e2   : > { %2670 = vmatprep.mubr.bf16.mxu1 %v5497_v15 }
 0x2e9   : > { %2671 = vmatmul.mubr.bf16.gmra.mxu1 %v5489_v53 }
 0x359   : > { %v5570_v12 = vpop.f32.mrf.mxu1 }
 0x35a   : > { %v2772_v9 = vsel %vm2679_vm0, %v5570_v12, -inf }
 0x35b   : > { %2773 = vmax.xlane.f32.xlu1 %v2772_v9  ;;  %v2585_v26 = vpop.f32.mrf.mxu1 }
 0x35d   : > { %v5574_v17 = vpop.f32.mrf.mxu1 }
 0x35e   : > { %v2775_v50 = vsel %vm2679_vm0, %v5574_v17, -inf }
 0x35f   : > { %2776 = vmax.xlane.f32.xlu1 %v2775_v50  ;;  %v2588_v0 = vpop.f32.mrf.mxu1 }
 0x361   : > { %v5578_v43 = vpop.f32.mrf.mxu1 }
 0x362   : > { %v2778_v10 = vsel %vm2679_vm0, %v5578_v43, -inf }
 0x363   : > { %v2593_v15 = vpop.f32.mrf.mxu1 }
 0x365   : > { %v5580_v7 = vpop.f32.mrf.mxu1 }
 0x366   : > { %v2781_v53 = vsel %vm2679_vm0, %v5580_v7, -inf }
 0x367   : > { %2782 = vmax.xlane.f32.xlu1 %v2781_v53  ;;  %v2596_v18 = vpop.f32.mrf.mxu1 }
 0x369   : > { %v5584_v27 = vpop.f32.mrf.mxu1 }
 0x36a   : > { %v2784_v59 = vsel %vm2679_vm0, %v5584_v27, -inf }
 0x36b   : > { %v2601_v28 = vpop.f32.mrf.mxu1 }
 0x36d   : > { %v5586_v6 = vpop.f32.mrf.mxu1 }
 0x36e   : > { %v2787_v52 = vsel %vm2679_vm0, %v5586_v6, -inf }
 0x36f   : > { %v2604_v36 = vpop.f32.mrf.mxu1 }
 0x371   : > { %v5588_v44 = vpop.f32.mrf.mxu1 }
 0x372   : > { %v2790_v50 = vsel %vm2679_vm0, %v5588_v44, -inf }
 0x373   : > { %v2609_v13 = vpop.f32.mrf.mxu1 }
 0x375   : > { %v5590_v57 = vpop.f32.mrf.mxu1 }
 0x376   : > { %v2793_v53 = vsel %vm2679_vm0, %v5590_v57, -inf }
 0x377   : > { %v2612_v47 = vpop.f32.mrf.mxu1 }
 0x391   : > { %v5592_v40 = vpop.f32.mrf.mxu1 }
 0x392   : > { %v2680_v63 = vsel %vm2679_vm0, %v5592_v40, -inf }
 0x393   : > { %2681 = vmax.xlane.f32.xlu0 %v2680_v63  ;;  %v2650_v16 = vpop.f32.mrf.mxu1 }
 0x395   : > { %v5596_v4 = vpop.f32.mrf.mxu1 }
 0x396   : > { %v2683_v11 = vsel %vm2679_vm0, %v5596_v4, -inf }
 0x397   : > { %2684 = vmax.xlane.f32.xlu0 %v2683_v11  ;;  %v2653_v14 = vpop.f32.mrf.mxu1 }
 0x399   : > { %v5600_v3 = vpop.f32.mrf.mxu1 }
 0x39a   : > { %v2686_v54 = vsel %vm2679_vm0, %v5600_v3, -inf }
 0x39b   : > { %2779 = vmax.xlane.f32.xlu0 %v2778_v10  ;;  %v2658_v25 = vpop.f32.mrf.mxu1 }
 0x39d   : > { %v5604_v56 = vpop.f32.mrf.mxu1 }
 0x39e   : > { %v2689_v45 = vsel %vm2679_vm0, %v5604_v56, -inf }
 0x39f   : > { %2687 = vmax.xlane.f32.xlu0 %v2686_v54  ;;  %2690 = vmax.xlane.f32.xlu1 %v2689_v45  ;;  %v2661_v8 = vpop.f32.mrf.mxu1 }
 0x3a1   : > { %v5610_v42 = vpop.f32.mrf.mxu1 }
 0x3a2   : > { %v2692_v23 = vsel %vm2679_vm0, %v5610_v42, -inf }
 0x3a3   : > { %2785 = vmax.xlane.f32.xlu0 %v2784_v59  ;;  %2788 = vmax.xlane.f32.xlu1 %v2787_v52  ;;  %v2666_v20 = vpop.f32.mrf.mxu1 }
 0x3a5   : > { %v5616_v21 = vpop.f32.mrf.mxu1 }
 0x3a6   : > { %v2695_v32 = vsel %vm2679_vm0, %v5616_v21, -inf }
 0x3a7   : > { %2693 = vmax.xlane.f32.xlu0 %v2692_v23  ;;  %2696 = vmax.xlane.f32.xlu1 %v2695_v32  ;;  %v2669_v34 = vpop.f32.mrf.mxu1 }
 0x3a9   : > { %v5622_v62 = vpop.f32.mrf.mxu1 }
 0x3aa   : > { %v2698_v30 = vsel %vm2679_vm0, %v5622_v62, -inf }
 0x3ab   : > { %2699 = vmax.xlane.f32.xlu0 %v2698_v30  ;;  %v2674_v9 = vpop.f32.mrf.mxu1 }
 0x3ad   : > { %v5626_v26 = vpop.f32.mrf.mxu1 }
 0x3ae   : > { %v2701_v0 = vsel %vm2679_vm0, %v5626_v26, -inf }
 0x3af   : > { %2791 = vmax.xlane.f32.xlu0 %v2790_v50  ;;  %2702 = vmax.xlane.f32.xlu1 %v2701_v0  ;;  %v2677_v15 = vpop.f32.mrf.mxu1 }
 0x3b3   : > { %2794 = vmax.xlane.f32.xlu1 %v2793_v53 }
 0x3e4   : > { %v2774_v18 = vpop.xlane.xlu1 %2773 }
 0x3e5   : > { %v2796_v28 = vsub.f32 %v5570_v12, %v2774_v18  ;;  %v4821_v12 = vmov 0  }
 0x3e6   : > { %2993 = vmatprep.mubr.bf16.mxu1 %v4821_v12  ;;  %2908 = vmatprep.mubr.bf16.mxu0 %v4821_v12 }
 0x3e7   : > { %v2804_v36 = vmul.f32 1.442695, %v2796_v28 }
 0x3e8   : > { %v2777_v13 = vpop.xlane.xlu1 %2776 }
 0x3e9   : > { %4547 = vpow2.f32 %v2804_v36  ;;  %v2797_v47 = vsub.f32 %v5574_v17, %v2777_v13 }
 0x3eb   : > { %v2806_v63 = vmul.f32 1.442695, %v2797_v47 }
 0x3ed   : > { %4549 = vpow2.f32 %v2806_v63 }
 0x3f0   : > { %v2783_v17 = vpop.xlane.xlu1 %2782 }
 0x3f1   : > { %v2799_v45 = vsub.f32 %v5580_v7, %v2783_v17 }
 0x3f3   : > { %v2810_v20 = vmul.f32 1.442695, %v2799_v45 }
 0x3f6   : > { %v5636_v16 = vpop.eup %4547 }
 0x3f7   : > { %v2820_v11 = vsel %vm2679_vm0, %v5636_v16, 0.0 }
 0x3f8   : > { %2821 = vadd.xlane.f32.xlu0 %v2820_v11 }
 0x3fa   : > { %v5640_v14 = vpop.eup %4549 }
 0x3fb   : > { %v2823_v10 = vsel %vm2679_vm0, %v5640_v14, 0.0 }
 0x3fc   : > { %2824 = vadd.xlane.f32.xlu1 %v2823_v10 }
 0x41c   : > { %v2682_v25 = vpop.xlane.xlu0 %2681 }
 0x41d   : > { %v2704_v54 = vsub.f32 %v5592_v40, %v2682_v25 }
 0x41f   : > { %v2712_v8 = vmul.f32 1.442695, %v2704_v54 }
 0x420   : > { %v2685_v59 = vpop.xlane.xlu0 %2684 }
 0x421   : > { %4551 = vpow2.f32 %v2712_v8  ;;  %v2705_v52 = vsub.f32 %v5596_v4, %v2685_v59 }
 0x423   : > { %v2714_v23 = vmul.f32 1.442695, %v2705_v52 }
 0x424   : > { %v2780_v32 = vpop.xlane.xlu0 %2779 }
 0x425   : > { %4553 = vpow2.f32 %v2714_v23  ;;  %v2798_v34 = vsub.f32 %v5578_v43, %v2780_v32 }
 0x426   : > { %4555 = vpow2.f32 %v2810_v20 }
 0x427   : > { %v2808_v30 = vmul.f32 1.442695, %v2798_v34 }
 0x428   : > { %v2688_v9 = vpop.xlane.xlu0 %2687  ;;  %v2691_v50 = vpop.xlane.xlu1 %2690 }
 0x429   : > { %4557 = vpow2.f32 %v2808_v30  ;;  %v2706_v40 = vsub.f32 %v5600_v3, %v2688_v9  ;;  %v2707_v7 = vsub.f32 %v5604_v56, %v2691_v50 }
 0x42b   : > { %v2716_v0 = vmul.f32 1.442695, %v2706_v40  ;;  %v2718_v15 = vmul.f32 1.442695, %v2707_v7 }
 0x42c   : > { %v2786_v53 = vpop.xlane.xlu0 %2785  ;;  %v2789_v18 = vpop.xlane.xlu1 %2788 }
 0x42d   : > { %4559 = vpow2.f32 %v2716_v0  ;;  %v2800_v4 = vsub.f32 %v5584_v27, %v2786_v53  ;;  %v2801_v28 = vsub.f32 %v5586_v6, %v2789_v18 }
 0x42e   : > { %v5654_v36 = vpop.eup %4551  ;;  %4561 = vpow2.f32 %v2718_v15 }
 0x42f   : > { %v2812_v43 = vmul.f32 1.442695, %v2800_v4  ;;  %v2814_v13 = vmul.f32 1.442695, %v2801_v28  ;;  %v2728_v47 = vsel %vm2679_vm0, %v5654_v36, 0.0 }
 0x430   : > { %v2694_v3 = vpop.xlane.xlu0 %2693  ;;  %v2697_v63 = vpop.xlane.xlu1 %2696  ;;  %2729 = vadd.xlane.f32.xlu0 %v2728_v47 }
 0x431   : > { %4563 = vpow2.f32 %v2812_v43  ;;  %v2708_v56 = vsub.f32 %v5610_v42, %v2694_v3  ;;  %v2709_v11 = vsub.f32 %v5616_v21, %v2697_v63 }
 0x432   : > { %v5660_v10 = vpop.eup %4553  ;;  %4565 = vpow2.f32 %v2814_v13 }
 0x433   : > { %v2720_v27 = vmul.f32 1.442695, %v2708_v56  ;;  %v2722_v6 = vmul.f32 1.442695, %v2709_v11  ;;  %v2731_v17 = vsel %vm2679_vm0, %v5660_v10, 0.0  ;;  %v5664_v25 = vpop.eup %4555 }
 0x434   : > { %v2700_v54 = vpop.xlane.xlu0 %2699  ;;  %2732 = vadd.xlane.f32.xlu1 %v2731_v17  ;;  %v2829_v59 = vsel %vm2679_vm0, %v5664_v25, 0.0  ;;  %v4515_v17 = vld [vmem:[%s6033_s8 + $0x78] sm:$0xff]  }
 0x435   : > { %4567 = vpow2.f32 %v2720_v27  ;;  %v2710_v45 = vsub.f32 %v5622_v62, %v2700_v54  ;;  %4015 = vmatprep.subr.bf16.mxu0 %v4515_v17 }
 0x436   : > { %v5667_v8 = vpop.eup %4557  ;;  %4569 = vpow2.f32 %v2722_v6 }
 0x437   : > { %v2724_v42 = vmul.f32 1.442695, %v2710_v45  ;;  %v2826_v21 = vsel %vm2679_vm0, %v5667_v8, 0.0 }
 0x438   : > { %2827 = vadd.xlane.f32.xlu0 %v2826_v21  ;;  %v2792_v52 = vpop.xlane.xlu0 %2791  ;;  %2830 = vadd.xlane.f32.xlu1 %v2829_v59  ;;  %v2703_v20 = vpop.xlane.xlu1 %2702 }
 0x439   : > { %4571 = vpow2.f32 %v2724_v42  ;;  %v2802_v23 = vsub.f32 %v5588_v44, %v2792_v52  ;;  %v2711_v32 = vsub.f32 %v5626_v26, %v2703_v20 }
 0x43a   : > { %v5675_v62 = vpop.eup %4559 }
 0x43b   : > { %v5677_v34 = vpop.eup %4561  ;;  %v2816_v30 = vmul.f32 1.442695, %v2802_v23  ;;  %v2726_v9 = vmul.f32 1.442695, %v2711_v32  ;;  %v2734_v50 = vsel %vm2679_vm0, %v5675_v62, 0.0 }
 0x43c   : > { %2735 = vadd.xlane.f32.xlu0 %v2734_v50  ;;  %v2737_v40 = vsel %vm2679_vm0, %v5677_v34, 0.0  ;;  %v2795_v7 = vpop.xlane.xlu1 %2794 }
 0x43d   : > { %4573 = vpow2.f32 %v2816_v30  ;;  %2738 = vadd.xlane.f32.xlu1 %v2737_v40  ;;  %v2803_v44 = vsub.f32 %v5590_v57, %v2795_v7 }
 0x43e   : > { %v5684_v0 = vpop.eup %4563  ;;  %4575 = vpow2.f32 %v2726_v9 }
 0x43f   : > { %v5686_v26 = vpop.eup %4565  ;;  %v2818_v15 = vmul.f32 1.442695, %v2803_v44  ;;  %v2832_v53 = vsel %vm2679_vm0, %v5684_v0, 0.0 }
 0x440   : > { %2833 = vadd.xlane.f32.xlu0 %v2832_v53  ;;  %v2835_v18 = vsel %vm2679_vm0, %v5686_v26, 0.0 }
 0x441   : > { %4577 = vpow2.f32 %v2818_v15  ;;  %2836 = vadd.xlane.f32.xlu1 %v2835_v18 }
 0x442   : > { %v5692_v4 = vpop.eup %4567 }
 0x443   : > { %v5694_v28 = vpop.eup %4569  ;;  %v2740_v57 = vsel %vm2679_vm0, %v5692_v4, 0.0 }
 0x444   : > { %2741 = vadd.xlane.f32.xlu0 %v2740_v57  ;;  %v2743_v43 = vsel %vm2679_vm0, %v5694_v28, 0.0  ;;  %v4516_v57 = vld [vmem:[%s6033_s8 + $0x38] sm:$0xff]  }
 0x445   : > { %2744 = vadd.xlane.f32.xlu1 %v2743_v43 }
 0x446   : > { %v5700_v13 = vpop.eup %4571 }
 0x447   : > { %v2746_v47 = vsel %vm2679_vm0, %v5700_v13, 0.0 }
 0x448   : > { %2747 = vadd.xlane.f32.xlu0 %v2746_v47 }
 0x44a   : > { %v5704_v3 = vpop.eup %4573 }
 0x44b   : > { %v5706_v63 = vpop.eup %4575  ;;  %v2838_v56 = vsel %vm2679_vm0, %v5704_v3, 0.0 }
 0x44c   : > { %2839 = vadd.xlane.f32.xlu0 %v2838_v56  ;;  %v2749_v11 = vsel %vm2679_vm0, %v5706_v63, 0.0  ;;  %v4517_v56 = vld [vmem:[%s6033_s8 + $0x70] sm:$0xff]  }
 0x44d   : > { %2750 = vadd.xlane.f32.xlu1 %v2749_v11 }
 0x44e   : > { %v5712_v27 = vpop.eup %4577 }
 0x44f   : > { %v2841_v6 = vsel %vm2679_vm0, %v5712_v27, 0.0 }
 0x451   : > { %2842 = vadd.xlane.f32.xlu1 %v2841_v6 }
 0x481   : > { %v2822_v54 = vpop.xlane.xlu0 %2821 }
 0x482   : > { %4579 = vrcp.f32 %v2822_v54  ;;  %v4518_v54 = vld [vmem:[%s6033_s8 + $0x30] sm:$0xff]  }
 0x485   : > { %v2825_v45 = vpop.xlane.xlu1 %2824 }
 0x486   : > { %4581 = vrcp.f32 %v2825_v45  ;;  %v4519_v45 = vld [vmem:[%s6033_s8 + $0x68] sm:$0xff]  }
 0x48f   : > { %v4580_v42 = vpop.eup %4579 }
 0x490   : > { %v2852_v59 = vmul.f32 %v4580_v42, %v5636_v16 }
 0x493   : > { %v4582_v21 = vpop.eup %4581 }
 0x494   : > { %v2853_v52 = vmul.f32 %v4582_v21, %v5640_v14 }
 0x496   : > { %v2860_v20 = vpack.c.bf16 %v2853_v52, %v2852_v59 }
 0x498   : > { %3970 = vmatmul.mubr.msk.bf16.vlgmr.msra.gmra.mxu1 %vm2679_vm0, %v2860_v20 }
 0x499   : > { %3003 = vmatprep.mubr.bf16.mxu1 %v4821_v12 }
 0x4b9   : > { %v2730_v23 = vpop.xlane.xlu0 %2729 }
 0x4ba   : > { %4583 = vrcp.f32 %v2730_v23  ;;  %v4520_v23 = vld [vmem:[%s6033_s8 + $0x28] sm:$0xff]  }
 0x4bd   : > { %v2733_v32 = vpop.xlane.xlu1 %2732 }
 0x4be   : > { %4585 = vrcp.f32 %v2733_v32 }
 0x4c1   : > { %v2828_v30 = vpop.xlane.xlu0 %2827  ;;  %v2831_v9 = vpop.xlane.xlu1 %2830 }
 0x4c2   : > { %4587 = vrcp.f32 %v2828_v30 }
 0x4c3   : > { %4589 = vrcp.f32 %v2831_v9 }
 0x4c5   : > { %v2736_v50 = vpop.xlane.xlu0 %2735 }
 0x4c6   : > { %4591 = vrcp.f32 %v2736_v50  ;;  %v2739_v40 = vpop.xlane.xlu1 %2738 }
 0x4c7   : > { %4593 = vrcp.f32 %v2739_v40  ;;  %v4584_v16 = vpop.eup %4583 }
 0x4c8   : > { %v2760_v15 = vmul.f32 %v4584_v16, %v5654_v36  ;;  %v4522_v16 = vld [vmem:[%s6033_s8 + $0x20] sm:$0xff]  }
 0x4c9   : > { %v2834_v7 = vpop.xlane.xlu0 %2833 }
 0x4ca   : > { %4595 = vrcp.f32 %v2834_v7  ;;  %v2837_v14 = vpop.xlane.xlu1 %2836 }
 0x4cb   : > { %v4586_v44 = vpop.eup %4585  ;;  %4597 = vrcp.f32 %v2837_v14 }
 0x4cc   : > { %v2761_v53 = vmul.f32 %v4586_v44, %v5660_v10 }
 0x4cd   : > { %v2742_v18 = vpop.xlane.xlu0 %2741 }
 0x4ce   : > { %v2768_v43 = vpack.c.bf16 %v2761_v53, %v2760_v15  ;;  %4599 = vrcp.f32 %v2742_v18  ;;  %v2745_v47 = vpop.xlane.xlu1 %2744  ;;  %v4524_v53 = vld [vmem:[%s6033_s8 + $0x18] sm:$0xff]  }
 0x4cf   : > { %v4588_v11 = vpop.eup %4587  ;;  %4601 = vrcp.f32 %v2745_v47 }
 0x4d0   : > { %v4590_v6 = vpop.eup %4589  ;;  %3966 = vmatmul.mubr.msk.bf16.vlgmr.msra.gmra.mxu0 %vm2679_vm0, %v2768_v43  ;;  %v2854_v36 = vmul.f32 %v4588_v11, %v5667_v8  ;;  %v4527_v43 = vld [vmem:[%s6033_s8 + $0x48] sm:$0xff]   ;;  %v4532_v11 = vld [vmem:[%s6032_s7 + $0x38] sm:$0xff]  }
 0x4d1   : > { %v2748_v10 = vpop.xlane.xlu0 %2747  ;;  %v2855_v17 = vmul.f32 %v4590_v6, %v5664_v25  ;;  %2918 = vmatprep.mubr.bf16.mxu0 %v4821_v12  ;;  %4016 = vmatpush3.bf16.msra.mxu0 %v4516_v57  ;;  %v4525_v57 = vld [vmem:[%s6033_s8 + $0x50] sm:$0xff]  }
 0x4d2   : > { %4017 = vmatprep.subr.bf16.mxu0 %v4517_v56  ;;  %4603 = vrcp.f32 %v2748_v10  ;;  %v4531_v56 = vld [vmem:[%s6032_s7 + $0x78] sm:$0xff]  }
 0x4d3   : > { %v4592_v42 = vpop.eup %4591  ;;  %v2861_v21 = vpack.c.bf16 %v2855_v17, %v2854_v36  ;;  %v4528_v17 = vld [vmem:[%s6033_s8 + $0x8] sm:$0xff]   ;;  %4055 = vmatprep.subr.bf16.mxu1 %v4531_v56 }
 0x4d4   : > { %v4594_v59 = vpop.eup %4593  ;;  %v2762_v8 = vmul.f32 %v4592_v42, %v5675_v62  ;;  %v4521_v62 = vld [vmem:[%s6033_s8 + $0x60] sm:$0xff]   ;;  %4056 = vmatpush3.bf16.msra.mxu1 %v4532_v11 }
 0x4d5   : > { %3971 = vmatmul.mubr.msk.bf16.gmra.mxu1 %vm2679_vm0, %v2861_v21  ;;  %v2763_v25 = vmul.f32 %v4594_v59, %v5677_v34  ;;  %4018 = vmatpush3.bf16.msra.mxu0 %v4518_v54  ;;  %v2840_v52 = vpop.xlane.xlu0 %2839 }
 0x4d6   : > { %v2751_v20 = vpop.xlane.xlu1 %2750  ;;  %3013 = vmatprep.mubr.bf16.mxu1 %v4821_v12  ;;  %4019 = vmatprep.subr.bf16.mxu0 %v4519_v45  ;;  %v4529_v45 = vld [vmem:[%s6033_s8 + $0x40] sm:$0xff]  }
 0x4d7   : > { %v4596_v32 = vpop.eup %4595  ;;  %4605 = vrcp.f32 %v2751_v20  ;;  %v2769_v30 = vpack.c.bf16 %v2763_v25, %v2762_v8  ;;  %v4530_v8 = vld [vmem:[%s6033_s8] sm:$0xff]  }
 0x4d8   : > { %v4598_v9 = vpop.eup %4597  ;;  %v2856_v34 = vmul.f32 %v4596_v32, %v5684_v0  ;;  %4607 = vrcp.f32 %v2840_v52  ;;  %v4523_v0 = vld [vmem:[%s6033_s8 + $0x58] sm:$0xff]   ;;  %v4536_v52 = vld [vmem:[%s6032_s7 + $0x28] sm:$0xff]   ;;  %v4537_v20 = vld [vmem:[%s6032_s7 + $0x60] sm:$0xff]  }
 0x4d9   : > { %3967 = vmatmul.mubr.msk.bf16.gmra.mxu0 %vm2679_vm0, %v2769_v30  ;;  %v2857_v50 = vmul.f32 %v4598_v9, %v5686_v26  ;;  %v4541_v32 = vld [vmem:[%s6032_s7 + $0x50] sm:$0xff]   ;;  %v4544_v9 = vld [vmem:[%s6032_s7 + $0x8] sm:$0xff]  }
 0x4da   : > { %v2843_v40 = vpop.xlane.xlu1 %2842  ;;  %2928 = vmatprep.mubr.bf16.mxu0 %v4821_v12  ;;  %4020 = vmatpush3.bf16.msra.mxu0 %v4520_v23  ;;  %v4540_v23 = vld [vmem:[%s6032_s7 + $0x18] sm:$0xff]   ;;  %v4542_v30 = vld [vmem:[%s6032_s7 + $0x10] sm:$0xff]  }
 0x4db   : > { %v4600_v7 = vpop.eup %4599  ;;  %4609 = vrcp.f32 %v2843_v40  ;;  %v2862_v14 = vpack.c.bf16 %v2857_v50, %v2856_v34  ;;  %4021 = vmatprep.subr.bf16.mxu0 %v4521_v62  ;;  %v4543_v62 = vld [vmem:[%s6032_s7 + $0x48] sm:$0xff]   ;;  %v4545_v34 = vld [vmem:[%s6032_s7 + $0x40] sm:$0xff]  }
 0x4dc   : > { %v4602_v44 = vpop.eup %4601  ;;  %v2764_v15 = vmul.f32 %v4600_v7, %v5692_v4  ;;  %v4546_v50 = vld [vmem:[%s6032_s7] sm:$0xff]  }
 0x4dd   : > { %3972 = vmatmul.mubr.msk.bf16.gmra.mxu1 %vm2679_vm0, %v2862_v14  ;;  %v2765_v26 = vmul.f32 %v4602_v44, %v5694_v28  ;;  %v4526_v28 = vld [vmem:[%s6033_s8 + $0x10] sm:$0xff]  }
 0x4de   : > { %3023 = vmatprep.mubr.bf16.mxu1 %v4821_v12  ;;  %4022 = vmatpush3.bf16.msra.mxu0 %v4522_v16 }
 0x4df   : > { %v2770_v18 = vpack.c.bf16 %v2765_v26, %v2764_v15  ;;  %4023 = vmatprep.subr.bf16.mxu0 %v4523_v0  ;;  %v4604_v4 = vpop.eup %4603 }
 0x4e0   : > { %v2766_v6 = vmul.f32 %v4604_v4, %v5700_v13  ;;  %v4534_v13 = vld [vmem:[%s6032_s7 + $0x30] sm:$0xff]  }
 0x4e1   : > { %3968 = vmatmul.mubr.msk.bf16.gmra.mxu0 %vm2679_vm0, %v2770_v18 }
 0x4e2   : > { %2938 = vmatprep.mubr.bf16.mxu0 %v4821_v12  ;;  %4024 = vmatpush3.bf16.msra.mxu0 %v4524_v53  ;;  %v4533_v12 = vld [vmem:[%s6032_s7 + $0x70] sm:$0xff]  }
 0x4e3   : > { %4025 = vmatprep.subr.bf16.mxu0 %v4525_v57  ;;  %4057 = vmatprep.subr.bf16.mxu1 %v4533_v12 }
 0x4e4   : > { %v4606_v47 = vpop.eup %4605  ;;  %4058 = vmatpush3.bf16.msra.mxu1 %v4534_v13 }
 0x4e5   : > { %v2767_v36 = vmul.f32 %v4606_v47, %v5706_v63  ;;  %v4608_v10 = vpop.eup %4607  ;;  %v4535_v63 = vld [vmem:[%s6032_s7 + $0x68] sm:$0xff]  }
 0x4e6   : > { %4026 = vmatpush3.bf16.msra.mxu0 %v4526_v28  ;;  %v2858_v21 = vmul.f32 %v4608_v10, %v5704_v3  ;;  %4059 = vmatprep.subr.bf16.mxu1 %v4535_v63  ;;  %v4538_v3 = vld [vmem:[%s6032_s7 + $0x20] sm:$0xff]  }
 0x4e7   : > { %v2771_v54 = vpack.c.bf16 %v2767_v36, %v2766_v6  ;;  %4027 = vmatprep.subr.bf16.mxu0 %v4527_v43 }
 0x4e8   : > { %v4610_v42 = vpop.eup %4609  ;;  %4060 = vmatpush3.bf16.msra.mxu1 %v4536_v52  ;;  %v6094_v52 = vld [vmem:[#allocation22_spill] sm:$0xff] }
 0x4e9   : > { %3969 = vmatmul.mubr.msk.bf16.gmra.mxu0 %vm2679_vm0, %v2771_v54  ;;  %v2859_v59 = vmul.f32 %v4610_v42, %v5712_v27  ;;  %4061 = vmatprep.subr.bf16.mxu1 %v4537_v20  ;;  %v4539_v27 = vld [vmem:[%s6032_s7 + $0x58] sm:$0xff]  }
 0x4ea   : > { %4028 = vmatpush3.bf16.msra.mxu0 %v4528_v17 }
 0x4eb   : > { %v2863_v25 = vpack.c.bf16 %v2859_v59, %v2858_v21  ;;  %4029 = vmatprep.subr.bf16.mxu0 %v4529_v45 }
 0x4ec   : > { %4062 = vmatpush3.bf16.msra.mxu1 %v4538_v3 }
 0x4ed   : > { %3973 = vmatmul.mubr.msk.bf16.gmra.mxu1 %vm2679_vm0, %v2863_v25  ;;  %4063 = vmatprep.subr.bf16.mxu1 %v4539_v27 }
 0x4ee   : > { %4030 = vmatpush3.bf16.msra.mxu0 %v4530_v8  ;;  %v6093_v8 = vld [vmem:[#allocation21_spill] sm:$0xff] }
 0x4f0   : > { %4064 = vmatpush3.bf16.msra.mxu1 %v4540_v23 }
 0x4f1   : > { %4065 = vmatprep.subr.bf16.mxu1 %v4541_v32 }
 0x4f4   : > { %4066 = vmatpush3.bf16.msra.mxu1 %v4542_v30 }
 0x4f5   : > { %4067 = vmatprep.subr.bf16.mxu1 %v4543_v62 }
 0x4f8   : > { %4068 = vmatpush3.bf16.msra.mxu1 %v4544_v9 }
 0x4f9   : > { %4069 = vmatprep.subr.bf16.mxu1 %v4545_v34 }
 0x4fc   : > { %4070 = vmatpush3.bf16.msra.mxu1 %v4546_v50  ;;  %v6095_v50 = vld [vmem:[#allocation23_spill] sm:$0xff] }
 0x558   : > { %v2995_v40 = vpop.f32.mrf.mxu1 }
 0x559   : > { %v2996_v26 = vadd.f32 %v2995_v40, %v5553_v29 }
 0x55a   : > { %v2997_v16 = vpop.f32.mrf.mxu1 }
 0x55b   : > { %v2998_v44 = vadd.f32 %v2997_v16, %v5541_v22 }
 0x55c   : > { %v2999_v7 = vpop.f32.mrf.mxu1 }
 0x55d   : > { %v3000_v14 = vadd.f32 %v2999_v7, %v5556_v49  ;;  %v6096_v7 = vld [vmem:[#allocation24_spill] sm:$0xff] }
 0x55e   : > { %v3001_v0 = vpop.f32.mrf.mxu1 }
 0x55f   : > { %v3002_v15 = vadd.f32 %v3001_v0, %v5544_v24  ;;  %v3074_v18 = vpack.c.bf16 %v3000_v14, %v2996_v26  ;;  %v6097_v0 = vld [vmem:[#allocation25_spill] sm:$0xff] }
 0x561   : > { %v3075_v53 = vpack.c.bf16 %v3002_v15, %v2998_v44  ;;  %v6098_v44 = vld [vmem:[#allocation26_spill] sm:$0xff] }
 0x563   : > { %3242 = vmatprep.mubr.bf16.mxu0 %v3075_v53 }
 0x564   : > { %3243 = vmatmul.mubr.bf16.vlgmr.msra.gmra.mxu0 %v3074_v18 }
 0x590   : > { %v2910_v57 = vpop.f32.mrf.mxu0 }
 0x591   : > { %v2911_v24 = vadd.f32 %v2910_v57, %v5345_v41  ;;  %v6099_v57 = vld [vmem:[#allocation27_spill] sm:$0xff] }
 0x592   : > { %v2912_v4 = vpop.f32.mrf.mxu0 }
 0x593   : > { %v2913_v49 = vadd.f32 %v2912_v4, %v5340_v38 }
 0x594   : > { %v2914_v28 = vpop.f32.mrf.mxu0 }
 0x595   : > { %v3005_v43 = vpop.f32.mrf.mxu1  ;;  %v2915_v47 = vadd.f32 %v2914_v28, %v5336_v35 }
 0x596   : > { %v2916_v56 = vpop.f32.mrf.mxu0  ;;  %v3006_v38 = vadd.f32 %v3005_v43, %v5529_v37 }
 0x597   : > { %v2917_v11 = vadd.f32 %v2916_v56, %v5342_v39  ;;  %v3007_v22 = vpop.f32.mrf.mxu1  ;;  %v3034_v36 = vpack.c.bf16 %v2915_v47, %v2911_v24  ;;  %v6100_v47 = vld [vmem:[#allocation28_spill] sm:$0xff] }
 0x598   : > { %v3008_v45 = vadd.f32 %v3007_v22, %v5509_v5  ;;  %v6102_v22 = vld [vmem:[#allocation30_spill] sm:$0xff] }
 0x599   : > { %v3035_v12 = vpack.c.bf16 %v2917_v11, %v2913_v49  ;;  %v2920_v29 = vpop.f32.mrf.mxu0  ;;  %v3009_v6 = vpop.f32.mrf.mxu1  ;;  %v6101_v49 = vld [vmem:[#allocation29_spill] sm:$0xff] }
 0x59a   : > { %v3010_v10 = vadd.f32 %v3009_v6, %v5532_v58  ;;  %v2921_v5 = vadd.f32 %v2920_v29, %v6094_v52 }
 0x59b   : > { %v2922_v17 = vpop.f32.mrf.mxu0  ;;  %v3011_v54 = vpop.f32.mrf.mxu1  ;;  %3403 = vmatprep.mubr.bf16.mxu1 %v3035_v12 }
 0x59c   : > { %v3012_v35 = vadd.f32 %v3011_v54, %v5511_v46  ;;  %3404 = vmatmul.mubr.bf16.vlgmr.msra.gmra.mxu1 %v3034_v36  ;;  %v3076_v41 = vpack.c.bf16 %v3010_v10, %v3006_v38  ;;  %v2923_v58 = vadd.f32 %v2922_v17, %v5367_v60 }
 0x59d   : > { %v2924_v39 = vpop.f32.mrf.mxu0  ;;  %v3015_v13 = vpop.f32.mrf.mxu1 }
 0x59e   : > { %v3077_v42 = vpack.c.bf16 %v3012_v35, %v3008_v45  ;;  %v2925_v63 = vadd.f32 %v2924_v39, %v5363_v55  ;;  %v3016_v60 = vadd.f32 %v3015_v13, %v5504_v1 }
 0x59f   : > { %v2926_v21 = vpop.f32.mrf.mxu0  ;;  %v3017_v59 = vpop.f32.mrf.mxu1 }
 0x5a0   : > { %v2927_v25 = vadd.f32 %v2926_v21, %v6093_v8  ;;  %3250 = vmatprep.mubr.bf16.mxu0 %v3077_v42  ;;  %v3036_v37 = vpack.c.bf16 %v2925_v63, %v2921_v5  ;;  %v3018_v55 = vadd.f32 %v3017_v59, %v5475_v61 }
 0x5a1   : > { %v2930_v20 = vpop.f32.mrf.mxu0  ;;  %v3019_v46 = vpop.f32.mrf.mxu1  ;;  %3251 = vmatmul.mubr.bf16.gmra.mxu0 %v3076_v41 }
 0x5a2   : > { %v3037_v3 = vpack.c.bf16 %v2927_v25, %v2923_v58  ;;  %v3020_v27 = vadd.f32 %v3019_v46, %v5506_v2  ;;  %v2931_v15 = vadd.f32 %v2930_v20, %v6098_v44 }
 0x5a3   : > { %v2932_v23 = vpop.f32.mrf.mxu0  ;;  %v3021_v32 = vpop.f32.mrf.mxu1 }
 0x5a4   : > { %v3022_v30 = vadd.f32 %v3021_v32, %v5479_v19  ;;  %3411 = vmatprep.mubr.bf16.mxu1 %v3037_v3  ;;  %v3078_v34 = vpack.c.bf16 %v3020_v27, %v3016_v60  ;;  %v2933_v14 = vadd.f32 %v2932_v23, %v6096_v7 }
 0x5a5   : > { %v2934_v62 = vpop.f32.mrf.mxu0  ;;  %3412 = vmatmul.mubr.bf16.gmra.mxu1 %v3036_v37 }
 0x5a6   : > { %v3079_v9 = vpack.c.bf16 %v3022_v30, %v3018_v55  ;;  %v2935_v40 = vadd.f32 %v2934_v62, %v6095_v50 }
 0x5a7   : > { %v2936_v16 = vpop.f32.mrf.mxu0 }
 0x5a8   : > { %v2937_v2 = vadd.f32 %v2936_v16, %v6097_v0  ;;  %3258 = vmatprep.mubr.bf16.mxu0 %v3079_v9  ;;  %v3038_v26 = vpack.c.bf16 %v2935_v40, %v2931_v15 }
 0x5a9   : > { %v2940_v61 = vpop.f32.mrf.mxu0  ;;  %3259 = vmatmul.mubr.bf16.gmra.mxu0 %v3078_v34 }
 0x5aa   : > { %v3039_v19 = vpack.c.bf16 %v2937_v2, %v2933_v14  ;;  %v2941_v24 = vadd.f32 %v2940_v61, %v6102_v22 }
 0x5ab   : > { %v2942_v53 = vpop.f32.mrf.mxu0 }
 0x5ac   : > { %3419 = vmatprep.mubr.bf16.mxu1 %v3039_v19  ;;  %v2943_v56 = vadd.f32 %v2942_v53, %v6100_v47 }
 0x5ad   : > { %v2944_v1 = vpop.f32.mrf.mxu0  ;;  %v3025_v18 = vpop.f32.mrf.mxu1  ;;  %3420 = vmatmul.mubr.bf16.gmra.mxu1 %v3038_v26 }
 0x5ae   : > { %v2945_v4 = vadd.f32 %v2944_v1, %v6099_v57  ;;  %v3026_v45 = vadd.f32 %v3025_v18, %v5477_v51 }
 0x5af   : > { %v2946_v28 = vpop.f32.mrf.mxu0  ;;  %v3027_v43 = vpop.f32.mrf.mxu1 }
 0x5b0   : > { %v2947_v11 = vadd.f32 %v2946_v28, %v6101_v49  ;;  %v3040_v6 = vpack.c.bf16 %v2945_v4, %v2941_v24  ;;  %v3028_v17 = vadd.f32 %v3027_v43, %v5481_v33  ;;  %v5877_v33 = vld [vmem:[%s6034_s9] ss:$0 sm:$0xff] }
 0x5b1   : > { %v3029_v12 = vpop.f32.mrf.mxu1 }
 0x5b2   : > { %v3041_v29 = vpack.c.bf16 %v2947_v11, %v2943_v56  ;;  %v3030_v36 = vadd.f32 %v3029_v12, %v5483_v31 }
 0x5b3   : > { %v3031_v10 = vpop.f32.mrf.mxu1 }
 0x5b4   : > { %v3032_v54 = vadd.f32 %v3031_v10, %v5485_v48  ;;  %3427 = vmatprep.mubr.bf16.mxu1 %v3041_v29  ;;  %v3080_v38 = vpack.c.bf16 %v3030_v36, %v3026_v45 }
 0x5b5   : > { %3428 = vmatmul.mubr.bf16.gmra.mxu1 %v3040_v6 }
 0x5b6   : > { %v3081_v35 = vpack.c.bf16 %v3032_v54, %v3028_v17 }
 0x5b8   : > { %3266 = vmatprep.mubr.bf16.mxu0 %v3081_v35 }
 0x5b9   : > { %3267 = vmatmul.mubr.bf16.gmra.mxu0 %v3080_v38 }
 0x624   : > { %v4031_v39 = vpop.f32.mrf.mxu0 }
 0x626   : > { %v4032_v13 = vpop.f32.mrf.mxu0 }
 0x627   : > { %v4033_v21 = vadd.f32 %v4032_v13, %v4031_v39 }
 0x628   : > { %v4034_v42 = vpop.f32.mrf.mxu0 }
 0x62a   : > { %v4035_v31 = vpop.f32.mrf.mxu0 }
 0x62b   : > { %v4036_v25 = vadd.f32 %v4035_v31, %v4034_v42 }
 0x65c   : > { %v4071_v41 = vpop.f32.mrf.mxu1 }
 0x65e   : > { %v4072_v63 = vpop.f32.mrf.mxu1 }
 0x65f   : > { %v4073_v59 = vadd.f32 %v4072_v63, %v4071_v41 }
 0x660   : > { %v4074_v58 = vpop.f32.mrf.mxu1 }
 0x661   : > { %v3406_v51 = vadd.f32 %v4073_v59, %v4033_v21  ;;  %v4037_v48 = vpop.f32.mrf.mxu0 }
 0x662   : > { %v4075_v8 = vpop.f32.mrf.mxu1 }
 0x663   : > { %v4038_v52 = vpop.f32.mrf.mxu0  ;;  %v4076_v5 = vadd.f32 %v4075_v8, %v4074_v58  ;;  %v5880_v20 = vadd.f32 %v5877_v33, %v3406_v51 }
 0x664   : > { %v4039_v30 = vadd.f32 %v4038_v52, %v4037_v48 }
 0x665   : > { %v3409_v46 = vadd.f32 %v4076_v5, %v4036_v25  ;;  %v4040_v3 = vpop.f32.mrf.mxu0  ;;  %v4077_v37 = vpop.f32.mrf.mxu1  ;;  %v3451_v27 = vsel %vm2679_vm0, %v5880_v20, 0.0 }
 0x666   : > { %3452 = vadd.xlane.f32.xlu0 %v3451_v27 }
 0x667   : > { %v4041_v23 = vpop.f32.mrf.mxu0  ;;  %v4078_v32 = vpop.f32.mrf.mxu1  ;;  %v5885_v55 = vadd.f32 %v5877_v33, %v3409_v46 }
 0x668   : > { %v4079_v60 = vadd.f32 %v4078_v32, %v4077_v37  ;;  %v4042_v7 = vadd.f32 %v4041_v23, %v4040_v3 }
 0x669   : > { %v4043_v62 = vpop.f32.mrf.mxu0  ;;  %v4080_v9 = vpop.f32.mrf.mxu1  ;;  %v3454_v34 = vsel %vm2679_vm0, %v5885_v55, 0.0 }
 0x66a   : > { %v3414_v50 = vadd.f32 %v4079_v60, %v4039_v30  ;;  %3455 = vadd.xlane.f32.xlu1 %v3454_v34 }
 0x66b   : > { %v4044_v40 = vpop.f32.mrf.mxu0  ;;  %v4081_v16 = vpop.f32.mrf.mxu1 }
 0x66c   : > { %v4082_v14 = vadd.f32 %v4081_v16, %v4080_v9  ;;  %v3445_v0 = vadd.f32 %v5877_v33, %v3414_v50  ;;  %v4045_v26 = vadd.f32 %v4044_v40, %v4043_v62 }
 0x66d   : > { %v4046_v2 = vpop.f32.mrf.mxu0  ;;  %v4083_v44 = vpop.f32.mrf.mxu1 }
 0x66e   : > { %v3417_v15 = vadd.f32 %v4082_v14, %v4042_v7  ;;  %v3457_v61 = vsel %vm2679_vm0, %v3445_v0, 0.0 }
 0x66f   : > { %v4084_v19 = vpop.f32.mrf.mxu1  ;;  %3458 = vadd.xlane.f32.xlu0 %v3457_v61  ;;  %v4047_v18 = vpop.f32.mrf.mxu0 }
 0x670   : > { %v4085_v53 = vadd.f32 %v4084_v19, %v4083_v44  ;;  %v3446_v1 = vadd.f32 %v5877_v33, %v3417_v15  ;;  %v4048_v47 = vadd.f32 %v4047_v18, %v4046_v2 }
 0x671   : > { %v4086_v57 = vpop.f32.mrf.mxu1 }
 0x672   : > { %v3422_v4 = vadd.f32 %v4085_v53, %v4045_v26  ;;  %v3460_v28 = vsel %vm2679_vm0, %v3446_v1, 0.0 }
 0x673   : > { %v4087_v43 = vpop.f32.mrf.mxu1  ;;  %3461 = vadd.xlane.f32.xlu1 %v3460_v28 }
 0x674   : > { %v4088_v56 = vadd.f32 %v4087_v43, %v4086_v57  ;;  %v3447_v49 = vadd.f32 %v5877_v33, %v3422_v4 }
 0x675   : > { %v4089_v11 = vpop.f32.mrf.mxu1 }
 0x676   : > { %v3425_v22 = vadd.f32 %v4088_v56, %v4048_v47  ;;  %v3463_v24 = vsel %vm2679_vm0, %v3447_v49, 0.0 }
 0x677   : > { %v4090_v12 = vpop.f32.mrf.mxu1  ;;  %3464 = vadd.xlane.f32.xlu0 %v3463_v24 }
 0x678   : > { %v3448_v29 = vadd.f32 %v5877_v33, %v3425_v22  ;;  %v4091_v54 = vadd.f32 %v4090_v12, %v4089_v11 }
 0x679   : > { %v4049_v6 = vpop.f32.mrf.mxu0  ;;  %v4092_v36 = vpop.f32.mrf.mxu1 }
 0x67a   : > { %v3466_v10 = vsel %vm2679_vm0, %v3448_v29, 0.0 }
 0x67b   : > { %v4050_v17 = vpop.f32.mrf.mxu0  ;;  %3467 = vadd.xlane.f32.xlu1 %v3466_v10  ;;  %v4093_v35 = vpop.f32.mrf.mxu1 }
 0x67c   : > { %v4051_v45 = vadd.f32 %v4050_v17, %v4049_v6  ;;  %v4094_v42 = vadd.f32 %v4093_v35, %v4092_v36 }
 0x67d   : > { %v4052_v38 = vpop.f32.mrf.mxu0 }
 0x67e   : > { %v3430_v39 = vadd.f32 %v4091_v54, %v4051_v45 }
 0x67f   : > { %v4053_v13 = vpop.f32.mrf.mxu0 }
 0x680   : > { %v4054_v41 = vadd.f32 %v4053_v13, %v4052_v38  ;;  %v3449_v63 = vadd.f32 %v5877_v33, %v3430_v39  ;;  %v4007_v38 = vld [vmem:[%s6035_s10] ss:$0 sm:$0xff] }
 0x682   : > { %v3433_v21 = vadd.f32 %v4094_v42, %v4054_v41  ;;  %v3469_v31 = vsel %vm2679_vm0, %v3449_v63, 0.0  ;;  %v4008_v42 = vld [vmem:[%s6036_s11] ss:$0 sm:$0xff] }
 0x683   : > { %3470 = vadd.xlane.f32.xlu0 %v3469_v31 }
 0x684   : > { %v3450_v59 = vadd.f32 %v5877_v33, %v3433_v21 }
 0x686   : > { %v3472_v58 = vsel %vm2679_vm0, %v3450_v59, 0.0 }
 0x687   : > { %3473 = vadd.xlane.f32.xlu1 %v3472_v58 }
 0x6ef   : > { %v3453_v51 = vpop.xlane.xlu0 %3452 }
 0x6f0   : > { %v3476_v48 = vmul.f32 0.015625, %v3453_v51 }
 0x6f2   : > { %v5902_v8 = vsub.f32 %v5880_v20, %v3476_v48 }
 0x6f3   : > { %v3456_v25 = vpop.xlane.xlu1 %3455 }
 0x6f4   : > { %v3477_v52 = vmul.f32 0.015625, %v3456_v25  ;;  %v3492_v5 = vmul.f32 %v5902_v8, %v5902_v8 }
 0x6f6   : > { %v5907_v46 = vsub.f32 %v5885_v55, %v3477_v52  ;;  %v3500_v3 = vsel %vm2679_vm0, %v3492_v5, 0.0 }
 0x6f7   : > { %3501 = vadd.xlane.f32.xlu0 %v3500_v3 }
 0x6f8   : > { %v3459_v33 = vpop.xlane.xlu0 %3458  ;;  %v3493_v37 = vmul.f32 %v5907_v46, %v5907_v46 }
 0x6f9   : > { %v3478_v27 = vmul.f32 0.015625, %v3459_v33 }
 0x6fa   : > { %v3503_v23 = vsel %vm2679_vm0, %v3493_v37, 0.0 }
 0x6fb   : > { %v5913_v20 = vsub.f32 %v3445_v0, %v3478_v27  ;;  %3504 = vadd.xlane.f32.xlu1 %v3503_v23 }
 0x6fc   : > { %v3462_v32 = vpop.xlane.xlu1 %3461 }
 0x6fd   : > { %v3479_v30 = vmul.f32 0.015625, %v3462_v32  ;;  %v3494_v60 = vmul.f32 %v5913_v20, %v5913_v20 }
 0x6ff   : > { %v5917_v55 = vsub.f32 %v3446_v1, %v3479_v30  ;;  %v3506_v62 = vsel %vm2679_vm0, %v3494_v60, 0.0 }
 0x700   : > { %3507 = vadd.xlane.f32.xlu0 %v3506_v62  ;;  %v3465_v9 = vpop.xlane.xlu0 %3464 }
 0x701   : > { %v3480_v34 = vmul.f32 0.015625, %v3465_v9  ;;  %v3495_v50 = vmul.f32 %v5917_v55, %v5917_v55 }
 0x703   : > { %v5922_v40 = vsub.f32 %v3447_v49, %v3480_v34  ;;  %v3509_v16 = vsel %vm2679_vm0, %v3495_v50, 0.0 }
 0x704   : > { %3510 = vadd.xlane.f32.xlu1 %v3509_v16  ;;  %v3468_v7 = vpop.xlane.xlu1 %3467 }
 0x705   : > { %v3481_v14 = vmul.f32 0.015625, %v3468_v7  ;;  %v3496_v0 = vmul.f32 %v5922_v40, %v5922_v40 }
 0x707   : > { %v5927_v2 = vsub.f32 %v3448_v29, %v3481_v14  ;;  %v3512_v44 = vsel %vm2679_vm0, %v3496_v0, 0.0 }
 0x708   : > { %3513 = vadd.xlane.f32.xlu0 %v3512_v44 }
 0x709   : > { %v3497_v15 = vmul.f32 %v5927_v2, %v5927_v2 }
 0x70b   : > { %v3515_v61 = vsel %vm2679_vm0, %v3497_v15, 0.0 }
 0x70c   : > { %3516 = vadd.xlane.f32.xlu1 %v3515_v61  ;;  %v3471_v19 = vpop.xlane.xlu0 %3470 }
 0x70d   : > { %v3482_v26 = vmul.f32 0.015625, %v3471_v19 }
 0x70f   : > { %v5933_v53 = vsub.f32 %v3449_v63, %v3482_v26 }
 0x710   : > { %v3474_v1 = vpop.xlane.xlu1 %3473 }
 0x711   : > { %v3483_v18 = vmul.f32 0.015625, %v3474_v1  ;;  %v3498_v57 = vmul.f32 %v5933_v53, %v5933_v53 }
 0x713   : > { %v5937_v4 = vsub.f32 %v3450_v59, %v3483_v18  ;;  %v3518_v28 = vsel %vm2679_vm0, %v3498_v57, 0.0 }
 0x714   : > { %3519 = vadd.xlane.f32.xlu0 %v3518_v28 }
 0x715   : > { %v3499_v43 = vmul.f32 %v5937_v4, %v5937_v4 }
 0x717   : > { %v3521_v47 = vsel %vm2679_vm0, %v3499_v43, 0.0 }
 0x718   : > { %3522 = vadd.xlane.f32.xlu1 %v3521_v47 }
 0x780   : > { %v3502_v56 = vpop.xlane.xlu0 %3501 }
 0x781   : > { %v3524_v49 = vmul.f32 0.015625, %v3502_v56 }
 0x783   : > { %v3532_v11 = vadd.f32 1e-05, %v3524_v49 }
 0x784   : > { %v3505_v22 = vpop.xlane.xlu1 %3504 }
 0x785   : > { %4611 = vrsqrt.f32 %v3532_v11  ;;  %v3525_v24 = vmul.f32 0.015625, %v3505_v22 }
 0x787   : > { %v3533_v12 = vadd.f32 1e-05, %v3525_v24 }
 0x789   : > { %4613 = vrsqrt.f32 %v3533_v12  ;;  %v3508_v29 = vpop.xlane.xlu0 %3507 }
 0x78a   : > { %v3526_v6 = vmul.f32 0.015625, %v3508_v29 }
 0x78c   : > { %v3534_v36 = vadd.f32 1e-05, %v3526_v6 }
 0x78d   : > { %v3511_v10 = vpop.xlane.xlu1 %3510 }
 0x78e   : > { %4615 = vrsqrt.f32 %v3534_v36  ;;  %v3527_v17 = vmul.f32 0.015625, %v3511_v10 }
 0x790   : > { %v3535_v54 = vadd.f32 1e-05, %v3527_v17 }
 0x791   : > { %v3514_v45 = vpop.xlane.xlu0 %3513 }
 0x792   : > { %v4612_v35 = vpop.eup %4611  ;;  %4617 = vrsqrt.f32 %v3535_v54  ;;  %v3528_v39 = vmul.f32 0.015625, %v3514_v45 }
 0x793   : > { %v3548_v13 = vmul.f32 %v4612_v35, %v5902_v8 }
 0x794   : > { %v3536_v41 = vadd.f32 1e-05, %v3528_v39 }
 0x795   : > { %v3563_v63 = vmul.f32 %v4007_v38, %v3548_v13  ;;  %v3517_v21 = vpop.xlane.xlu1 %3516 }
 0x796   : > { %v4614_v31 = vpop.eup %4613  ;;  %4619 = vrsqrt.f32 %v3536_v41  ;;  %v3529_v59 = vmul.f32 0.015625, %v3517_v21 }
 0x797   : > { %v3578_v58 = vadd.f32 %v4008_v42, %v3563_v63  ;;  %v3549_v51 = vmul.f32 %v4614_v31, %v5907_v46 }
 0x798   : > { %v3537_v48 = vadd.f32 1e-05, %v3529_v59 }
 0x799   : > { %v3586_v25 = vmax.f32 %v3578_v58, 0.0  ;;  %v3564_v52 = vmul.f32 %v4007_v38, %v3549_v51 }
 0x79a   : > { %4621 = vrsqrt.f32 %v3537_v48 }
 0x79b   : > { %v4616_v5 = vpop.eup %4615  ;;  %3594 = vst.msk [vmem:[%s5952_s20] sm:$0xff] %vm2679_vm0, %v3586_v25  ;;  %v3579_v8 = vadd.f32 %v4008_v42, %v3564_v52 }
 0x79c   : > { %v3550_v3 = vmul.f32 %v4616_v5, %v5913_v20 }
 0x79d   : > { %v3587_v33 = vmax.f32 %v3579_v8, 0.0  ;;  %v3520_v37 = vpop.xlane.xlu0 %3519 }
 0x79e   : > { %v3565_v27 = vmul.f32 %v4007_v38, %v3550_v3  ;;  %v3530_v23 = vmul.f32 0.015625, %v3520_v37 }
 0x79f   : > { %v4618_v46 = vpop.eup %4617  ;;  %3595 = vst.msk [vmem:[%s5952_s20 + $0x8] sm:$0xff] %vm2679_vm0, %v3587_v33 }
 0x7a0   : > { %v3580_v32 = vadd.f32 %v4008_v42, %v3565_v27  ;;  %v3551_v30 = vmul.f32 %v4618_v46, %v5917_v55  ;;  %v3538_v60 = vadd.f32 1e-05, %v3530_v23 }
 0x7a1   : > { %v3523_v62 = vpop.xlane.xlu1 %3522 }
 0x7a2   : > { %v3588_v9 = vmax.f32 %v3580_v32, 0.0  ;;  %v3566_v34 = vmul.f32 %v4007_v38, %v3551_v30  ;;  %4623 = vrsqrt.f32 %v3538_v60  ;;  %v3531_v50 = vmul.f32 0.015625, %v3523_v62 }
 0x7a3   : > { %v4620_v20 = vpop.eup %4619 }
 0x7a4   : > { %3596 = vst.msk [vmem:[%s5952_s20 + $0x10] sm:$0xff] %vm2679_vm0, %v3588_v9  ;;  %v3581_v16 = vadd.f32 %v4008_v42, %v3566_v34  ;;  %v3552_v7 = vmul.f32 %v4620_v20, %v5922_v40  ;;  %v3539_v14 = vadd.f32 1e-05, %v3531_v50 }
 0x7a6   : > { %v3589_v0 = vmax.f32 %v3581_v16, 0.0  ;;  %v3567_v44 = vmul.f32 %v4007_v38, %v3552_v7  ;;  %4625 = vrsqrt.f32 %v3539_v14 }
 0x7a7   : > { %v4622_v55 = vpop.eup %4621 }
 0x7a8   : > { %3597 = vst.msk [vmem:[%s5952_s20 + $0x18] sm:$0xff] %vm2679_vm0, %v3589_v0  ;;  %v3582_v15 = vadd.f32 %v4008_v42, %v3567_v44  ;;  %v3553_v61 = vmul.f32 %v4622_v55, %v5927_v2 }
 0x7aa   : > { %v3590_v19 = vmax.f32 %v3582_v15, 0.0  ;;  %v3568_v26 = vmul.f32 %v4007_v38, %v3553_v61 }
 0x7ac   : > { %3598 = vst.msk [vmem:[%s5952_s20 + $0x20] sm:$0xff] %vm2679_vm0, %v3590_v19  ;;  %v3583_v1 = vadd.f32 %v4008_v42, %v3568_v26 }
 0x7ae   : > { %v3591_v18 = vmax.f32 %v3583_v1, 0.0 }
 0x7af   : > { %v4624_v40 = vpop.eup %4623 }
 0x7b0   : > { %3599 = vst.msk [vmem:[%s5952_s20 + $0x28] sm:$0xff] %vm2679_vm0, %v3591_v18  ;;  %v3554_v57 = vmul.f32 %v4624_v40, %v5933_v53 }
 0x7b2   : > { %v3569_v28 = vmul.f32 %v4007_v38, %v3554_v57 }
 0x7b3   : > { %v4626_v43 = vpop.eup %4625 }
 0x7b4   : > { %v3584_v47 = vadd.f32 %v4008_v42, %v3569_v28  ;;  %v3555_v2 = vmul.f32 %v4626_v43, %v5937_v4 }
 0x7b6   : > { %v3592_v56 = vmax.f32 %v3584_v47, 0.0  ;;  %v3570_v49 = vmul.f32 %v4007_v38, %v3555_v2 }
 0x7b8   : > { %3600 = vst.msk [vmem:[%s5952_s20 + $0x30] sm:$0xff] %vm2679_vm0, %v3592_v56  ;;  %v3585_v11 = vadd.f32 %v4008_v42, %v3570_v49 }
 0x7ba   : > { %v3593_v53 = vmax.f32 %v3585_v11, 0.0 }
 0x7bc   : > { %3601 = vst.msk [vmem:[%s5952_s20 + $0x38] sm:$0xff] %vm2679_vm0, %v3593_v53 }
 0x7bd   : > { %4748 = shalt.err (!%p4745_p5)
}
 0x7be   : > { %s4749_s29 = scalar_lea.hbm %s5979_s17, 1024  ;;  %s4753_s21 = scalar_lea.hbm %s6103_s15, 4096 }
 0x7bf   : > { %p4750_p2 = scmp.ne.s32.totalorder %s5979_s17, %s4749_s29  ;;  %p4754_p10 = scmp.lt.s32.totalorder %s5979_s17, %s6103_s15 }
 0x7c0   : > { %p4755_p0 = scmp.lt.s32.totalorder %s4753_s21, %s4749_s29 }
 0x7c1   : > { %p4751_p13 = pnand %p4750_p2, %p6104_p7 }
 0x7c2   : > { %p4756_p6 = por %p4755_p0, %p4754_p10 }
 0x7c3   : > { %p4752_p8 = pneg %p4751_p13 }
 0x7c5   : > { %p4757_p11 = pnand %p4756_p6, %p4752_p8 }
 0x7c7   : > { %4760 = shalt.err (!%p4757_p11)
}
 0x7c8   : > { %s4823_s20 = smov 128   ;;  %s4824_s13 = smov 8  }
 0x7c9   : > { %4112 = dma.vmem_to_hbm [thread:$0]  (%p6104_p7), %s5981_s18, 1024, %s5979_s17, %s3603_s2, %s4823_s20, %s4823_s20, %s4824_s13  }
 0x7ca PF: > { %s6105_s30 = sld [smem:[#allocation16_spill]]  ;;  %p4137_p9 = scmp.ge.s32.totalorder %s4811_s24, 2 }
 0x7cb   : > { %s6106_s16 = sld [smem:[#allocation18_spill]] }
 0x7d0   : > { %s3631_s4 = sand.u32 1, %s6105_s30  }
 0x7d1   : > { %p6107_p12 = scmp.ne.s32.totalorder %s6106_s16, 0  ;;  %s3632_s25 = scalar_lea.sflag [#allocation4], %s3631_s4 }
 0x7d3   : > { %p4129_p3 = pnand %p4137_p9, %p6107_p12 }
 0x7d5   : > { %p4130_p1 = pneg %p4129_p3 }
 0x7d7   : > { %4794 = dma.done.wait (%p4130_p1), %s3632_s25, 1024  }
 0x7d8   : > { %4796 = vsyncadd (%p4130_p1), %s3632_s25, 4294966272  ;;  %s6108_s24 = sld [smem:[#allocation19_spill]]  ;;  %s6111_s21 = smov %s4803_s22 }
 0x7d9   : > { %s6109_s23 = sld [smem:[#allocation17_spill]] }
 0x7da   : > { %s6110_s0 = sld [smem:[#allocation20_spill]] }
 0x7de   : > { %p29_p4 = scmp.ge.s32.totalorder %s6108_s24, 6  }
 0x7df   : > { %s6112_s22 = smov %s6109_s23 }
 0x7e0   : > { %s6113_s23 = smov %s6110_s0  ;;  %31 = sbr.rel (!%p29_p4) target bundleno = 13 (0xd), region = 134 }
 0x7e5   :  { %3637 = vsyncpa [#allocation3], 1 }
 0x7e6   :  { %3639 = vsyncpa [#allocation3 + $0x1], 1 }
 0x7e7   :  { %3640 = vsyncpa [#allocation6], 1 }
 0x7e8   :  { %3642 = vsyncpa [#allocation6 + $0x1], 1 }
 0x7e9   :  { %3643 = vsyncpa [#allocation9], 1 }
 0x7ea   :  { %3644 = vsyncpa [#allocation4], 1 }
 0x7eb   :  { %3646 = vsyncpa [#allocation4 + $0x1], 1 }

</bundles_post_ra>
